<compile_context>
chip_gen: v6e
topology: v6e:2x2x1
jax: 0.10.0
libtpu: 0.0.40
codegen_flags: <defaults>
</compile_context>

<pallas_src>
import functools

import numpy as np
import jax
import jax.numpy as jnp
from jax.experimental import pallas as pl
from jax.experimental.pallas import tpu as pltpu


# ----------------------------------------------------------------------------
# Fused Pallas kernel (B images per grid step, everything resident in VMEM)
# ----------------------------------------------------------------------------
def _fused_kernel(x_ref, t1, t2, t3, tu, t4, t5,
                  b1, b2, b3, bu, b4, b5,
                  sel_ref, scat_ref, o_ref, *, B, H, W, cdt):
    f32 = jnp.float32
    Hh = H // 2
    R = B * H              # rows per step at full resolution
    Rh = B * Hh            # rows per step at half resolution

    # Boundary masks for per-image row shifts (one small iota per height).
    def row_masks(rows, h_img):
        ridx = jax.lax.broadcasted_iota(jnp.int32, (rows, 1), 0)
        h = ridx % h_img
        return h > 0, h < (h_img - 1)          # valid for d=-1 / d=+1

    up_ok, dn_ok = row_masks(R, H)
    up_ok_h, dn_ok_h = row_masks(Rh, Hh)

    def shift_rows(x, d, ok):
        """x[i + d] within each image; zero at the image boundary (the conv's
        zero padding is load-bearing).  XLU roll + VPU select, no matmul."""
        rolled = pltpu.roll(x, shift=(-d) % x.shape[0], axis=0)
        return jnp.where(ok, rolled, jnp.zeros((), x.dtype))

    def conv_block(x, t_ref, b_ref, ok_pair, act):
        """3x3 conv as ONE deep-K MXU matmul on the kh-stacked lane-Toeplitz
        weight; operands cast to bf16, accumulation in f32."""
        ok_up, ok_dn = ok_pair
        xc = jnp.concatenate(
            [shift_rows(x, -1, ok_up), x, shift_rows(x, +1, ok_dn)], axis=-1)
        acc = jnp.dot(xc.astype(cdt), t_ref[...],
                      preferred_element_type=f32) + b_ref[...]
        if act == "relu":
            return jnp.maximum(acc, 0.0)
        return jax.nn.sigmoid(acc)

    x = x_ref[...].reshape(R, 3 * W).astype(f32)                 # (R, W*3)

    h1 = conv_block(x, t1, b1, (up_ok, dn_ok), "relu")           # (R, W*8)
    y = conv_block(h1, t2, b2, (up_ok, dn_ok), "relu")           # (R, W*16), f32 residual

    # MaxPool2d(2): 2x2 max anchored at (h, w).  The stride-2 picks are folded
    # into sel_ref (rows) and t3's Toeplitz lane map (cols).  Wrapped rows /
    # lanes from the rolls are masked to zero (y >= 0, and odd anchors are
    # never consumed anyway).
    cy = t2.shape[-1] // W                                        # 16 channels
    y_dn = shift_rows(y, +1, dn_ok)                               # rows h, h+1
    mv = jnp.maximum(y, y_dn)
    lanes = mv.shape[-1]
    lane_ok = jax.lax.broadcasted_iota(jnp.int32, (1, lanes), 1) < lanes - cy
    mv_r = jnp.where(lane_ok, pltpu.roll(mv, shift=lanes - cy, axis=1), 0.0)
    m = jnp.maximum(mv, mv_r)                                     # cols w, w+1

    # Even-row subsample via a precomputed 0/1 matrix -> conv3 is a plain conv.
    p = jnp.dot(sel_ref[...], m, preferred_element_type=f32)      # (Rh, W*16)
    enc = conv_block(p, t3, b3, (up_ok_h, dn_ok_h), "relu")       # (Rh, (W/2)*32)

    # ConvTranspose2d (polyphase): one wide matmul + 3 precomputed row-scatter
    # matmuls (exact 0/1 selections kept in f32), then bias + residual skip.
    WC = 16 * W
    contrib = jnp.dot(enc.astype(cdt), tu[...],
                      preferred_element_type=f32)                 # (Rh, 3*W*16)
    up = jnp.dot(scat_ref[0], contrib[:, 0:WC], preferred_element_type=f32)
    up = up + jnp.dot(scat_ref[1], contrib[:, WC:2 * WC],
                      preferred_element_type=f32)
    up = up + jnp.dot(scat_ref[2], contrib[:, 2 * WC:3 * WC],
                      preferred_element_type=f32)
    up = up + bu[...] + y                                         # (R, W*16)

    h2 = conv_block(up, t4, b4, (up_ok, dn_ok), "relu")           # (R, W*8)
    out = conv_block(h2, t5, b5, (up_ok, dn_ok), "sigmoid")       # (R, out_pad)
    o_ref[...] = out.reshape(B, H, out.shape[-1])


def _fused_pallas_call(x_ld, weights, biases, sel_even, scat, *,
                       B, H, W, out_pad, cdt):
    N = x_ld.shape[0]
    assert N % B == 0
    t1, t2, t3, tu, t4, t5 = weights
    b1, b2, b3, bu, b4, b5 = biases

    def batch_spec(last):
        return pl.BlockSpec((B, H, last), lambda n: (n, 0, 0))

    def full_spec(arr):
        nd = arr.ndim
        return pl.BlockSpec(arr.shape, lambda n, _nd=nd: (0,) * _nd)

    in_specs = [batch_spec(x_ld.shape[-1])]
    in_specs += [full_spec(a) for a in (t1, t2, t3, tu, t4, t5,
                                        b1, b2, b3, bu, b4, b5,
                                        sel_even, scat)]

    kernel = functools.partial(_fused_kernel, B=B, H=H, W=W, cdt=cdt)
    return pl.pallas_call(
        kernel,
        out_shape=jax.ShapeDtypeStruct((N, H, out_pad), jnp.float32),
        grid=(N // B,),
        in_specs=in_specs,
        out_specs=batch_spec(out_pad),
        compiler_params=pltpu.CompilerParams(
            dimension_semantics=("parallel",),
            vmem_limit_bytes=64 * 1024 * 1024),
    )(x_ld, t1, t2, t3, tu, t4, t5, b1, b2, b3, bu, b4, b5, sel_even, scat)


# ----------------------------------------------------------------------------
# Wrapper-side weight / constant preparation
# ----------------------------------------------------------------------------
def _conv_lane_weights(w_oihw, w_out, w_in, pos_fn, cdt):
    """kh-stacked banded lane-Toeplitz weight: (3*w_in*Cin, w_out*Cout).
    Row blocks are ordered kh=0,1,2 to match the [x[i-1], x[i], x[i+1]]
    lane-concat in the kernel."""
    cout, cin = int(w_oihw.shape[0]), int(w_oihw.shape[1])
    mats = []
    for kh in range(3):
        t = jnp.zeros((w_in * cin, w_out * cout), jnp.float32)
        for kw in range(3):
            sel = np.zeros((w_in, w_out), np.float32)
            for wo in range(w_out):
                win = pos_fn(wo, kw)
                if win is not None:
                    sel[win, wo] = 1.0
            blk = w_oihw[:, :, kh, kw].T.astype(jnp.float32)      # (cin, cout)
            t = t + jnp.kron(jnp.asarray(sel), blk)
        mats.append(t)
    return jnp.concatenate(mats, axis=0).astype(cdt)


def _upconv_lane_weights(wt_iohw, ws, cdt):
    """Polyphase ConvTranspose2d weights, concatenated over the three
    (output-row parity a, encoder-row offset dh) phases along the output
    lanes: (ws*Cin, 3 * 2*ws*Cout)."""
    cin, cout = int(wt_iohw.shape[0]), int(wt_iohw.shape[1])
    mats = []
    for (a, dh) in ((0, 0), (1, 0), (1, 1)):
        kh = 2 * dh + 1 - a
        u = jnp.zeros((ws * cin, ws * 2 * cout), jnp.float32)
        for (b, dj) in ((0, 0), (1, 0), (1, 1)):
            kw = 2 * dj + 1 - b
            sel = np.zeros((ws, ws), np.float32)
            for j in range(ws):
                if 0 <= j + dj < ws:
                    sel[j + dj, j] = 1.0
            blk = jnp.zeros((cin, 2 * cout), jnp.float32)
            blk = blk.at[:, b * cout:(b + 1) * cout].set(
                wt_iohw[:, :, 2 - kh, 2 - kw].astype(jnp.float32))
            u = u + jnp.kron(jnp.asarray(sel), blk)
        mats.append(u)
    return jnp.concatenate(mats, axis=1).astype(cdt)


def _even_row_select(B, H):
    """(B*H/2, B*H) block-diagonal 0/1 matrix picking even rows per image."""
    Hh = H // 2
    S = np.zeros((B * Hh, B * H), np.float32)
    for b in range(B):
        for r in range(Hh):
            S[b * Hh + r, b * H + 2 * r] = 1.0
    return jnp.asarray(S)


def _upconv_scatter(B, H):
    """Three (B*H, B*H/2) block-diagonal 0/1 row-scatter matrices, one per
    polyphase (a, dh): up[i] += contrib[r] where 2r == i + 2dh - a."""
    Hh = H // 2
    mats = []
    for (a, dh) in ((0, 0), (1, 0), (1, 1)):
        S = np.zeros((B * H, B * Hh), np.float32)
        for b in range(B):
            for i in range(H):
                num = i + 2 * dh - a
                if num % 2 == 0 and 0 <= num // 2 < Hh:
                    S[b * H + i, b * Hh + num // 2] = 1.0
        mats.append(S)
    return jnp.asarray(np.stack(mats, axis=0))


def _pick_block_batch(N, H):
    """Images per grid step: aim for B*H ~ 256 MXU rows, keep >= 2 grid steps
    (megacore) when that does not drop below ~128 rows."""
    B = max(1, min(N, max(1, 256 // H)))
    while N % B:
        B -= 1
    while N // B < 2 and B > 1 and (B // 2) * H >= 128 and N % (B // 2) == 0:
        B //= 2
    return B


# ----------------------------------------------------------------------------
# AutoEncoderRes forward (Pallas) -- mirrors the PyTorch module
# ----------------------------------------------------------------------------
def autoencoder_res_forward(x_nchw, params, *, compute_dtype=jnp.bfloat16):
    N, C, H, W = x_nchw.shape
    assert C == 3 and H % 2 == 0 and W % 2 == 0, "expects 3 channels, even H/W"
    p = params
    wh = W // 2
    cdt = compute_dtype

    def std_pos(wo, kw):
        wi = wo + kw - 1
        return wi if 0 <= wi < W else None

    def pool_pos(wo, kw):              # folds the stride-2 maxpool column pick
        wi = wo + kw - 1
        return 2 * wi if 0 <= wi < wh else None

    t1 = _conv_lane_weights(p["w1"], W, W, std_pos, cdt)       # (3*W*3,  W*8)
    t2 = _conv_lane_weights(p["w2"], W, W, std_pos, cdt)       # (3*W*8,  W*16)
    t3 = _conv_lane_weights(p["w3"], wh, W, pool_pos, cdt)     # (3*W*16, wh*32)
    tu = _upconv_lane_weights(p["wt"], wh, cdt)                # (wh*32, 3*W*16)
    t4 = _conv_lane_weights(p["w4"], W, W, std_pos, cdt)       # (3*W*16, W*8)
    t5 = _conv_lane_weights(p["w5"], W, W, std_pos, cdt)       # (3*W*8,  W*3)

    # Lane-dense output: pad last conv's output lanes to a multiple of 128.
    out_pad = ((3 * W + 127) // 128) * 128
    t5 = jnp.pad(t5, ((0, 0), (0, out_pad - 3 * W)))

    b1 = jnp.tile(p["b1"].astype(jnp.float32), W)[None, :]
    b2 = jnp.tile(p["b2"].astype(jnp.float32), W)[None, :]
    b3 = jnp.tile(p["b3"].astype(jnp.float32), wh)[None, :]
    bu = jnp.tile(p["bt"].astype(jnp.float32), W)[None, :]
    b4 = jnp.tile(p["b4"].astype(jnp.float32), W)[None, :]
    b5 = jnp.pad(jnp.tile(p["b5"].astype(jnp.float32), W)[None, :],
                 ((0, 0), (0, out_pad - 3 * W)))

    B = _pick_block_batch(N, H)
    sel_even = _even_row_select(B, H)                           # (B*H/2, B*H)
    scat = _upconv_scatter(B, H)                                # (3, B*H, B*H/2)

    # NCHW -> lane-dense (N, H, W*C)
    x_ld = jnp.transpose(x_nchw, (0, 2, 3, 1)).reshape(N, H, W * C)
    x_ld = x_ld.astype(jnp.float32)

    out_ld = _fused_pallas_call(
        x_ld, (t1, t2, t3, tu, t4, t5), (b1, b2, b3, bu, b4, b5),
        sel_even, scat, B=B, H=H, W=W, out_pad=out_pad, cdt=cdt)

    out_ld = out_ld[:, :, :3 * W]                               # drop lane pad
    return jnp.transpose(out_ld.reshape(N, H, W, 3), (0, 3, 1, 2))   # -> NCHW


# ----------------------------------------------------------------------------
# Pure-JAX reference (Precision.HIGHEST, f32) for the correctness check
# ----------------------------------------------------------------------------
def _conv_ref(x, w_oihw, b):
    w_hwio = jnp.transpose(w_oihw, (2, 3, 1, 0))
    y = jax.lax.conv_general_dilated(
        x, w_hwio, window_strides=(1, 1), padding=((1, 1), (1, 1)),
        dimension_numbers=("NHWC", "HWIO", "NHWC"),
        precision=jax.lax.Precision.HIGHEST)
    return y + b.reshape(1, 1, 1, -1)


def _convT_ref(x, w_iohw, b):
    w_hwio = jnp.transpose(w_iohw[:, :, ::-1, ::-1], (2, 3, 0, 1))
    y = jax.lax.conv_general_dilated(
        x, w_hwio, window_strides=(1, 1), padding=((1, 2), (1, 2)),
        lhs_dilation=(2, 2), dimension_numbers=("NHWC", "HWIO", "NHWC"),
        precision=jax.lax.Precision.HIGHEST)
    return y + b.reshape(1, 1, 1, -1)


def _maxpool_ref(x):
    N, H, W, C = x.shape
    return jnp.max(x.reshape(N, H // 2, 2, W // 2, 2, C), axis=(2, 4))


def autoencoder_res_reference(x_nchw, p):
    x = jnp.transpose(x_nchw, (0, 2, 3, 1))
    h = jax.nn.relu(_conv_ref(x, p["w1"], p["b1"]))
    y = jax.nn.relu(_conv_ref(h, p["w2"], p["b2"]))
    enc = jax.nn.relu(_conv_ref(_maxpool_ref(y), p["w3"], p["b3"]))
    dec = _convT_ref(enc, p["wt"], p["bt"]) + y
    h2 = jax.nn.relu(_conv_ref(dec, p["w4"], p["b4"]))
    out = jax.nn.sigmoid(_conv_ref(h2, p["w5"], p["b5"]))
    return jnp.transpose(out, (0, 3, 1, 2))


# ----------------------------------------------------------------------------
# Deterministic parameter init (PyTorch-style uniform fan-in bounds)
# ----------------------------------------------------------------------------
def _init_conv(key, cout, cin, k=3):
    kw, kb = jax.random.split(key)
    bound = 1.0 / float(np.sqrt(cin * k * k))
    w = jax.random.uniform(kw, (cout, cin, k, k), jnp.float32, -bound, bound)
    b = jax.random.uniform(kb, (cout,), jnp.float32, -bound, bound)
    return w, b


if __name__ == "__main__":
    key = jax.random.PRNGKey(0)
    keys = jax.random.split(key, 8)

    # input: NCHW, 3 channels as required by the module
    x = jax.random.uniform(keys[0], (2, 3, 16, 16), jnp.float32)

    w1, b1 = _init_conv(keys[1], 8, 3)      # Conv2d(3, 8, 3, padding=1)
    w2, b2 = _init_conv(keys[2], 16, 8)     # Conv2d(8, 16, 3, padding=1)
    w3, b3 = _init_conv(keys[3], 32, 16)    # Conv2d(16, 32, 3, padding=1)
    # ConvTranspose2d(32, 16, 3, padding=1, output_padding=1, stride=2)
    kt_w, kt_b = jax.random.split(keys[4])
    bnd = 1.0 / float(np.sqrt(32 * 9))
    wt = jax.random.uniform(kt_w, (32, 16, 3, 3), jnp.float32, -bnd, bnd)
    bt = jax.random.uniform(kt_b, (16,), jnp.float32, -bnd, bnd)
    w4, b4 = _init_conv(keys[5], 8, 16)     # Conv2d(16, 8, 3, padding=1)
    w5, b5 = _init_conv(keys[6], 3, 8)      # Conv2d(8, 3, 3, padding=1)

    params = dict(w1=w1, b1=b1, w2=w2, b2=b2, w3=w3, b3=b3,
                  wt=wt, bt=bt, w4=w4, b4=b4, w5=w5, b5=b5)

    fwd = jax.jit(autoencoder_res_forward)
    out = jax.block_until_ready(fwd(x, params))

    ref = jax.block_until_ready(autoencoder_res_reference(x, params))
    assert out.shape == (2, 3, 16, 16), out.shape
    # bf16 MXU operands (f32 accumulation) vs. a Precision.HIGHEST f32 ref:
    # observed error is O(1e-3) post-sigmoid; 2e-2 gives safe margin.
    if not np.allclose(np.asarray(out), np.asarray(ref), atol=2e-2, rtol=2e-2):
        err = float(np.max(np.abs(np.asarray(out) - np.asarray(ref))))
        raise AssertionError(f"Pallas output does not match reference "
                             f"(max abs err {err:.3e})")

    print("KERNEL_OK")
</pallas_src>

<mosaic_0001>
module attributes {stable_mosaic.version = 11 : i64} {
  func.func @_fused_kernel(%arg0: i32, %arg1: memref<2x16x48xf32, #tpu.memory_space<vmem>>, %arg2: memref<144x128xbf16, #tpu.memory_space<vmem>>, %arg3: memref<384x256xbf16, #tpu.memory_space<vmem>>, %arg4: memref<768x256xbf16, #tpu.memory_space<vmem>>, %arg5: memref<256x768xbf16, #tpu.memory_space<vmem>>, %arg6: memref<768x128xbf16, #tpu.memory_space<vmem>>, %arg7: memref<384x128xbf16, #tpu.memory_space<vmem>>, %arg8: memref<1x128xf32, #tpu.memory_space<vmem>>, %arg9: memref<1x256xf32, #tpu.memory_space<vmem>>, %arg10: memref<1x256xf32, #tpu.memory_space<vmem>>, %arg11: memref<1x256xf32, #tpu.memory_space<vmem>>, %arg12: memref<1x128xf32, #tpu.memory_space<vmem>>, %arg13: memref<1x128xf32, #tpu.memory_space<vmem>>, %arg14: memref<16x32xf32, #tpu.memory_space<vmem>>, %arg15: memref<3x32x16xf32, #tpu.memory_space<vmem>>, %arg16: memref<2x16x128xf32, #tpu.memory_space<vmem>>) attributes {dimension_semantics = [#tpu.dimension_semantics<parallel>], iteration_bounds = array<i64: 1>, scalar_prefetch = 0 : i64, scratch_operands = 0 : i64, tpu.core_type = #tpu.core_type<tc>, window_params = [{transform_indices = @transform_0, window_bounds = array<i64: 2, 16, 48>}, {pipeline_mode = #tpu.pipeline_mode<synchronous>, transform_indices = @transform_1, window_bounds = array<i64: 144, 128>}, {pipeline_mode = #tpu.pipeline_mode<synchronous>, transform_indices = @transform_2, window_bounds = array<i64: 384, 256>}, {pipeline_mode = #tpu.pipeline_mode<synchronous>, transform_indices = @transform_3, window_bounds = array<i64: 768, 256>}, {pipeline_mode = #tpu.pipeline_mode<synchronous>, transform_indices = @transform_4, window_bounds = array<i64: 256, 768>}, {pipeline_mode = #tpu.pipeline_mode<synchronous>, transform_indices = @transform_5, window_bounds = array<i64: 768, 128>}, {pipeline_mode = #tpu.pipeline_mode<synchronous>, transform_indices = @transform_6, window_bounds = array<i64: 384, 128>}, {pipeline_mode = #tpu.pipeline_mode<synchronous>, transform_indices = @transform_7, window_bounds = array<i64: 1, 128>}, {pipeline_mode = #tpu.pipeline_mode<synchronous>, transform_indices = @transform_8, window_bounds = array<i64: 1, 256>}, {pipeline_mode = #tpu.pipeline_mode<synchronous>, transform_indices = @transform_9, window_bounds = array<i64: 1, 256>}, {pipeline_mode = #tpu.pipeline_mode<synchronous>, transform_indices = @transform_10, window_bounds = array<i64: 1, 256>}, {pipeline_mode = #tpu.pipeline_mode<synchronous>, transform_indices = @transform_11, window_bounds = array<i64: 1, 128>}, {pipeline_mode = #tpu.pipeline_mode<synchronous>, transform_indices = @transform_12, window_bounds = array<i64: 1, 128>}, {pipeline_mode = #tpu.pipeline_mode<synchronous>, transform_indices = @transform_13, window_bounds = array<i64: 16, 32>}, {pipeline_mode = #tpu.pipeline_mode<synchronous>, transform_indices = @transform_14, window_bounds = array<i64: 3, 32, 16>}, {transform_indices = @transform_15, window_bounds = array<i64: 2, 16, 128>}]} {
    %0 = tpu.iota {dimensions = array<i32: 0>} : vector<32x1xi32>
    %c16_i32 = arith.constant 16 : i32
    %c0_i32 = arith.constant 0 : i32
    %1 = arith.cmpi eq, %c16_i32, %c0_i32 : i32
    %c1_i32 = arith.constant 1 : i32
    %2 = arith.select %1, %c1_i32, %c16_i32 : i32
    %3 = vector.broadcast %2 : i32 to vector<32x1xi32>
    %4 = arith.remsi %0, %3 : vector<32x1xi32>
    %c0_i32_0 = arith.constant 0 : i32
    %5 = vector.broadcast %c0_i32_0 : i32 to vector<32x1xi32>
    %6 = arith.cmpi ne, %4, %5 : vector<32x1xi32>
    %c0_i32_1 = arith.constant 0 : i32
    %7 = vector.broadcast %c0_i32_1 : i32 to vector<32x1xi32>
    %8 = arith.cmpi slt, %4, %7 : vector<32x1xi32>
    %c0_i32_2 = arith.constant 0 : i32
    %9 = arith.cmpi slt, %2, %c0_i32_2 : i32
    %10 = vector.broadcast %9 : i1 to vector<32x1xi1>
    %11 = vector.broadcast %10 : vector<32x1xi1> to vector<32x1xi1>
    %12 = arith.xori %8, %11 : vector<32x1xi1>
    %13 = arith.andi %12, %6 : vector<32x1xi1>
    %14 = vector.broadcast %2 : i32 to vector<32x1xi32>
    %15 = arith.addi %4, %14 : vector<32x1xi32>
    %16 = arith.select %13, %15, %4 : vector<32x1xi1>, vector<32x1xi32>
    %c0_i32_3 = arith.constant 0 : i32
    %17 = vector.broadcast %c0_i32_3 : i32 to vector<32x1xi32>
    %18 = arith.cmpi sgt, %16, %17 : vector<32x1xi32>
    %c15_i32 = arith.constant 15 : i32
    %19 = vector.broadcast %c15_i32 : i32 to vector<32x1xi32>
    %20 = arith.cmpi slt, %16, %19 : vector<32x1xi32>
    %21 = tpu.iota {dimensions = array<i32: 0>} : vector<16x1xi32>
    %c8_i32 = arith.constant 8 : i32
    %c0_i32_4 = arith.constant 0 : i32
    %22 = arith.cmpi eq, %c8_i32, %c0_i32_4 : i32
    %c1_i32_5 = arith.constant 1 : i32
    %23 = arith.select %22, %c1_i32_5, %c8_i32 : i32
    %24 = vector.broadcast %23 : i32 to vector<16x1xi32>
    %25 = arith.remsi %21, %24 : vector<16x1xi32>
    %c0_i32_6 = arith.constant 0 : i32
    %26 = vector.broadcast %c0_i32_6 : i32 to vector<16x1xi32>
    %27 = arith.cmpi ne, %25, %26 : vector<16x1xi32>
    %c0_i32_7 = arith.constant 0 : i32
    %28 = vector.broadcast %c0_i32_7 : i32 to vector<16x1xi32>
    %29 = arith.cmpi slt, %25, %28 : vector<16x1xi32>
    %c0_i32_8 = arith.constant 0 : i32
    %30 = arith.cmpi slt, %23, %c0_i32_8 : i32
    %31 = vector.broadcast %30 : i1 to vector<16x1xi1>
    %32 = vector.broadcast %31 : vector<16x1xi1> to vector<16x1xi1>
    %33 = arith.xori %29, %32 : vector<16x1xi1>
    %34 = arith.andi %33, %27 : vector<16x1xi1>
    %35 = vector.broadcast %23 : i32 to vector<16x1xi32>
    %36 = arith.addi %25, %35 : vector<16x1xi32>
    %37 = arith.select %34, %36, %25 : vector<16x1xi1>, vector<16x1xi32>
    %c0_i32_9 = arith.constant 0 : i32
    %38 = vector.broadcast %c0_i32_9 : i32 to vector<16x1xi32>
    %39 = arith.cmpi sgt, %37, %38 : vector<16x1xi32>
    %c7_i32 = arith.constant 7 : i32
    %40 = vector.broadcast %c7_i32 : i32 to vector<16x1xi32>
    %41 = arith.cmpi slt, %37, %40 : vector<16x1xi32>
    %c0 = arith.constant 0 : index
    %c0_10 = arith.constant 0 : index
    %c0_11 = arith.constant 0 : index
    %42 = vector.load %arg1[%c0, %c0_10, %c0_11] : memref<2x16x48xf32, #tpu.memory_space<vmem>>, vector<2x16x48xf32>
    %43 = vector.shape_cast %42 : vector<2x16x48xf32> to vector<32x48xf32>
    %c1_i32_12 = arith.constant 1 : i32
    %44 = tpu.dynamic_rotate %43 by %c1_i32_12 dim 0 : vector<32x48xf32>, i32 -> vector<32x48xf32>
    %cst = arith.constant 0.000000e+00 : f32
    %45 = vector.shape_cast %18 : vector<32x1xi1> to vector<32x1xi1>
    %46 = vector.broadcast %45 : vector<32x1xi1> to vector<32x48xi1>
    %47 = vector.broadcast %cst : f32 to vector<32x48xf32>
    %48 = arith.select %46, %44, %47 : vector<32x48xi1>, vector<32x48xf32>
    %c31_i32 = arith.constant 31 : i32
    %49 = tpu.dynamic_rotate %43 by %c31_i32 dim 0 : vector<32x48xf32>, i32 -> vector<32x48xf32>
    %cst_13 = arith.constant 0.000000e+00 : f32
    %50 = vector.shape_cast %20 : vector<32x1xi1> to vector<32x1xi1>
    %51 = vector.broadcast %50 : vector<32x1xi1> to vector<32x48xi1>
    %52 = vector.broadcast %cst_13 : f32 to vector<32x48xf32>
    %53 = arith.select %51, %49, %52 : vector<32x48xi1>, vector<32x48xf32>
    %54 = tpu.concatenate %48, %43, %53 in 1 : vector<32x48xf32>, vector<32x48xf32>, vector<32x48xf32> -> vector<32x144xf32>
    %55 = arith.truncf %54 : vector<32x144xf32> to vector<32x144xbf16>
    %c0_14 = arith.constant 0 : index
    %c0_15 = arith.constant 0 : index
    %56 = vector.load %arg2[%c0_14, %c0_15] : memref<144x128xbf16, #tpu.memory_space<vmem>>, vector<144x128xbf16>
    %cst_16 = arith.constant dense<0.000000e+00> : vector<32x128xf32>
    %57 = tpu.matmul %55, %56, %cst_16 {dimension_numbers = #tpu.dot_dimension_numbers<[1], [0], [0], [1], [0, 0, 1, 1], [], []>} : vector<32x144xbf16>, vector<144x128xbf16>, vector<32x128xf32> -> vector<32x128xf32>
    %c0_17 = arith.constant 0 : index
    %c0_18 = arith.constant 0 : index
    %58 = vector.load %arg8[%c0_17, %c0_18] : memref<1x128xf32, #tpu.memory_space<vmem>>, vector<1x128xf32>
    %59 = vector.broadcast %58 : vector<1x128xf32> to vector<32x128xf32>
    %60 = arith.addf %57, %59 : vector<32x128xf32>
    %cst_19 = arith.constant 0.000000e+00 : f32
    %61 = vector.broadcast %cst_19 : f32 to vector<32x128xf32>
    %62 = arith.maximumf %60, %61 : vector<32x128xf32>
    %c1_i32_20 = arith.constant 1 : i32
    %63 = tpu.dynamic_rotate %62 by %c1_i32_20 dim 0 : vector<32x128xf32>, i32 -> vector<32x128xf32>
    %cst_21 = arith.constant 0.000000e+00 : f32
    %64 = vector.shape_cast %18 : vector<32x1xi1> to vector<32x1xi1>
    %65 = vector.broadcast %64 : vector<32x1xi1> to vector<32x128xi1>
    %66 = vector.broadcast %cst_21 : f32 to vector<32x128xf32>
    %67 = arith.select %65, %63, %66 : vector<32x128xi1>, vector<32x128xf32>
    %c31_i32_22 = arith.constant 31 : i32
    %68 = tpu.dynamic_rotate %62 by %c31_i32_22 dim 0 : vector<32x128xf32>, i32 -> vector<32x128xf32>
    %cst_23 = arith.constant 0.000000e+00 : f32
    %69 = vector.shape_cast %20 : vector<32x1xi1> to vector<32x1xi1>
    %70 = vector.broadcast %69 : vector<32x1xi1> to vector<32x128xi1>
    %71 = vector.broadcast %cst_23 : f32 to vector<32x128xf32>
    %72 = arith.select %70, %68, %71 : vector<32x128xi1>, vector<32x128xf32>
    %73 = tpu.concatenate %67, %62, %72 in 1 : vector<32x128xf32>, vector<32x128xf32>, vector<32x128xf32> -> vector<32x384xf32>
    %74 = arith.truncf %73 : vector<32x384xf32> to vector<32x384xbf16>
    %c0_24 = arith.constant 0 : index
    %c0_25 = arith.constant 0 : index
    %75 = vector.load %arg3[%c0_24, %c0_25] : memref<384x256xbf16, #tpu.memory_space<vmem>>, vector<384x256xbf16>
    %cst_26 = arith.constant dense<0.000000e+00> : vector<32x256xf32>
    %76 = tpu.matmul %74, %75, %cst_26 {dimension_numbers = #tpu.dot_dimension_numbers<[1], [0], [0], [1], [0, 0, 1, 1], [], []>} : vector<32x384xbf16>, vector<384x256xbf16>, vector<32x256xf32> -> vector<32x256xf32>
    %c0_27 = arith.constant 0 : index
    %c0_28 = arith.constant 0 : index
    %77 = vector.load %arg9[%c0_27, %c0_28] : memref<1x256xf32, #tpu.memory_space<vmem>>, vector<1x256xf32>
    %78 = vector.broadcast %77 : vector<1x256xf32> to vector<32x256xf32>
    %79 = arith.addf %76, %78 : vector<32x256xf32>
    %cst_29 = arith.constant 0.000000e+00 : f32
    %80 = vector.broadcast %cst_29 : f32 to vector<32x256xf32>
    %81 = arith.maximumf %79, %80 : vector<32x256xf32>
    %c31_i32_30 = arith.constant 31 : i32
    %82 = tpu.dynamic_rotate %81 by %c31_i32_30 dim 0 : vector<32x256xf32>, i32 -> vector<32x256xf32>
    %cst_31 = arith.constant 0.000000e+00 : f32
    %83 = vector.shape_cast %20 : vector<32x1xi1> to vector<32x1xi1>
    %84 = vector.broadcast %83 : vector<32x1xi1> to vector<32x256xi1>
    %85 = vector.broadcast %cst_31 : f32 to vector<32x256xf32>
    %86 = arith.select %84, %82, %85 : vector<32x256xi1>, vector<32x256xf32>
    %87 = arith.maximumf %81, %86 : vector<32x256xf32>
    %88 = tpu.iota {dimensions = array<i32: 1>} : vector<1x256xi32>
    %c240_i32 = arith.constant 240 : i32
    %89 = vector.broadcast %c240_i32 : i32 to vector<1x256xi32>
    %90 = arith.cmpi slt, %88, %89 : vector<1x256xi32>
    %c240_i32_32 = arith.constant 240 : i32
    %91 = tpu.dynamic_rotate %87 by %c240_i32_32 dim 1 : vector<32x256xf32>, i32 -> vector<32x256xf32>
    %cst_33 = arith.constant 0.000000e+00 : f32
    %92 = vector.shape_cast %90 : vector<1x256xi1> to vector<1x256xi1>
    %93 = vector.broadcast %92 : vector<1x256xi1> to vector<32x256xi1>
    %94 = vector.broadcast %cst_33 : f32 to vector<32x256xf32>
    %95 = arith.select %93, %91, %94 : vector<32x256xi1>, vector<32x256xf32>
    %96 = arith.maximumf %87, %95 : vector<32x256xf32>
    %c0_34 = arith.constant 0 : index
    %c0_35 = arith.constant 0 : index
    %97 = vector.load %arg14[%c0_34, %c0_35] : memref<16x32xf32, #tpu.memory_space<vmem>>, vector<16x32xf32>
    %cst_36 = arith.constant dense<0.000000e+00> : vector<16x256xf32>
    %98 = tpu.matmul %97, %96, %cst_36 {dimension_numbers = #tpu.dot_dimension_numbers<[1], [0], [0], [1], [0, 0, 1, 1], [], []>} : vector<16x32xf32>, vector<32x256xf32>, vector<16x256xf32> -> vector<16x256xf32>
    %c1_i32_37 = arith.constant 1 : i32
    %99 = tpu.dynamic_rotate %98 by %c1_i32_37 dim 0 : vector<16x256xf32>, i32 -> vector<16x256xf32>
    %cst_38 = arith.constant 0.000000e+00 : f32
    %100 = vector.shape_cast %39 : vector<16x1xi1> to vector<16x1xi1>
    %101 = vector.broadcast %100 : vector<16x1xi1> to vector<16x256xi1>
    %102 = vector.broadcast %cst_38 : f32 to vector<16x256xf32>
    %103 = arith.select %101, %99, %102 : vector<16x256xi1>, vector<16x256xf32>
    %c15_i32_39 = arith.constant 15 : i32
    %104 = tpu.dynamic_rotate %98 by %c15_i32_39 dim 0 : vector<16x256xf32>, i32 -> vector<16x256xf32>
    %cst_40 = arith.constant 0.000000e+00 : f32
    %105 = vector.shape_cast %41 : vector<16x1xi1> to vector<16x1xi1>
    %106 = vector.broadcast %105 : vector<16x1xi1> to vector<16x256xi1>
    %107 = vector.broadcast %cst_40 : f32 to vector<16x256xf32>
    %108 = arith.select %106, %104, %107 : vector<16x256xi1>, vector<16x256xf32>
    %109 = tpu.concatenate %103, %98, %108 in 1 : vector<16x256xf32>, vector<16x256xf32>, vector<16x256xf32> -> vector<16x768xf32>
    %110 = arith.truncf %109 : vector<16x768xf32> to vector<16x768xbf16>
    %c0_41 = arith.constant 0 : index
    %c0_42 = arith.constant 0 : index
    %111 = vector.load %arg4[%c0_41, %c0_42] : memref<768x256xbf16, #tpu.memory_space<vmem>>, vector<768x256xbf16>
    %cst_43 = arith.constant dense<0.000000e+00> : vector<16x256xf32>
    %112 = tpu.matmul %110, %111, %cst_43 {dimension_numbers = #tpu.dot_dimension_numbers<[1], [0], [0], [1], [0, 0, 1, 1], [], []>} : vector<16x768xbf16>, vector<768x256xbf16>, vector<16x256xf32> -> vector<16x256xf32>
    %c0_44 = arith.constant 0 : index
    %c0_45 = arith.constant 0 : index
    %113 = vector.load %arg10[%c0_44, %c0_45] : memref<1x256xf32, #tpu.memory_space<vmem>>, vector<1x256xf32>
    %114 = vector.broadcast %113 : vector<1x256xf32> to vector<16x256xf32>
    %115 = arith.addf %112, %114 : vector<16x256xf32>
    %cst_46 = arith.constant 0.000000e+00 : f32
    %116 = vector.broadcast %cst_46 : f32 to vector<16x256xf32>
    %117 = arith.maximumf %115, %116 : vector<16x256xf32>
    %118 = arith.truncf %117 : vector<16x256xf32> to vector<16x256xbf16>
    %c0_47 = arith.constant 0 : index
    %c0_48 = arith.constant 0 : index
    %119 = vector.load %arg5[%c0_47, %c0_48] : memref<256x768xbf16, #tpu.memory_space<vmem>>, vector<256x768xbf16>
    %cst_49 = arith.constant dense<0.000000e+00> : vector<16x768xf32>
    %120 = tpu.matmul %118, %119, %cst_49 {dimension_numbers = #tpu.dot_dimension_numbers<[1], [0], [0], [1], [0, 0, 1, 1], [], []>} : vector<16x256xbf16>, vector<256x768xbf16>, vector<16x768xf32> -> vector<16x768xf32>
    %c0_50 = arith.constant 0 : index
    %c0_51 = arith.constant 0 : index
    %c0_52 = arith.constant 0 : index
    %121 = vector.load %arg15[%c0_50, %c0_51, %c0_52] : memref<3x32x16xf32, #tpu.memory_space<vmem>>, vector<1x32x16xf32>
    %122 = vector.shape_cast %121 : vector<1x32x16xf32> to vector<32x16xf32>
    %123 = vector.extract_strided_slice %120 {offsets = [0, 0], sizes = [16, 256], strides = [1, 1]} : vector<16x768xf32> to vector<16x256xf32>
    %cst_53 = arith.constant dense<0.000000e+00> : vector<32x256xf32>
    %124 = tpu.matmul %122, %123, %cst_53 {dimension_numbers = #tpu.dot_dimension_numbers<[1], [0], [0], [1], [0, 0, 1, 1], [], []>} : vector<32x16xf32>, vector<16x256xf32>, vector<32x256xf32> -> vector<32x256xf32>
    %c1 = arith.constant 1 : index
    %c0_54 = arith.constant 0 : index
    %c0_55 = arith.constant 0 : index
    %125 = vector.load %arg15[%c1, %c0_54, %c0_55] : memref<3x32x16xf32, #tpu.memory_space<vmem>>, vector<1x32x16xf32>
    %126 = vector.shape_cast %125 : vector<1x32x16xf32> to vector<32x16xf32>
    %127 = vector.extract_strided_slice %120 {offsets = [0, 256], sizes = [16, 256], strides = [1, 1]} : vector<16x768xf32> to vector<16x256xf32>
    %cst_56 = arith.constant dense<0.000000e+00> : vector<32x256xf32>
    %128 = tpu.matmul %126, %127, %cst_56 {dimension_numbers = #tpu.dot_dimension_numbers<[1], [0], [0], [1], [0, 0, 1, 1], [], []>} : vector<32x16xf32>, vector<16x256xf32>, vector<32x256xf32> -> vector<32x256xf32>
    %129 = arith.addf %124, %128 : vector<32x256xf32>
    %c2 = arith.constant 2 : index
    %c0_57 = arith.constant 0 : index
    %c0_58 = arith.constant 0 : index
    %130 = vector.load %arg15[%c2, %c0_57, %c0_58] : memref<3x32x16xf32, #tpu.memory_space<vmem>>, vector<1x32x16xf32>
    %131 = vector.shape_cast %130 : vector<1x32x16xf32> to vector<32x16xf32>
    %132 = vector.extract_strided_slice %120 {offsets = [0, 512], sizes = [16, 256], strides = [1, 1]} : vector<16x768xf32> to vector<16x256xf32>
    %cst_59 = arith.constant dense<0.000000e+00> : vector<32x256xf32>
    %133 = tpu.matmul %131, %132, %cst_59 {dimension_numbers = #tpu.dot_dimension_numbers<[1], [0], [0], [1], [0, 0, 1, 1], [], []>} : vector<32x16xf32>, vector<16x256xf32>, vector<32x256xf32> -> vector<32x256xf32>
    %134 = arith.addf %129, %133 : vector<32x256xf32>
    %c0_60 = arith.constant 0 : index
    %c0_61 = arith.constant 0 : index
    %135 = vector.load %arg11[%c0_60, %c0_61] : memref<1x256xf32, #tpu.memory_space<vmem>>, vector<1x256xf32>
    %136 = vector.broadcast %135 : vector<1x256xf32> to vector<32x256xf32>
    %137 = arith.addf %134, %136 : vector<32x256xf32>
    %138 = arith.addf %137, %81 : vector<32x256xf32>
    %c1_i32_62 = arith.constant 1 : i32
    %139 = tpu.dynamic_rotate %138 by %c1_i32_62 dim 0 : vector<32x256xf32>, i32 -> vector<32x256xf32>
    %cst_63 = arith.constant 0.000000e+00 : f32
    %140 = vector.shape_cast %18 : vector<32x1xi1> to vector<32x1xi1>
    %141 = vector.broadcast %140 : vector<32x1xi1> to vector<32x256xi1>
    %142 = vector.broadcast %cst_63 : f32 to vector<32x256xf32>
    %143 = arith.select %141, %139, %142 : vector<32x256xi1>, vector<32x256xf32>
    %c31_i32_64 = arith.constant 31 : i32
    %144 = tpu.dynamic_rotate %138 by %c31_i32_64 dim 0 : vector<32x256xf32>, i32 -> vector<32x256xf32>
    %cst_65 = arith.constant 0.000000e+00 : f32
    %145 = vector.shape_cast %20 : vector<32x1xi1> to vector<32x1xi1>
    %146 = vector.broadcast %145 : vector<32x1xi1> to vector<32x256xi1>
    %147 = vector.broadcast %cst_65 : f32 to vector<32x256xf32>
    %148 = arith.select %146, %144, %147 : vector<32x256xi1>, vector<32x256xf32>
    %149 = tpu.concatenate %143, %138, %148 in 1 : vector<32x256xf32>, vector<32x256xf32>, vector<32x256xf32> -> vector<32x768xf32>
    %150 = arith.truncf %149 : vector<32x768xf32> to vector<32x768xbf16>
    %c0_66 = arith.constant 0 : index
    %c0_67 = arith.constant 0 : index
    %151 = vector.load %arg6[%c0_66, %c0_67] : memref<768x128xbf16, #tpu.memory_space<vmem>>, vector<768x128xbf16>
    %cst_68 = arith.constant dense<0.000000e+00> : vector<32x128xf32>
    %152 = tpu.matmul %150, %151, %cst_68 {dimension_numbers = #tpu.dot_dimension_numbers<[1], [0], [0], [1], [0, 0, 1, 1], [], []>} : vector<32x768xbf16>, vector<768x128xbf16>, vector<32x128xf32> -> vector<32x128xf32>
    %c0_69 = arith.constant 0 : index
    %c0_70 = arith.constant 0 : index
    %153 = vector.load %arg12[%c0_69, %c0_70] : memref<1x128xf32, #tpu.memory_space<vmem>>, vector<1x128xf32>
    %154 = vector.broadcast %153 : vector<1x128xf32> to vector<32x128xf32>
    %155 = arith.addf %152, %154 : vector<32x128xf32>
    %cst_71 = arith.constant 0.000000e+00 : f32
    %156 = vector.broadcast %cst_71 : f32 to vector<32x128xf32>
    %157 = arith.maximumf %155, %156 : vector<32x128xf32>
    %c1_i32_72 = arith.constant 1 : i32
    %158 = tpu.dynamic_rotate %157 by %c1_i32_72 dim 0 : vector<32x128xf32>, i32 -> vector<32x128xf32>
    %cst_73 = arith.constant 0.000000e+00 : f32
    %159 = vector.shape_cast %18 : vector<32x1xi1> to vector<32x1xi1>
    %160 = vector.broadcast %159 : vector<32x1xi1> to vector<32x128xi1>
    %161 = vector.broadcast %cst_73 : f32 to vector<32x128xf32>
    %162 = arith.select %160, %158, %161 : vector<32x128xi1>, vector<32x128xf32>
    %c31_i32_74 = arith.constant 31 : i32
    %163 = tpu.dynamic_rotate %157 by %c31_i32_74 dim 0 : vector<32x128xf32>, i32 -> vector<32x128xf32>
    %cst_75 = arith.constant 0.000000e+00 : f32
    %164 = vector.shape_cast %20 : vector<32x1xi1> to vector<32x1xi1>
    %165 = vector.broadcast %164 : vector<32x1xi1> to vector<32x128xi1>
    %166 = vector.broadcast %cst_75 : f32 to vector<32x128xf32>
    %167 = arith.select %165, %163, %166 : vector<32x128xi1>, vector<32x128xf32>
    %168 = tpu.concatenate %162, %157, %167 in 1 : vector<32x128xf32>, vector<32x128xf32>, vector<32x128xf32> -> vector<32x384xf32>
    %169 = arith.truncf %168 : vector<32x384xf32> to vector<32x384xbf16>
    %c0_76 = arith.constant 0 : index
    %c0_77 = arith.constant 0 : index
    %170 = vector.load %arg7[%c0_76, %c0_77] : memref<384x128xbf16, #tpu.memory_space<vmem>>, vector<384x128xbf16>
    %cst_78 = arith.constant dense<0.000000e+00> : vector<32x128xf32>
    %171 = tpu.matmul %169, %170, %cst_78 {dimension_numbers = #tpu.dot_dimension_numbers<[1], [0], [0], [1], [0, 0, 1, 1], [], []>} : vector<32x384xbf16>, vector<384x128xbf16>, vector<32x128xf32> -> vector<32x128xf32>
    %c0_79 = arith.constant 0 : index
    %c0_80 = arith.constant 0 : index
    %172 = vector.load %arg13[%c0_79, %c0_80] : memref<1x128xf32, #tpu.memory_space<vmem>>, vector<1x128xf32>
    %173 = vector.broadcast %172 : vector<1x128xf32> to vector<32x128xf32>
    %174 = arith.addf %171, %173 : vector<32x128xf32>
    %175 = arith.negf %174 : vector<32x128xf32>
    %176 = math.exp %175 : vector<32x128xf32>
    %cst_81 = arith.constant 1.000000e+00 : f32
    %177 = vector.broadcast %cst_81 : f32 to vector<32x128xf32>
    %178 = arith.addf %177, %176 : vector<32x128xf32>
    %179 = arith.divf %177, %178 : vector<32x128xf32>
    %180 = vector.shape_cast %179 : vector<32x128xf32> to vector<2x16x128xf32>
    %c0_82 = arith.constant 0 : index
    %c0_83 = arith.constant 0 : index
    %c0_84 = arith.constant 0 : index
    %181 = vector.load %arg16[%c0_82, %c0_83, %c0_84] : memref<2x16x128xf32, #tpu.memory_space<vmem>>, vector<2x16x128xf32>
    tpu.vector_store %arg16[%c0_82, %c0_83, %c0_84], %180 {strides = array<i32>} : memref<2x16x128xf32, #tpu.memory_space<vmem>>, vector<2x16x128xf32>,
    return
  }
  func.func @transform_0(%arg0: i32) -> (i32, i32, i32) {
    %c0_i32 = arith.constant 0 : i32
    %c0_i32_0 = arith.constant 0 : i32
    %c0_i32_1 = arith.constant 0 : i32
    return %arg0, %c0_i32, %c0_i32_0 : i32, i32, i32
  }
  func.func @transform_1(%arg0: i32) -> (i32, i32) {
    %c0_i32 = arith.constant 0 : i32
    %c0_i32_0 = arith.constant 0 : i32
    %c0_i32_1 = arith.constant 0 : i32
    return %c0_i32, %c0_i32_0 : i32, i32
  }
  func.func @transform_2(%arg0: i32) -> (i32, i32) {
    %c0_i32 = arith.constant 0 : i32
    %c0_i32_0 = arith.constant 0 : i32
    %c0_i32_1 = arith.constant 0 : i32
    return %c0_i32, %c0_i32_0 : i32, i32
  }
  func.func @transform_3(%arg0: i32) -> (i32, i32) {
    %c0_i32 = arith.constant 0 : i32
    %c0_i32_0 = arith.constant 0 : i32
    %c0_i32_1 = arith.constant 0 : i32
    return %c0_i32, %c0_i32_0 : i32, i32
  }
  func.func @transform_4(%arg0: i32) -> (i32, i32) {
    %c0_i32 = arith.constant 0 : i32
    %c0_i32_0 = arith.constant 0 : i32
    %c0_i32_1 = arith.constant 0 : i32
    return %c0_i32, %c0_i32_0 : i32, i32
  }
  func.func @transform_5(%arg0: i32) -> (i32, i32) {
    %c0_i32 = arith.constant 0 : i32
    %c0_i32_0 = arith.constant 0 : i32
    %c0_i32_1 = arith.constant 0 : i32
    return %c0_i32, %c0_i32_0 : i32, i32
  }
  func.func @transform_6(%arg0: i32) -> (i32, i32) {
    %c0_i32 = arith.constant 0 : i32
    %c0_i32_0 = arith.constant 0 : i32
    %c0_i32_1 = arith.constant 0 : i32
    return %c0_i32, %c0_i32_0 : i32, i32
  }
  func.func @transform_7(%arg0: i32) -> (i32, i32) {
    %c0_i32 = arith.constant 0 : i32
    %c0_i32_0 = arith.constant 0 : i32
    %c0_i32_1 = arith.constant 0 : i32
    return %c0_i32, %c0_i32_0 : i32, i32
  }
  func.func @transform_8(%arg0: i32) -> (i32, i32) {
    %c0_i32 = arith.constant 0 : i32
    %c0_i32_0 = arith.constant 0 : i32
    %c0_i32_1 = arith.constant 0 : i32
    return %c0_i32, %c0_i32_0 : i32, i32
  }
  func.func @transform_9(%arg0: i32) -> (i32, i32) {
    %c0_i32 = arith.constant 0 : i32
    %c0_i32_0 = arith.constant 0 : i32
    %c0_i32_1 = arith.constant 0 : i32
    return %c0_i32, %c0_i32_0 : i32, i32
  }
  func.func @transform_10(%arg0: i32) -> (i32, i32) {
    %c0_i32 = arith.constant 0 : i32
    %c0_i32_0 = arith.constant 0 : i32
    %c0_i32_1 = arith.constant 0 : i32
    return %c0_i32, %c0_i32_0 : i32, i32
  }
  func.func @transform_11(%arg0: i32) -> (i32, i32) {
    %c0_i32 = arith.constant 0 : i32
    %c0_i32_0 = arith.constant 0 : i32
    %c0_i32_1 = arith.constant 0 : i32
    return %c0_i32, %c0_i32_0 : i32, i32
  }
  func.func @transform_12(%arg0: i32) -> (i32, i32) {
    %c0_i32 = arith.constant 0 : i32
    %c0_i32_0 = arith.constant 0 : i32
    %c0_i32_1 = arith.constant 0 : i32
    return %c0_i32, %c0_i32_0 : i32, i32
  }
  func.func @transform_13(%arg0: i32) -> (i32, i32) {
    %c0_i32 = arith.constant 0 : i32
    %c0_i32_0 = arith.constant 0 : i32
    %c0_i32_1 = arith.constant 0 : i32
    return %c0_i32, %c0_i32_0 : i32, i32
  }
  func.func @transform_14(%arg0: i32) -> (i32, i32, i32) {
    %c0_i32 = arith.constant 0 : i32
    %c0_i32_0 = arith.constant 0 : i32
    %c0_i32_1 = arith.constant 0 : i32
    %c0_i32_2 = arith.constant 0 : i32
    return %c0_i32, %c0_i32_0, %c0_i32_1 : i32, i32, i32
  }
  func.func @transform_15(%arg0: i32) -> (i32, i32, i32) {
    %c0_i32 = arith.constant 0 : i32
    %c0_i32_0 = arith.constant 0 : i32
    %c0_i32_1 = arith.constant 0 : i32
    return %arg0, %c0_i32, %c0_i32_0 : i32, i32, i32
  }
}

</mosaic_0001>

<bundles_post_ra>
// kernel: tile.33
= control target key start
LH: loop header
LB: loop body
LE: loop exit
PB: predicated region body
PF: predicated region fallthrough
CT: control target
= control target key end

     0   :  { %s28_s0 = inlined_call_operand.vmem [shape: f32[8], index: 0, kind: input, shape index: {}]   ;;  %s29_s1 = inlined_call_operand.vmem [shape: f32[16,8], index: 1, kind: output, shape index: {}]  }
   0x1   :  { %v4_v0 = vld [vmem:[%s28_s0] ss:$0 sm:$0xff] }
   0x2   :  { %5 = vst [vmem:[%s29_s1] sm:$0xff] %v4_v0  ;;  %8 = vst [vmem:[%s29_s1 + $0x8] sm:$0xff] %v4_v0 }

// kernel: tile.34
= control target key start
LH: loop header
LB: loop body
LE: loop exit
PB: predicated region body
PF: predicated region fallthrough
CT: control target
= control target key end

     0   :  { %s133_s10 = smov 120   ;;  %s134_s11 = smov 104   ;;  %vm3_vm0 = vcmask 64512   ;;  %vm9_vm1 = vcmask 1048512   ;;  %vm15_vm2 = vcmask 982912   ;;  %vm21_vm3 = vcmask 917312   ;;  %s209_s0 = inlined_call_operand.vmem [shape: f32[16,8], index: 0, kind: input, shape index: {}]   ;;  %s210_s1 = inlined_call_operand.vmem [shape: f32[1,128], index: 1, kind: output, shape index: {}]  }
   0x1   :  { %v103_v0 = vld [vmem:[%s209_s0 + $0xf] sm:$0x1]   ;;  %v105_v1 = vld [vmem:[%s209_s0 + $0xd] sm:$0x1]   ;;  %v104_v2 = vld [vmem:[%s209_s0 + $0xe] sm:$0x1]  }
   0x2   :  { %7 = vrot.lane.b32.xlu0 %v103_v0, %s133_s10  ;;  %19 = vrot.lane.b32.xlu1 %v105_v1, %s134_s11  ;;  %v106_v3 = vld [vmem:[%s209_s0 + $0xc] sm:$0x1]   ;;  %s135_s16 = smov 112   ;;  %s136_s17 = smov 96   ;;  %v107_v4 = vld [vmem:[%s209_s0 + $0xb] sm:$0x1]  }
   0x3   :  { %v108_v5 = vld [vmem:[%s209_s0 + $0xa] sm:$0x1]   ;;  %v2_v6 = vld [vmem:[%s209_s0] sm:$0x1]   ;;  %s137_s24 = smov 88   ;;  %s138_s25 = smov 80  }
   0x4   :  { %4 = vst.msk [vmem:[#allocation0] sm:$0x1] %vm3_vm0, %v2_v6   ;;  %v109_v7 = vld [vmem:[%s209_s0 + $0x9] sm:$0x1]   ;;  %v110_v8 = vld [vmem:[%s209_s0 + $0x8] sm:$0x1]  }
   0x5   :  { %s139_s30 = smov 72   ;;  %s140_s2 = smov 64   ;;  %v111_v9 = vld [vmem:[%s209_s0 + $0x7] sm:$0x1]   ;;  %v112_v10 = vld [vmem:[%s209_s0 + $0x6] sm:$0x1]  }
   0x6   :  { %13 = vrot.lane.b32.xlu0 %v104_v2, %s135_s16  ;;  %25 = vrot.lane.b32.xlu1 %v106_v3, %s136_s17  ;;  %s141_s7 = smov 56   ;;  %s142_s8 = smov 48   ;;  %v113_v11 = vld [vmem:[%s209_s0 + $0x5] sm:$0x1]   ;;  %v114_v12 = vld [vmem:[%s209_s0 + $0x4] sm:$0x1]  }
   0x7   :  { %s143_s13 = smov 40   ;;  %s144_s14 = smov 32   ;;  %v115_v13 = vld [vmem:[%s209_s0 + $0x3] sm:$0x1]   ;;  %v116_v14 = vld [vmem:[%s209_s0 + $0x2] sm:$0x1]  }
   0x8   :  { %s145_s19 = smov 24   ;;  %s146_s20 = smov 16   ;;  %v117_v15 = vld [vmem:[%s209_s0 + $0x1] sm:$0x1]   ;;  %vm27_vm4 = vcmask 851712   ;;  %vm33_vm5 = vcmask 786112  }
   0x9   :  { %s147_s0 = smov 8   ;;  %vm39_vm6 = vcmask 720512   ;;  %vm45_vm7 = vcmask 654912   ;;  %vm51_vm8 = vcmask 589312   ;;  %vm57_vm9 = vcmask 523712  }
   0xa   :  { %31 = vrot.lane.b32.xlu0 %v107_v4, %s137_s24  ;;  %37 = vrot.lane.b32.xlu1 %v108_v5, %s138_s25  ;;  %vm63_vm10 = vcmask 458112   ;;  %vm69_vm11 = vcmask 392512   ;;  %vm75_vm12 = vcmask 326912   ;;  %vm81_vm13 = vcmask 261312  }
   0xb   :  { %vm87_vm14 = vcmask 195712   ;;  %vm93_vm15 = vcmask 130112  }
   0xe   :  { %43 = vrot.lane.b32.xlu0 %v109_v7, %s139_s30  ;;  %49 = vrot.lane.b32.xlu1 %v110_v8, %s140_s2 }
  0x12   :  { %55 = vrot.lane.b32.xlu0 %v111_v9, %s141_s7  ;;  %61 = vrot.lane.b32.xlu1 %v112_v10, %s142_s8 }
  0x16   :  { %67 = vrot.lane.b32.xlu0 %v113_v11, %s143_s13  ;;  %73 = vrot.lane.b32.xlu1 %v114_v12, %s144_s14 }
  0x1a   :  { %79 = vrot.lane.b32.xlu0 %v115_v13, %s145_s19  ;;  %85 = vrot.lane.b32.xlu1 %v116_v14, %s146_s20 }
  0x1e   :  { %91 = vrot.lane.b32.xlu0 %v117_v15, %s147_s0 }
  0x74   :  { %v8_v16 = vpop.permute.xlu0 %7   ;;  %v20_v17 = vpop.permute.xlu1 %19  }
  0x75   :  { %10 = vst.msk [vmem:[#allocation0] sm:$0x1] %vm9_vm1, %v8_v16  }
  0x78   :  { %v14_v18 = vpop.permute.xlu0 %13   ;;  %v26_v19 = vpop.permute.xlu1 %25  }
  0x79   :  { %16 = vst.msk [vmem:[#allocation0] sm:$0x1] %vm15_vm2, %v14_v18  }
  0x7a   :  { %22 = vst.msk [vmem:[#allocation0] sm:$0x1] %vm21_vm3, %v20_v17  }
  0x7b   :  { %28 = vst.msk [vmem:[#allocation0] sm:$0x1] %vm27_vm4, %v26_v19  }
  0x7c   :  { %v32_v20 = vpop.permute.xlu0 %31   ;;  %v38_v21 = vpop.permute.xlu1 %37  }
  0x7d   :  { %34 = vst.msk [vmem:[#allocation0] sm:$0x1] %vm33_vm5, %v32_v20  }
  0x7e   :  { %40 = vst.msk [vmem:[#allocation0] sm:$0x1] %vm39_vm6, %v38_v21  }
  0x80   :  { %v44_v22 = vpop.permute.xlu0 %43   ;;  %v50_v23 = vpop.permute.xlu1 %49  }
  0x81   :  { %46 = vst.msk [vmem:[#allocation0] sm:$0x1] %vm45_vm7, %v44_v22  }
  0x82   :  { %52 = vst.msk [vmem:[#allocation0] sm:$0x1] %vm51_vm8, %v50_v23  }
  0x84   :  { %v56_v24 = vpop.permute.xlu0 %55   ;;  %v62_v25 = vpop.permute.xlu1 %61  }
  0x85   :  { %58 = vst.msk [vmem:[#allocation0] sm:$0x1] %vm57_vm9, %v56_v24  }
  0x86   :  { %64 = vst.msk [vmem:[#allocation0] sm:$0x1] %vm63_vm10, %v62_v25  }
  0x88   :  { %v68_v26 = vpop.permute.xlu0 %67   ;;  %v74_v27 = vpop.permute.xlu1 %73  }
  0x89   :  { %70 = vst.msk [vmem:[#allocation0] sm:$0x1] %vm69_vm11, %v68_v26  }
  0x8a   :  { %76 = vst.msk [vmem:[#allocation0] sm:$0x1] %vm75_vm12, %v74_v27  }
  0x8c   :  { %v80_v28 = vpop.permute.xlu0 %79   ;;  %v86_v29 = vpop.permute.xlu1 %85  }
  0x8d   :  { %82 = vst.msk [vmem:[#allocation0] sm:$0x1] %vm81_vm13, %v80_v28  }
  0x8e   :  { %88 = vst.msk [vmem:[#allocation0] sm:$0x1] %vm87_vm14, %v86_v29  }
  0x90   :  { %v92_v30 = vpop.permute.xlu0 %91  }
  0x91   :  { %94 = vst.msk [vmem:[#allocation0] sm:$0x1] %vm93_vm15, %v92_v30  }
  0x98   :  { %v99_v31 = vld [vmem:[#allocation0] sm:$0x1] }
  0x99   :  { %102 = vst [vmem:[%s210_s1] sm:$0x1] %v99_v31 }

// kernel: tile.38
= control target key start
LH: loop header
LB: loop body
LE: loop exit
PB: predicated region body
PF: predicated region fallthrough
CT: control target
= control target key end

     0   :  { %s28_s0 = inlined_call_operand.vmem [shape: f32[16], index: 0, kind: input, shape index: {}]   ;;  %s29_s1 = inlined_call_operand.vmem [shape: f32[16,16], index: 1, kind: output, shape index: {}]  }
   0x1   :  { %v4_v0 = vld [vmem:[%s28_s0] ss:$0 sm:$0xff] }
   0x2   :  { %5 = vst [vmem:[%s29_s1] sm:$0xff] %v4_v0  ;;  %8 = vst [vmem:[%s29_s1 + $0x8] sm:$0xff] %v4_v0 }

// kernel: tile.39
= control target key start
LH: loop header
LB: loop body
LE: loop exit
PB: predicated region body
PF: predicated region fallthrough
CT: control target
= control target key end

     0   :  { %s7_s6 = smov 3  ;;  %s21_s9 = smov 3  ;;  %vm4_vm0 = vcmask 130048   ;;  %vm11_vm1 = vcmask 1048448   ;;  %vm18_vm2 = vcmask 917248   ;;  %vm25_vm3 = vcmask 786048   ;;  %s131_s0 = inlined_call_operand.vmem [shape: f32[16,16], index: 0, kind: input, shape index: {}]   ;;  %s132_s1 = inlined_call_operand.vmem [shape: f32[1,256], index: 1, kind: output, shape index: {}]  }
   0x1   :  { %v69_v0 = vld [vmem:[%s131_s0 + $0x7] ss:$8 sm:%s7_s6]   ;;  %s84_s10 = smov 112   ;;  %v71_v1 = vld [vmem:[%s131_s0 + $0x5] ss:$8 sm:%s21_s9]   ;;  %s14_s13 = smov 3 }
   0x2   :  { %9 = vrot.lane.b32.xlu0 %v69_v0, %s84_s10  ;;  %s85_s14 = smov 80   ;;  %v70_v2 = vld [vmem:[%s131_s0 + $0x6] ss:$8 sm:%s14_s13]   ;;  %s28_s17 = smov 3  ;;  %vm32_vm4 = vcmask 654848   ;;  %vm39_vm5 = vcmask 523648  }
   0x3   :  { %23 = vrot.lane.b32.xlu1 %v71_v1, %s85_s14  ;;  %v72_v3 = vld [vmem:[%s131_s0 + $0x4] ss:$8 sm:%s28_s17]   ;;  %s35_s20 = smov 3  ;;  %s42_s21 = smov 3  ;;  %vm46_vm6 = vcmask 392448   ;;  %vm53_vm7 = vcmask 261248  }
   0x4   :  { %s86_s22 = smov 96   ;;  %s87_s23 = smov 64   ;;  %v73_v4 = vld [vmem:[%s131_s0 + $0x3] ss:$8 sm:%s35_s20]   ;;  %v74_v5 = vld [vmem:[%s131_s0 + $0x2] ss:$8 sm:%s42_s21]  }
   0x5   :  { %s2_s26 = smov 3  ;;  %s49_s29 = smov 3 }
   0x6   :  { %16 = vrot.lane.b32.xlu0 %v70_v2, %s86_s22  ;;  %v3_v6 = vld [vmem:[%s131_s0] ss:$8 sm:%s2_s26]   ;;  %s88_s3 = smov 48   ;;  %s89_s4 = smov 32  }
   0x7   :  { %30 = vrot.lane.b32.xlu1 %v72_v3, %s87_s23  ;;  %5 = vst.msk [vmem:[#allocation0] ss:$8 sm:$0x3] %vm4_vm0, %v3_v6   ;;  %v75_v7 = vld [vmem:[%s131_s0 + $0x1] ss:$8 sm:%s49_s29]   ;;  %s90_s0 = smov 16  }
   0xa   :  { %37 = vrot.lane.b32.xlu0 %v73_v4, %s88_s3 }
   0xb   :  { %44 = vrot.lane.b32.xlu1 %v74_v5, %s89_s4 }
   0xe   :  { %51 = vrot.lane.b32.xlu0 %v75_v7, %s90_s0 }
  0x74   :  { %v10_v8 = vpop.permute.xlu0 %9  }
  0x75   :  { %12 = vst.msk [vmem:[#allocation0] ss:$8 sm:$0x3] %vm11_vm1, %v10_v8   ;;  %v24_v9 = vpop.permute.xlu1 %23  }
  0x78   :  { %v17_v10 = vpop.permute.xlu0 %16  }
  0x79   :  { %19 = vst.msk [vmem:[#allocation0] ss:$8 sm:$0x3] %vm18_vm2, %v17_v10   ;;  %v31_v11 = vpop.permute.xlu1 %30  }
  0x7a   :  { %26 = vst.msk [vmem:[#allocation0] ss:$8 sm:$0x3] %vm25_vm3, %v24_v9  }
  0x7b   :  { %33 = vst.msk [vmem:[#allocation0] ss:$8 sm:$0x3] %vm32_vm4, %v31_v11  }
  0x7c   :  { %v38_v12 = vpop.permute.xlu0 %37  }
  0x7d   :  { %40 = vst.msk [vmem:[#allocation0] ss:$8 sm:$0x3] %vm39_vm5, %v38_v12   ;;  %v45_v13 = vpop.permute.xlu1 %44  }
  0x7e   :  { %47 = vst.msk [vmem:[#allocation0] ss:$8 sm:$0x3] %vm46_vm6, %v45_v13  }
  0x80   :  { %v52_v14 = vpop.permute.xlu0 %51  }
  0x81   :  { %54 = vst.msk [vmem:[#allocation0] ss:$8 sm:$0x3] %vm53_vm7, %v52_v14  }
  0x88   :  { %v59_v15 = vld [vmem:[#allocation0] sm:$0x1]  ;;  %v64_v16 = vld [vmem:[#allocation0 + $0x8] sm:$0x1] }
  0x89   :  { %62 = vst [vmem:[%s132_s1] sm:$0x1] %v59_v15  ;;  %76 = vst [vmem:[%s132_s1 + $0x1] sm:$0x1] %v64_v16 }

// kernel: tile.43
= control target key start
LH: loop header
LB: loop body
LE: loop exit
PB: predicated region body
PF: predicated region fallthrough
CT: control target
= control target key end

     0   :  { %s22_s0 = inlined_call_operand.vmem [shape: f32[32], index: 0, kind: input, shape index: {}]   ;;  %s23_s1 = inlined_call_operand.vmem [shape: f32[8,32], index: 1, kind: output, shape index: {}]  }
   0x1   :  { %v4_v0 = vld [vmem:[%s22_s0] ss:$0 sm:$0xff] }
   0x2   :  { %5 = vst [vmem:[%s23_s1] sm:$0xff] %v4_v0 }

// kernel: tile.44
= control target key start
LH: loop header
LB: loop body
LE: loop exit
PB: predicated region body
PF: predicated region fallthrough
CT: control target
= control target key end

     0   :  { %s7_s6 = smov 3  ;;  %s14_s9 = smov 3  ;;  %vm4_vm0 = vcmask 261120   ;;  %vm11_vm1 = vcmask 1048320   ;;  %vm18_vm2 = vcmask 785920   ;;  %vm25_vm3 = vcmask 523520   ;;  %s79_s0 = inlined_call_operand.vmem [shape: f32[8,32], index: 0, kind: input, shape index: {}]   ;;  %s80_s1 = inlined_call_operand.vmem [shape: f32[1,256], index: 1, kind: output, shape index: {}]  }
   0x1   :  { %v41_v0 = vld [vmem:[%s79_s0 + $0x3] ss:$4 sm:%s7_s6]   ;;  %s48_s10 = smov 96   ;;  %s21_s11 = smov 3  ;;  %v42_v1 = vld [vmem:[%s79_s0 + $0x2] ss:$4 sm:%s14_s9]  }
   0x2   :  { %9 = vrot.lane.b32.xlu0 %v41_v0, %s48_s10  ;;  %v43_v2 = vld [vmem:[%s79_s0 + $0x1] ss:$4 sm:%s21_s11]   ;;  %s2_s16 = smov 3  ;;  %s49_s17 = smov 32  }
   0x3   :  { %23 = vrot.lane.b32.xlu1 %v43_v2, %s49_s17  ;;  %v3_v3 = vld [vmem:[%s79_s0] ss:$4 sm:%s2_s16]   ;;  %s50_s0 = smov 64  }
   0x4   :  { %5 = vst.msk [vmem:[#allocation0] ss:$8 sm:$0x3] %vm4_vm0, %v3_v3  }
   0x6   :  { %16 = vrot.lane.b32.xlu0 %v42_v1, %s50_s0 }
  0x74   :  { %v10_v4 = vpop.permute.xlu0 %9  }
  0x75   :  { %12 = vst.msk [vmem:[#allocation0] ss:$8 sm:$0x3] %vm11_vm1, %v10_v4   ;;  %v24_v5 = vpop.permute.xlu1 %23  }
  0x78   :  { %v17_v6 = vpop.permute.xlu0 %16  }
  0x79   :  { %19 = vst.msk [vmem:[#allocation0] ss:$8 sm:$0x3] %vm18_vm2, %v17_v6  }
  0x7a   :  { %26 = vst.msk [vmem:[#allocation0] ss:$8 sm:$0x3] %vm25_vm3, %v24_v5  }
  0x81   :  { %v31_v7 = vld [vmem:[#allocation0] sm:$0x1]  ;;  %v36_v8 = vld [vmem:[#allocation0 + $0x8] sm:$0x1] }
  0x82   :  { %34 = vst [vmem:[%s80_s1] sm:$0x1] %v31_v7  ;;  %44 = vst [vmem:[%s80_s1 + $0x1] sm:$0x1] %v36_v8 }

// kernel: tile.58
= control target key start
LH: loop header
LB: loop body
LE: loop exit
PB: predicated region body
PF: predicated region fallthrough
CT: control target
= control target key end

     0   :  { %s28_s0 = inlined_call_operand.vmem [shape: f32[3], index: 0, kind: input, shape index: {}]   ;;  %s29_s1 = inlined_call_operand.vmem [shape: f32[16,3], index: 1, kind: output, shape index: {}]  }
   0x1   :  { %v4_v0 = vld [vmem:[%s28_s0] ss:$0 sm:$0xff] }
   0x2   :  { %5 = vst [vmem:[%s29_s1] sm:$0xff] %v4_v0  ;;  %8 = vst [vmem:[%s29_s1 + $0x8] sm:$0xff] %v4_v0 }

// kernel: tile.59
= control target key start
LH: loop header
LB: loop body
LE: loop exit
PB: predicated region body
PF: predicated region fallthrough
CT: control target
= control target key end

     0   :  { %s133_s10 = smov 45   ;;  %s134_s11 = smov 39   ;;  %vm3_vm0 = vcmask 23552   ;;  %vm9_vm1 = vcmask 392552   ;;  %vm15_vm2 = vcmask 367952   ;;  %vm21_vm3 = vcmask 343352   ;;  %s209_s0 = inlined_call_operand.vmem [shape: f32[16,3], index: 0, kind: input, shape index: {}]   ;;  %s210_s1 = inlined_call_operand.vmem [shape: f32[1,48], index: 1, kind: output, shape index: {}]  }
   0x1   :  { %v103_v0 = vld [vmem:[%s209_s0 + $0xf] sm:$0x1]   ;;  %v105_v1 = vld [vmem:[%s209_s0 + $0xd] sm:$0x1]   ;;  %v104_v2 = vld [vmem:[%s209_s0 + $0xe] sm:$0x1]  }
   0x2   :  { %7 = vrot.lane.b32.xlu0 %v103_v0, %s133_s10  ;;  %19 = vrot.lane.b32.xlu1 %v105_v1, %s134_s11  ;;  %v106_v3 = vld [vmem:[%s209_s0 + $0xc] sm:$0x1]   ;;  %s135_s16 = smov 42   ;;  %s136_s17 = smov 36   ;;  %v107_v4 = vld [vmem:[%s209_s0 + $0xb] sm:$0x1]  }
   0x3   :  { %v108_v5 = vld [vmem:[%s209_s0 + $0xa] sm:$0x1]   ;;  %v2_v6 = vld [vmem:[%s209_s0] sm:$0x1]   ;;  %s137_s24 = smov 33   ;;  %s138_s25 = smov 30  }
   0x4   :  { %4 = vst.msk [vmem:[#allocation0] sm:$0x1] %vm3_vm0, %v2_v6   ;;  %v109_v7 = vld [vmem:[%s209_s0 + $0x9] sm:$0x1]   ;;  %v110_v8 = vld [vmem:[%s209_s0 + $0x8] sm:$0x1]  }
   0x5   :  { %s139_s30 = smov 27   ;;  %s140_s2 = smov 24   ;;  %v111_v9 = vld [vmem:[%s209_s0 + $0x7] sm:$0x1]   ;;  %v112_v10 = vld [vmem:[%s209_s0 + $0x6] sm:$0x1]  }
   0x6   :  { %13 = vrot.lane.b32.xlu0 %v104_v2, %s135_s16  ;;  %25 = vrot.lane.b32.xlu1 %v106_v3, %s136_s17  ;;  %s141_s7 = smov 21   ;;  %s142_s8 = smov 18   ;;  %v113_v11 = vld [vmem:[%s209_s0 + $0x5] sm:$0x1]   ;;  %v114_v12 = vld [vmem:[%s209_s0 + $0x4] sm:$0x1]  }
   0x7   :  { %s143_s13 = smov 15   ;;  %s144_s14 = smov 12   ;;  %v115_v13 = vld [vmem:[%s209_s0 + $0x3] sm:$0x1]   ;;  %v116_v14 = vld [vmem:[%s209_s0 + $0x2] sm:$0x1]  }
   0x8   :  { %s145_s19 = smov 9   ;;  %s146_s20 = smov 6   ;;  %v117_v15 = vld [vmem:[%s209_s0 + $0x1] sm:$0x1]   ;;  %vm27_vm4 = vcmask 318752   ;;  %vm33_vm5 = vcmask 294152  }
   0x9   :  { %s147_s0 = smov 3   ;;  %vm39_vm6 = vcmask 269552   ;;  %vm45_vm7 = vcmask 244952   ;;  %vm51_vm8 = vcmask 220352   ;;  %vm57_vm9 = vcmask 195752  }
   0xa   :  { %31 = vrot.lane.b32.xlu0 %v107_v4, %s137_s24  ;;  %37 = vrot.lane.b32.xlu1 %v108_v5, %s138_s25  ;;  %vm63_vm10 = vcmask 171152   ;;  %vm69_vm11 = vcmask 146552   ;;  %vm75_vm12 = vcmask 121952   ;;  %vm81_vm13 = vcmask 97352  }
   0xb   :  { %vm87_vm14 = vcmask 72752   ;;  %vm93_vm15 = vcmask 48152  }
   0xe   :  { %43 = vrot.lane.b32.xlu0 %v109_v7, %s139_s30  ;;  %49 = vrot.lane.b32.xlu1 %v110_v8, %s140_s2 }
  0x12   :  { %55 = vrot.lane.b32.xlu0 %v111_v9, %s141_s7  ;;  %61 = vrot.lane.b32.xlu1 %v112_v10, %s142_s8 }
  0x16   :  { %67 = vrot.lane.b32.xlu0 %v113_v11, %s143_s13  ;;  %73 = vrot.lane.b32.xlu1 %v114_v12, %s144_s14 }
  0x1a   :  { %79 = vrot.lane.b32.xlu0 %v115_v13, %s145_s19  ;;  %85 = vrot.lane.b32.xlu1 %v116_v14, %s146_s20 }
  0x1e   :  { %91 = vrot.lane.b32.xlu0 %v117_v15, %s147_s0 }
  0x74   :  { %v8_v16 = vpop.permute.xlu0 %7   ;;  %v20_v17 = vpop.permute.xlu1 %19  }
  0x75   :  { %10 = vst.msk [vmem:[#allocation0] sm:$0x1] %vm9_vm1, %v8_v16  }
  0x78   :  { %v14_v18 = vpop.permute.xlu0 %13   ;;  %v26_v19 = vpop.permute.xlu1 %25  }
  0x79   :  { %16 = vst.msk [vmem:[#allocation0] sm:$0x1] %vm15_vm2, %v14_v18  }
  0x7a   :  { %22 = vst.msk [vmem:[#allocation0] sm:$0x1] %vm21_vm3, %v20_v17  }
  0x7b   :  { %28 = vst.msk [vmem:[#allocation0] sm:$0x1] %vm27_vm4, %v26_v19  }
  0x7c   :  { %v32_v20 = vpop.permute.xlu0 %31   ;;  %v38_v21 = vpop.permute.xlu1 %37  }
  0x7d   :  { %34 = vst.msk [vmem:[#allocation0] sm:$0x1] %vm33_vm5, %v32_v20  }
  0x7e   :  { %40 = vst.msk [vmem:[#allocation0] sm:$0x1] %vm39_vm6, %v38_v21  }
  0x80   :  { %v44_v22 = vpop.permute.xlu0 %43   ;;  %v50_v23 = vpop.permute.xlu1 %49  }
  0x81   :  { %46 = vst.msk [vmem:[#allocation0] sm:$0x1] %vm45_vm7, %v44_v22  }
  0x82   :  { %52 = vst.msk [vmem:[#allocation0] sm:$0x1] %vm51_vm8, %v50_v23  }
  0x84   :  { %v56_v24 = vpop.permute.xlu0 %55   ;;  %v62_v25 = vpop.permute.xlu1 %61  }
  0x85   :  { %58 = vst.msk [vmem:[#allocation0] sm:$0x1] %vm57_vm9, %v56_v24  }
  0x86   :  { %64 = vst.msk [vmem:[#allocation0] sm:$0x1] %vm63_vm10, %v62_v25  }
  0x88   :  { %v68_v26 = vpop.permute.xlu0 %67   ;;  %v74_v27 = vpop.permute.xlu1 %73  }
  0x89   :  { %70 = vst.msk [vmem:[#allocation0] sm:$0x1] %vm69_vm11, %v68_v26  }
  0x8a   :  { %76 = vst.msk [vmem:[#allocation0] sm:$0x1] %vm75_vm12, %v74_v27  }
  0x8c   :  { %v80_v28 = vpop.permute.xlu0 %79   ;;  %v86_v29 = vpop.permute.xlu1 %85  }
  0x8d   :  { %82 = vst.msk [vmem:[#allocation0] sm:$0x1] %vm81_vm13, %v80_v28  }
  0x8e   :  { %88 = vst.msk [vmem:[#allocation0] sm:$0x1] %vm87_vm14, %v86_v29  }
  0x90   :  { %v92_v30 = vpop.permute.xlu0 %91  }
  0x91   :  { %94 = vst.msk [vmem:[#allocation0] sm:$0x1] %vm93_vm15, %v92_v30  }
  0x98   :  { %v99_v31 = vld [vmem:[#allocation0] sm:$0x1] }
  0x99   :  { %102 = vst [vmem:[%s210_s1] sm:$0x1] %v99_v31 }

// kernel: autoencoder_res_forward.1
= control target key start
LH: loop header
LB: loop body
LE: loop exit
PB: predicated region body
PF: predicated region fallthrough
CT: control target
= control target key end

     0   :  { %v51_v0 = vlaneseq  ;;  %v4804_v4 = vmov 0   ;;  %s4805_s26 = smov 48   ;;  %s4806_s17 = smov 96   ;;  %vm218_vm6 = vcmask 392192   ;;  %vm223_vm7 = vcmask 785408   ;;  %s6391_s0 = inlined_call_operand.vmem [shape: f32[2,16,48], index: 0, kind: input, shape index: {}]   ;;  %s6392_s1 = inlined_call_operand.vmem [shape: bf16[144,128], index: 1, kind: input, shape index: {}]   ;;  %s6393_s2 = inlined_call_operand.vmem [shape: bf16[384,256], index: 2, kind: input, shape index: {}]   ;;  %s6394_s7 = inlined_call_operand.vmem [shape: f32[1,128], index: 7, kind: input, shape index: {}]   ;;  %s6395_s8 = inlined_call_operand.vmem [shape: f32[1,256], index: 8, kind: input, shape index: {}]   ;;  %s6396_s3 = inlined_call_operand.vmem [shape: bf16[768,256], index: 3, kind: input, shape index: {}]   ;;  %s6397_s13 = inlined_call_operand.vmem [shape: f32[16,32], index: 13, kind: input, shape index: {}]   ;;  %s6398_s4 = inlined_call_operand.vmem [shape: bf16[256,768], index: 4, kind: input, shape index: {}]   ;;  %s6399_s9 = inlined_call_operand.vmem [shape: f32[1,256], index: 9, kind: input, shape index: {}]   ;;  %s6400_s5 = inlined_call_operand.vmem [shape: bf16[768,128], index: 5, kind: input, shape index: {}]   ;;  %s6401_s14 = inlined_call_operand.vmem [shape: f32[3,32,16], index: 14, kind: input, shape index: {}]   ;;  %s6402_s10 = inlined_call_operand.vmem [shape: f32[1,256], index: 10, kind: input, shape index: {}]   ;;  %s6403_s6 = inlined_call_operand.vmem [shape: bf16[384,128], index: 6, kind: input, shape index: {}]   ;;  %s6404_s11 = inlined_call_operand.vmem [shape: f32[1,128], index: 11, kind: input, shape index: {}]   ;;  %s6405_s12 = inlined_call_operand.vmem [shape: f32[1,128], index: 12, kind: input, shape index: {}]   ;;  %s6406_s15 = inlined_call_operand.vmem [shape: f32[2,16,128], index: 15, kind: output, shape index: {}]  }
   0x1   :  { %v140_v1 = vld [vmem:[%s6391_s0] sm:$0xff]  ;;  %v141_v2 = vld [vmem:[%s6391_s0 + $0x8] sm:$0xff]  ;;  %v142_v3 = vld [vmem:[%s6391_s0 + $0x10] sm:$0xff]  ;;  %318 = vmatprep.subr.bf16.mxu0 %v4804_v4  ;;  %vm311_vm8 = vcmask 130048   ;;  %vm4807_vm9 = vmmov 1  }
   0x2   :  { %v145_v5 = vrot.slane %v141_v2, 7  ;;  %v166_v6 = vrot.slane %v141_v2, 1  ;;  %v4327_v7 = vpack.i.bf16 %v141_v2, %v140_v1  ;;  %v144_v8 = vrot.slane %v140_v1, 7  ;;  %v143_v9 = vld [vmem:[%s6391_s0 + $0x18] sm:$0xff]  ;;  %v4348_v23 = vld [vmem:[%s6392_s1 + $0x30] sm:$0xff]   ;;  %v4349_v34 = vld [vmem:[%s6392_s1 + $0x28] sm:$0xff]  }
   0x3   :  { %v165_v10 = vrot.slane %v140_v1, 1  ;;  %v4904_v11 = vshrl.u32 %v51_v0, 7  ;;  %v167_v12 = vrot.slane %v142_v3, 1  ;;  %v147_v13 = vrot.slane %v143_v9, 7  ;;  %v4347_v16 = vld [vmem:[%s6392_s1 + $0x38] sm:$0xff]   ;;  %v4350_v36 = vld [vmem:[%s6392_s1 + $0x20] sm:$0xff]  }
   0x4   :  { %4328 = vrot.lane.b32.xlu0 %v4327_v7, %s4805_s26  ;;  %v168_v14 = vrot.slane %v143_v9, 1  ;;  %v4337_v15 = vpack.i.bf16 %v143_v9, %v142_v3  ;;  %319 = vmatpush1.bf16.msra.mxu0 %v4347_v16  ;;  %v146_v35 = vrot.slane %v142_v3, 7  ;;  %v4356_v39 = vld [vmem:[%s6393_s2 + $0x74] ss:$8 sps:$4 sm:$0xff]   ;;  %v4358_v40 = vld [vmem:[%s6393_s2 + $0x70] ss:$8 sps:$4 sm:$0xff]  }
   0x5   :  { %v4910_v17 = vadd.s32 8, %v4904_v11  ;;  %vm148_vm0 = vcmp.lt.s32.totalorder %v4904_v11, 1  ;;  %vm169_vm1 = vcmp.lt.s32.totalorder %v4904_v11, 7  ;;  %v55_v18 = vadd.s32 24, %v4904_v11  ;;  %320 = vmatprep.subr.bf16.mxu0 %v4804_v4  ;;  %701 = vmatprep.subr.bf16.mxu1 %v4356_v39  ;;  %v4359_v41 = vld [vmem:[%s6393_s2 + $0x64] ss:$8 sps:$4 sm:$0xff]  }
   0x6   :  { %v171_v19 = vsel %vm169_vm1, %v166_v6, %v167_v12  ;;  %4338 = vrot.lane.b32.xlu1 %v4337_v15, %s4805_s26  ;;  %v173_v20 = vsel %vm169_vm1, %v168_v14, %v165_v10  ;;  %v4925_v24 = vsel %vm148_vm0, %v144_v8, %v145_v5  ;;  %v4929_v25 = vsel %vm148_vm0, %v147_v13, %v144_v8  ;;  %v4361_v42 = vld [vmem:[%s6393_s2 + $0x60] ss:$8 sps:$4 sm:$0xff]   ;;  %v4362_v43 = vld [vmem:[%s6393_s2 + $0x54] ss:$8 sps:$4 sm:$0xff]   ;;  %v4364_v45 = vld [vmem:[%s6393_s2 + $0x50] ss:$8 sps:$4 sm:$0xff]  }
   0x7   :  { %v67_v21 = vand.u32 15, %v4910_v17  ;;  %v81_v22 = vand.u32 15, %v55_v18  ;;  %v172_v26 = vsel %vm169_vm1, %v165_v10, %v166_v6  ;;  %v170_v27 = vsel %vm169_vm1, %v167_v12, %v168_v14  ;;  %702 = vmatpush1.bf16.msra.mxu1 %v4358_v40  ;;  %v4351_v44 = vld [vmem:[%s6392_s1 + $0x18] sm:$0xff]   ;;  %v4365_v46 = vld [vmem:[%s6393_s2 + $0x44] ss:$8 sps:$4 sm:$0xff]   ;;  %v4352_v47 = vld [vmem:[%s6392_s1 + $0x10] sm:$0xff]  }
   0x8   :  { %321 = vmatpush1.bf16.msra.mxu0 %v4348_v23  ;;  %v4957_v37 = vsel %vm148_vm0, %v146_v35, %v147_v13  ;;  %v4961_v38 = vsel %vm148_vm0, %v145_v5, %v146_v35  ;;  %703 = vmatprep.subr.bf16.mxu1 %v4359_v41  ;;  %v4367_v48 = vld [vmem:[%s6393_s2 + $0x40] ss:$8 sps:$4 sm:$0xff]   ;;  %v4368_v49 = vld [vmem:[%s6393_s2 + $0x34] ss:$8 sps:$4 sm:$0xff]   ;;  %v4370_v51 = vld [vmem:[%s6393_s2 + $0x30] ss:$8 sps:$4 sm:$0xff]  }
   0x9   :  { %vm4936_vm2 = vcmp.lt.s32.totalorder %v67_v21, 15  ;;  %vm4940_vm3 = vcmp.lt.s32.totalorder %v81_v22, 15  ;;  %322 = vmatprep.subr.bf16.mxu0 %v4804_v4  ;;  %v4353_v50 = vld [vmem:[%s6392_s1 + $0x8] sm:$0xff]   ;;  %v4354_v53 = vld [vmem:[%s6392_s1] sm:$0xff]   ;;  %v4374_v56 = vld [vmem:[%s6393_s2 + $0x14] ss:$8 sps:$4 sm:$0xff]  }
   0xa   :  { %v183_v30 = vsel %vm4936_vm2, %v171_v19, 0.0  ;;  %v185_v31 = vsel %vm4940_vm3, %v173_v20, 0.0  ;;  %v4371_v52 = vld [vmem:[%s6393_s2 + $0x24] ss:$8 sps:$4 sm:$0xff]   ;;  %v4373_v55 = vld [vmem:[%s6393_s2 + $0x20] ss:$8 sps:$4 sm:$0xff]   ;;  %vm5159_vm10 = vmpackc.low %vm4936_vm2, %vm4807_vm9 }
   0xb   :  { %v4332_v32 = vpack.i.bf16 %v183_v30, %v172_v26  ;;  %v4342_v33 = vpack.i.bf16 %v185_v31, %v170_v27  ;;  %704 = vmatpush1.bf16.msra.mxu1 %v4361_v42  ;;  %v4355_v54 = vld [vmem:[%s6392_s1 + $0x40] sm:$0xff]   ;;  %v4381_v57 = vld [vmem:[%s6393_s2 + $0x174] ss:$8 sps:$4 sm:$0xff]   ;;  %v4376_v58 = vld [vmem:[%s6393_s2 + $0x10] ss:$8 sps:$4 sm:$0xff]   ;;  %v54_v5 = vadd.s32 16, %v4904_v11 }
   0xc   :  { %323 = vmatpush1.bf16.msra.mxu0 %v4349_v34  ;;  %705 = vmatprep.subr.bf16.mxu1 %v4362_v43  ;;  %v4377_v59 = vld [vmem:[%s6393_s2 + $0x4] ss:$8 sps:$4 sm:$0xff]   ;;  %v4382_v60 = vld [vmem:[%s6393_s2] ss:$8 sps:$4 sm:$0xff]   ;;  %v4383_v61 = vld [vmem:[%s6393_s2 + $0xf4] ss:$8 sps:$4 sm:$0xff]  }
   0xd   :  { %4333 = vrot.lane.b32.xlu0 %v4332_v32, %s4806_s17  ;;  %4343 = vrot.lane.b32.xlu1 %v4342_v33, %s4806_s17  ;;  %v4388_v62 = vld [vmem:[%s6393_s2 + $0xf0] ss:$8 sps:$4 sm:$0xff]   ;;  %v4389_v63 = vld [vmem:[%s6393_s2 + $0xe4] ss:$8 sps:$4 sm:$0xff]   ;;  %v74_v6 = vand.u32 15, %v54_v5  ;;  %v60_v7 = vand.u32 15, %v4904_v11  ;;  %vm5186_vm12 = vmpackc.low %vm4940_vm3, %vm4807_vm9 }
   0xe   :  { %324 = vmatprep.subr.bf16.mxu0 %v4804_v4  ;;  %v4394_v1 = vld [vmem:[%s6393_s2 + $0xe0] ss:$8 sps:$4 sm:$0xff]   ;;  %v4395_v2 = vld [vmem:[%s6393_s2 + $0xd4] ss:$8 sps:$4 sm:$0xff]   ;;  %v4400_v3 = vld [vmem:[%s6393_s2 + $0xd0] ss:$8 sps:$4 sm:$0xff]  }
   0xf   :  { %706 = vmatpush1.bf16.msra.mxu1 %v4364_v45  ;;  %vm5055_vm4 = vcmp.gt.s32.totalorder %v74_v6, 0  ;;  %vm5059_vm5 = vcmp.gt.s32.totalorder %v60_v7, 0  ;;  %v4387_v41 = vld [vmem:[%s6393_s2 + $0x164] ss:$8 sps:$4 sm:$0xff]   ;;  %v4393_v43 = vld [vmem:[%s6393_s2 + $0x154] ss:$8 sps:$4 sm:$0xff]  }
  0x10   :  { %325 = vmatpush1.bf16.msra.mxu0 %v4350_v36  ;;  %707 = vmatprep.subr.bf16.mxu1 %v4365_v46  ;;  %v163_v15 = vsel %vm5055_vm4, %v4961_v38, 0.0  ;;  %v161_v19 = vsel %vm5059_vm5, %v4929_v25, 0.0  ;;  %v4379_v25 = vld [vmem:[%s6393_s2 + $0x170] ss:$8 sps:$4 sm:$0xff]   ;;  %v4399_v45 = vld [vmem:[%s6393_s2 + $0x144] ss:$8 sps:$4 sm:$0xff]   ;;  %vm5172_vm11 = vmpackc.low %vm4807_vm9, %vm5059_vm5 }
  0x11   :  { %326 = vmatprep.subr.bf16.mxu0 %v4804_v4  ;;  %v4397_v46 = vld [vmem:[%s6393_s2 + $0x140] ss:$8 sps:$4 sm:$0xff]   ;;  %vm5199_vm13 = vmpackc.low %vm4807_vm9, %vm5055_vm4 }
  0x13   :  { %708 = vmatpush1.bf16.msra.mxu1 %v4367_v48  ;;  %v4405_v48 = vld [vmem:[%s6393_s2 + $0x134] ss:$8 sps:$4 sm:$0xff]  }
  0x14   :  { %327 = vmatpush1.bf16.msra.mxu0 %v4351_v44  ;;  %709 = vmatprep.subr.bf16.mxu1 %v4368_v49  ;;  %v4391_v44 = vld [vmem:[%s6393_s2 + $0x150] ss:$8 sps:$4 sm:$0xff]  }
  0x15   :  { %328 = vmatprep.subr.bf16.mxu0 %v4804_v4  ;;  %v4403_v49 = vld [vmem:[%s6393_s2 + $0x130] ss:$8 sps:$4 sm:$0xff]  }
  0x17   :  { %710 = vmatpush1.bf16.msra.mxu1 %v4370_v51  ;;  %v4407_v51 = vld [vmem:[%s6393_s2 + $0xb4] ss:$8 sps:$4 sm:$0xff]  }
  0x18   :  { %329 = vmatpush1.bf16.msra.mxu0 %v4352_v47  ;;  %711 = vmatprep.subr.bf16.mxu1 %v4371_v52  ;;  %v4401_v47 = vld [vmem:[%s6393_s2 + $0xc4] ss:$8 sps:$4 sm:$0xff]  }
  0x19   :  { %330 = vmatprep.subr.bf16.mxu0 %v4804_v4  ;;  %v4411_v52 = vld [vmem:[%s6393_s2 + $0x124] ss:$8 sps:$4 sm:$0xff]  }
  0x1b   :  { %712 = vmatpush1.bf16.msra.mxu1 %v4373_v55  ;;  %v4413_v55 = vld [vmem:[%s6393_s2 + $0xa4] ss:$8 sps:$4 sm:$0xff]  }
  0x1c   :  { %331 = vmatpush1.bf16.msra.mxu0 %v4353_v50  ;;  %713 = vmatprep.subr.bf16.mxu1 %v4374_v56  ;;  %v4406_v50 = vld [vmem:[%s6393_s2 + $0xc0] ss:$8 sps:$4 sm:$0xff]   ;;  %v4417_v56 = vld [vmem:[%s6393_s2 + $0x114] ss:$8 sps:$4 sm:$0xff]  }
  0x1d   :  { %332 = vmatprep.subr.bf16.mxu0 %v4804_v4 }
  0x1f   :  { %714 = vmatpush1.bf16.msra.mxu1 %v4376_v58  ;;  %v4418_v58 = vld [vmem:[%s6393_s2 + $0xa0] ss:$8 sps:$4 sm:$0xff]  }
  0x20   :  { %333 = vmatpush1.bf16.msra.mxu0 %v4354_v53  ;;  %715 = vmatprep.subr.bf16.mxu1 %v4377_v59  ;;  %v4409_v53 = vld [vmem:[%s6393_s2 + $0x120] ss:$8 sps:$4 sm:$0xff]   ;;  %v4419_v59 = vld [vmem:[%s6393_s2 + $0x94] ss:$8 sps:$4 sm:$0xff]  }
  0x21   :  { %348 = vmatprep.subr.bf16.mxu0 %v4804_v4 }
  0x23   :  { %716 = vmatpush1.bf16.msra.mxu1 %v4382_v60  ;;  %v4423_v60 = vld [vmem:[%s6393_s2 + $0x104] ss:$8 sps:$4 sm:$0xff]  }
  0x24   :  { %349 = vmatpush2.bf16.msra.mxu0 %v4355_v54  ;;  %717 = vmatprep.subr.bf16.mxu1 %v4383_v61  ;;  %v4412_v54 = vld [vmem:[%s6393_s2 + $0xb0] ss:$8 sps:$4 sm:$0xff]   ;;  %v4421_v61 = vld [vmem:[%s6393_s2 + $0x100] ss:$8 sps:$4 sm:$0xff]  }
  0x25   :  { %754 = vmatprep.subr.bf16.mxu0 %v4381_v57  ;;  %v4415_v57 = vld [vmem:[%s6393_s2 + $0x110] ss:$8 sps:$4 sm:$0xff]  }
  0x27   :  { %718 = vmatpush2.bf16.msra.mxu1 %v4388_v62  ;;  %v4424_v62 = vld [vmem:[%s6393_s2 + $0x90] ss:$8 sps:$4 sm:$0xff]  }
  0x28   :  { %719 = vmatprep.subr.bf16.mxu1 %v4389_v63  ;;  %v4425_v63 = vld [vmem:[%s6393_s2 + $0x84] ss:$8 sps:$4 sm:$0xff]  }
  0x2b   :  { %720 = vmatpush2.bf16.msra.mxu1 %v4394_v1  ;;  %v4427_v1 = vld [vmem:[%s6393_s2 + $0x80] ss:$8 sps:$4 sm:$0xff]  }
  0x2c   :  { %721 = vmatprep.subr.bf16.mxu1 %v4395_v2  ;;  %v3763_v2 = vld [vmem:[%s6394_s7] ss:$0 sm:$0xff] }
  0x2f   :  { %722 = vmatpush2.bf16.msra.mxu1 %v4400_v3 }
  0x30   :  { %723 = vmatprep.subr.bf16.mxu1 %v4401_v47 }
  0x33   :  { %724 = vmatpush2.bf16.msra.mxu1 %v4406_v50 }
  0x34   :  { %725 = vmatprep.subr.bf16.mxu1 %v4407_v51 }
  0x37   :  { %726 = vmatpush2.bf16.msra.mxu1 %v4412_v54 }
  0x38   :  { %727 = vmatprep.subr.bf16.mxu1 %v4413_v55  ;;  %v5212_v55 = vsub.s32 1, %v4904_v11 }
  0x3b   :  { %728 = vmatpush2.bf16.msra.mxu1 %v4418_v58 }
  0x3c   :  { %729 = vmatprep.subr.bf16.mxu1 %v4419_v59 }
  0x3f   :  { %730 = vmatpush2.bf16.msra.mxu1 %v4424_v62 }
  0x40   :  { %731 = vmatprep.subr.bf16.mxu1 %v4425_v63 }
  0x43   :  { %732 = vmatpush2.bf16.msra.mxu1 %v4427_v1 }
  0x76   :  { %v4329_v8 = vpop.permute.xlu0 %4328 }
  0x77   :  { %v4331_v16 = vunpack.i.h.bf16 %v4329_v8  ;;  %v4330_v18 = vunpack.i.l.bf16 %v4329_v8 }
  0x78   :  { %v4339_v10 = vpop.permute.xlu1 %4338 }
  0x79   :  { %v4341_v13 = vunpack.i.h.bf16 %v4339_v10  ;;  %v4340_v14 = vunpack.i.l.bf16 %v4339_v10  ;;  %v219_v32 = vsel %vm218_vm6, %v161_v19, %v4330_v18  ;;  %v220_v33 = vsel %vm218_vm6, %v4925_v24, %v4331_v16  ;;  %v4385_v24 = vld [vmem:[%s6393_s2 + $0x160] ss:$8 sps:$4 sm:$0xff]  }
  0x7b   :  { %v221_v21 = vsel %vm218_vm6, %v163_v15, %v4340_v14  ;;  %v222_v22 = vsel %vm218_vm6, %v4957_v37, %v4341_v13 }
  0x7f   :  { %v4334_v20 = vpop.permute.xlu0 %4333  ;;  %v4344_v23 = vpop.permute.xlu1 %4343 }
  0x80   :  { %v4336_v26 = vunpack.i.h.bf16 %v4334_v20  ;;  %v4335_v27 = vunpack.i.l.bf16 %v4334_v20  ;;  %v4346_v30 = vunpack.i.h.bf16 %v4344_v23  ;;  %v4345_v31 = vunpack.i.l.bf16 %v4344_v23 }
  0x82   :  { %v231_v34 = vpack.c.bf16 %v4346_v30, %v4345_v31  ;;  %v229_v35 = vpack.c.bf16 %v4336_v26, %v4335_v27  ;;  %v224_v36 = vsel %vm223_vm7, %v219_v32, %v4335_v27  ;;  %v225_v38 = vsel %vm223_vm7, %v220_v33, %v4336_v26 }
  0x83   :  { %v228_v39 = vpack.c.bf16 %v225_v38, %v224_v36  ;;  %v226_v37 = vsel %vm223_vm7, %v221_v21, %v4345_v31  ;;  %v227_v40 = vsel %vm223_vm7, %v222_v22, %v4346_v30 }
  0x84   :  { %3773 = vmatprep.mubr.msk.bf16.mxu0 %vm311_vm8, %v229_v35  ;;  %v230_v42 = vpack.c.bf16 %v227_v40, %v226_v37 }
  0x85   :  { %351 = vmatmul.mubr.bf16.vlgmr.msra.gmra.mxu0 %v228_v39 }
  0x86   :  { %3774 = vmatprep.mubr.msk.bf16.mxu0 %vm311_vm8, %v231_v34  ;;  %755 = vmatpush1.bf16.msra.mxu0 %v4379_v25 }
  0x87   :  { %756 = vmatprep.subr.bf16.mxu0 %v4387_v41  ;;  %v4134_v41 = vld [vmem:[%s6405_s12] ss:$0 sm:$0xff] }
  0x8a   :  { %757 = vmatpush1.bf16.msra.mxu0 %v4385_v24 }
  0x8b   :  { %758 = vmatprep.subr.bf16.mxu0 %v4393_v43 }
  0x8d   :  { %359 = vmatmul.mubr.bf16.gmra.mxu0 %v230_v42 }
  0x8e   :  { %759 = vmatpush1.bf16.msra.mxu0 %v4391_v44  ;;  %786 = vmatprep.mubr.bf16.mxu0 %v4804_v4 }
  0x8f   :  { %760 = vmatprep.subr.bf16.mxu0 %v4399_v45 }
  0x92   :  { %761 = vmatpush1.bf16.msra.mxu0 %v4397_v46 }
  0x93   :  { %762 = vmatprep.subr.bf16.mxu0 %v4405_v48 }
  0x96   :  { %763 = vmatpush1.bf16.msra.mxu0 %v4403_v49 }
  0x97   :  { %764 = vmatprep.subr.bf16.mxu0 %v4411_v52  ;;  %v5206_v52 = vsub.s32 0, %v4904_v11 }
  0x9a   :  { %765 = vmatpush1.bf16.msra.mxu0 %v4409_v53  ;;  %v449_v53 = vld [vmem:[%s6395_s8] sm:$0x3]  ;;  %s4808_s8 = smov 112  }
  0x9b   :  { %766 = vmatprep.subr.bf16.mxu0 %v4417_v56  ;;  %v454_v58 = vrot.slane %v449_v53, %v5206_v52  ;;  %v458_v59 = vrot.slane %v449_v53, %v5212_v55 }
  0x9e   :  { %767 = vmatpush1.bf16.msra.mxu0 %v4415_v57 }
  0x9f   :  { %768 = vmatprep.subr.bf16.mxu0 %v4423_v60 }
  0xa2   :  { %769 = vmatpush1.bf16.msra.mxu0 %v4421_v61 }
 0x145   :  { %v352_v3 = vpop.f32.mrf.mxu0 }
 0x146   :  { %v353_v6 = vadd.f32 %v3763_v2, %v352_v3 }
 0x147   :  { %v354_v5 = vpop.f32.mrf.mxu0 }
 0x148   :  { %v367_v13 = vmax.f32 %v353_v6, 0.0 }
 0x149   :  { %v355_v7 = vpop.f32.mrf.mxu0 }
 0x14a   :  { %v356_v8 = vadd.f32 %v3763_v2, %v355_v7  ;;  %v383_v23 = vrot.slane %v367_v13, 1  ;;  %v371_v38 = vrot.slane %v367_v13, 7 }
 0x14b   :  { %v357_v10 = vpop.f32.mrf.mxu0 }
 0x14c   :  { %v368_v14 = vmax.f32 %v356_v8, 0.0 }
 0x14d   :  { %v360_v15 = vpop.f32.mrf.mxu0 }
 0x14e   :  { %v361_v16 = vadd.f32 %v3763_v2, %v360_v15  ;;  %v396_v18 = vpack.c.bf16 %v368_v14, %v367_v13  ;;  %v384_v20 = vrot.slane %v368_v14, 1  ;;  %v372_v31 = vrot.slane %v368_v14, 7 }
 0x14f   :  { %v362_v19 = vpop.f32.mrf.mxu0 }
 0x150   :  { %v369_v21 = vmax.f32 %v361_v16, 0.0  ;;  %733 = vmatprep.mubr.bf16.mxu1 %v396_v18  ;;  %v389_v32 = vsel %vm169_vm1, %v383_v23, %v384_v20  ;;  %v377_v37 = vsel %vm148_vm0, %v371_v38, %v372_v31 }
 0x151   :  { %v363_v22 = vpop.f32.mrf.mxu0 }
 0x152   :  { %v385_v26 = vrot.slane %v369_v21, 1  ;;  %v364_v27 = vadd.f32 %v3763_v2, %v363_v22  ;;  %v373_v45 = vrot.slane %v369_v21, 7 }
 0x153   :  { %v365_v30 = vpop.f32.mrf.mxu0 }
 0x154   :  { %v388_v33 = vsel %vm169_vm1, %v384_v20, %v385_v26  ;;  %v370_v34 = vmax.f32 %v364_v27, 0.0  ;;  %v376_v47 = vsel %vm148_vm0, %v372_v31, %v373_v45 }
 0x155   :  { %v3830_v36 = vpack.c.bf16 %v388_v33, %v389_v32 }
 0x156   :  { %v374_v25 = vrot.slane %v370_v34, 7  ;;  %v386_v39 = vrot.slane %v370_v34, 1  ;;  %v399_v24 = vpack.c.bf16 %v370_v34, %v369_v21 }
 0x157   :  { %3831 = vmatmul.mubr.msk.bf16.vlgmr.msra.gmra.mxu0 %vm5159_vm10, %v3830_v36 }
 0x158   :  { %v378_v40 = vsel %vm148_vm0, %v374_v25, %v371_v38  ;;  %796 = vmatprep.mubr.bf16.mxu0 %v4804_v4  ;;  %v387_v43 = vsel %vm169_vm1, %v385_v26, %v386_v39  ;;  %v390_v44 = vsel %vm169_vm1, %v386_v39, %v383_v23  ;;  %v375_v46 = vsel %vm148_vm0, %v373_v45, %v374_v25 }
 0x159   :  { %v3824_v42 = vpack.c.bf16 %v377_v37, %v378_v40  ;;  %v3833_v4 = vpack.c.bf16 %v390_v44, %v387_v43  ;;  %v3827_v49 = vpack.c.bf16 %v375_v46, %v376_v47 }
 0x15b   :  { %3825 = vmatmul.mubr.msk.bf16.vlgmr.msra.gmra.mxu1 %vm5172_vm11, %v3824_v42 }
 0x15c   :  { %743 = vmatprep.mubr.bf16.mxu1 %v399_v24 }
 0x15f   :  { %3834 = vmatmul.mubr.msk.bf16.gmra.mxu0 %vm5186_vm12, %v3833_v4 }
 0x163   :  { %3828 = vmatmul.mubr.msk.bf16.gmra.mxu1 %vm5199_vm13, %v3827_v49 }
 0x217   :  { %v788_v50 = vpop.f32.mrf.mxu0 }
 0x219   :  { %v790_v51 = vpop.f32.mrf.mxu0 }
 0x21b   :  { %v735_v54 = vpop.f32.mrf.mxu1  ;;  %v792_v9 = vpop.f32.mrf.mxu0 }
 0x21c   :  { %v736_v63 = vadd.f32 %v735_v54, %v454_v58 }
 0x21d   :  { %v737_v56 = vpop.f32.mrf.mxu1  ;;  %v794_v57 = vpop.f32.mrf.mxu0 }
 0x21e   :  { %v738_v1 = vadd.f32 %v737_v56, %v458_v59  ;;  %v789_v8 = vadd.f32 %v788_v50, %v736_v63 }
 0x21f   :  { %v739_v60 = vpop.f32.mrf.mxu1  ;;  %v798_v61 = vpop.f32.mrf.mxu0 }
 0x220   :  { %v740_v6 = vadd.f32 %v739_v60, %v454_v58  ;;  %v791_v14 = vadd.f32 %v790_v51, %v738_v1  ;;  %v5216_v23 = vmax.f32 %v789_v8, 0.0  ;;  %v4809_v1 = vmov 0.0   ;;  %v4436_v8 = vld [vmem:[%s6396_s3 + $0x164] ss:$8 sps:$4 sm:$0xff]  }
 0x221   :  { %v741_v62 = vpop.f32.mrf.mxu1  ;;  %v800_v2 = vpop.f32.mrf.mxu0  ;;  %970 = vmatprep.mubr.f32.mxu0 %v4809_v1 }
 0x222   :  { %v742_v15 = vadd.f32 %v741_v62, %v458_v59  ;;  %v793_v21 = vadd.f32 %v792_v9, %v740_v6  ;;  %v5220_v31 = vmax.f32 %v791_v14, 0.0  ;;  %v815_v39 = vrot.slane %v5216_v23, 1  ;;  %v4428_v6 = vld [vmem:[%s6396_s3 + $0x170] ss:$8 sps:$4 sm:$0xff]  }
 0x223   :  { %v745_v3 = vpop.f32.mrf.mxu1  ;;  %v802_v16 = vpop.f32.mrf.mxu0  ;;  %v4440_v14 = vld [vmem:[%s6396_s3 + $0x150] ss:$8 sps:$4 sm:$0xff]  }
 0x224   :  { %v746_v5 = vadd.f32 %v745_v3, %v454_v58  ;;  %v795_v32 = vadd.f32 %v794_v57, %v742_v15  ;;  %v5226_v25 = vmax.f32 %v793_v21, 0.0  ;;  %v816_v24 = vrot.slane %v5220_v31, 1  ;;  %v4448_v15 = vld [vmem:[%s6396_s3 + $0x144] ss:$8 sps:$4 sm:$0xff]   ;;  %v4458_v21 = vld [vmem:[%s6396_s3 + $0x120] ss:$8 sps:$4 sm:$0xff]  }
 0x225   :  { %v747_v7 = vpop.f32.mrf.mxu1  ;;  %v804_v33 = vpop.f32.mrf.mxu0 }
 0x226   :  { %v799_v10 = vadd.f32 %v798_v61, %v746_v5  ;;  %v748_v13 = vadd.f32 %v747_v7, %v458_v59  ;;  %v5234_v43 = vmax.f32 %v795_v32, 0.0  ;;  %v817_v47 = vrot.slane %v5226_v25, 1  ;;  %v4430_v7 = vld [vmem:[%s6396_s3 + $0x174] ss:$8 sps:$4 sm:$0xff]   ;;  %v4470_v32 = vld [vmem:[%s6396_s3 + $0x100] ss:$8 sps:$4 sm:$0xff]  }
 0x227   :  { %v749_v18 = vpop.f32.mrf.mxu1  ;;  %1652 = vmatprep.subr.bf16.mxu1 %v4430_v7 }
 0x228   :  { %v801_v19 = vadd.f32 %v800_v2, %v748_v13  ;;  %v750_v20 = vadd.f32 %v749_v18, %v454_v58  ;;  %v5218_v26 = vmax.f32 %v799_v10, 0.0  ;;  %v818_v54 = vrot.slane %v5234_v43, 1  ;;  %1653 = vmatpush1.bf16.msra.mxu1 %v4428_v6  ;;  %v4434_v10 = vld [vmem:[%s6396_s3 + $0x160] ss:$8 sps:$4 sm:$0xff]   ;;  %v4442_v13 = vld [vmem:[%s6396_s3 + $0x154] ss:$8 sps:$4 sm:$0xff]  }
 0x229   :  { %v751_v22 = vpop.f32.mrf.mxu1  ;;  %v827_v63 = vsel %vm169_vm1, %v815_v39, %v817_v47  ;;  %1654 = vmatprep.subr.bf16.mxu1 %v4436_v8  ;;  %v4454_v18 = vld [vmem:[%s6396_s3 + $0x134] ss:$8 sps:$4 sm:$0xff]  }
 0x22a   :  { %v803_v27 = vadd.f32 %v802_v16, %v750_v20  ;;  %v752_v30 = vadd.f32 %v751_v22, %v458_v59  ;;  %v5222_v34 = vmax.f32 %v801_v19, 0.0  ;;  %v819_v37 = vrot.slane %v5218_v26, 1  ;;  %v4446_v16 = vld [vmem:[%s6396_s3 + $0x140] ss:$8 sps:$4 sm:$0xff]   ;;  %v4452_v19 = vld [vmem:[%s6396_s3 + $0x130] ss:$8 sps:$4 sm:$0xff]  }
 0x22b   :  { %v828_v28 = vsel %vm169_vm1, %v816_v24, %v818_v54  ;;  %v5290_v3 = vmax.f32 %v5216_v23, %v827_v63  ;;  %v4460_v20 = vld [vmem:[%s6396_s3 + $0x124] ss:$8 sps:$4 sm:$0xff]   ;;  %v4466_v22 = vld [vmem:[%s6396_s3 + $0x114] ss:$8 sps:$4 sm:$0xff]  }
 0x22c   :  { %v5224_v36 = vmax.f32 %v803_v27, 0.0  ;;  %v805_v38 = vadd.f32 %v804_v33, %v752_v30  ;;  %v820_v44 = vrot.slane %v5222_v34, 1  ;;  %v825_v56 = vsel %vm169_vm1, %v817_v47, %v819_v37  ;;  %1655 = vmatpush1.bf16.msra.mxu1 %v4434_v10  ;;  %v4464_v27 = vld [vmem:[%s6396_s3 + $0x110] ss:$8 sps:$4 sm:$0xff]   ;;  %v4472_v30 = vld [vmem:[%s6396_s3 + $0x104] ss:$8 sps:$4 sm:$0xff]  }
 0x22d   :  { %v833_v60 = vsel %vm4936_vm2, %v825_v56, 0.0  ;;  %v5294_v5 = vmax.f32 %v5220_v31, %v828_v28  ;;  %1656 = vmatprep.subr.bf16.mxu1 %v4442_v13  ;;  %v4478_v33 = vld [vmem:[%s6396_s3 + $0x1f4] ss:$8 sps:$4 sm:$0xff]   ;;  %v4508_v47 = vld [vmem:[%s6396_s3 + $0x1a4] ss:$8 sps:$4 sm:$0xff]  }
 0x22e   :  { %v821_v40 = vrot.slane %v5224_v36, 1  ;;  %v5231_v42 = vmax.f32 %v805_v38, 0.0  ;;  %v826_v59 = vsel %vm169_vm1, %v818_v54, %v820_v44  ;;  %v5277_v62 = vmax.f32 %v5226_v25, %v833_v60  ;;  %v4476_v38 = vld [vmem:[%s6396_s3 + $0x1f0] ss:$8 sps:$4 sm:$0xff]  }
 0x22f   :  { %v834_v29 = vsel %vm4936_vm2, %v826_v59, 0.0  ;;  %vm899_vm2 = vcmask 261120  }
 0x230   :  { %v822_v45 = vrot.slane %v5231_v42, 1  ;;  %v823_v4 = vsel %vm169_vm1, %v819_v37, %v821_v40  ;;  %v829_v46 = vsel %vm169_vm1, %v821_v40, %v815_v39  ;;  %v5284_v2 = vmax.f32 %v5234_v43, %v834_v29  ;;  %1657 = vmatpush1.bf16.msra.mxu1 %v4440_v14  ;;  %v4484_v39 = vld [vmem:[%s6396_s3 + $0x1e4] ss:$8 sps:$4 sm:$0xff]   ;;  %v4482_v37 = vld [vmem:[%s6396_s3 + $0x1e0] ss:$8 sps:$4 sm:$0xff]  }
 0x231   :  { %v5244_v49 = vmax.f32 %v5218_v26, %v823_v4  ;;  %v837_v51 = vsel %vm4940_vm3, %v829_v46, 0.0  ;;  %1658 = vmatprep.subr.bf16.mxu1 %v4448_v15  ;;  %v4490_v40 = vld [vmem:[%s6396_s3 + $0x1d4] ss:$8 sps:$4 sm:$0xff]   ;;  %v4500_v46 = vld [vmem:[%s6396_s3 + $0x1b0] ss:$8 sps:$4 sm:$0xff]  }
 0x232   :  { %v824_v50 = vsel %vm169_vm1, %v820_v44, %v822_v45  ;;  %v830_v53 = vsel %vm169_vm1, %v822_v45, %v816_v24  ;;  %v5263_v58 = vmax.f32 %v5224_v36, %v837_v51  ;;  %v4488_v24 = vld [vmem:[%s6396_s3 + $0x1d0] ss:$8 sps:$4 sm:$0xff]   ;;  %v4496_v44 = vld [vmem:[%s6396_s3 + $0x1c4] ss:$8 sps:$4 sm:$0xff]   ;;  %v4494_v45 = vld [vmem:[%s6396_s3 + $0x1c0] ss:$8 sps:$4 sm:$0xff]  }
 0x233   :  { %856 = vrot.lane.b32.xlu0 %v5244_v49, %s4808_s8  ;;  %v5255_v9 = vmax.f32 %v5222_v34, %v824_v50  ;;  %v838_v57 = vsel %vm4940_vm3, %v830_v53, 0.0  ;;  %v4502_v4 = vld [vmem:[%s6396_s3 + $0x1b4] ss:$8 sps:$4 sm:$0xff]   ;;  %v4506_v50 = vld [vmem:[%s6396_s3 + $0x1a0] ss:$8 sps:$4 sm:$0xff]   ;;  %v848_v51 = vand.u32 127, %v51_v0 }
 0x234   :  { %v5271_v61 = vmax.f32 %v5231_v42, %v838_v57  ;;  %1659 = vmatpush1.bf16.msra.mxu1 %v4446_v16 }
 0x235   :  { %864 = vrot.lane.b32.xlu1 %v5255_v9, %s4808_s8  ;;  %1660 = vmatprep.subr.bf16.mxu1 %v4454_v18  ;;  %v849_v54 = vadd.s32 128, %v848_v51  ;;  %vm868_vm14 = vcmp.lt.s32.totalorder %v848_v51, 112  ;;  %v4473_v51 = vld [vmem:[%s6396_s3] ss:$8 sps:$4 sm:$0xff]  }
 0x237   :  { %858 = vrot.lane.b32.xlu0 %v5263_v58, %s4808_s8  ;;  %vm851_vm15 = vcmp.lt.s32.totalorder %v849_v54, 240  ;;  %v4479_v54 = vld [vmem:[%s6396_s3 + $0xf0] ss:$8 sps:$4 sm:$0xff]  }
 0x238   :  { %1661 = vmatpush1.bf16.msra.mxu1 %v4452_v19 }
 0x239   :  { %866 = vrot.lane.b32.xlu1 %v5271_v61, %s4808_s8  ;;  %1662 = vmatprep.subr.bf16.mxu1 %v4460_v20 }
 0x23b   :  { %854 = vrot.lane.b32.xlu0 %v5277_v62, %s4808_s8 }
 0x23c   :  { %1663 = vmatpush1.bf16.msra.mxu1 %v4458_v21 }
 0x23d   :  { %862 = vrot.lane.b32.xlu1 %v5284_v2, %s4808_s8  ;;  %1664 = vmatprep.subr.bf16.mxu1 %v4466_v22 }
 0x23f   :  { %852 = vrot.lane.b32.xlu0 %v5290_v3, %s4808_s8 }
 0x240   :  { %1665 = vmatpush1.bf16.msra.mxu1 %v4464_v27 }
 0x241   :  { %860 = vrot.lane.b32.xlu1 %v5294_v5, %s4808_s8  ;;  %1666 = vmatprep.subr.bf16.mxu1 %v4472_v30 }
 0x244   :  { %1667 = vmatpush1.bf16.msra.mxu1 %v4470_v32  ;;  %v4431_v32 = vld [vmem:[%s6396_s3 + $0x70] ss:$8 sps:$4 sm:$0xff]  }
 0x245   :  { %1668 = vmatprep.subr.bf16.mxu1 %v4478_v33  ;;  %v4437_v33 = vld [vmem:[%s6396_s3 + $0x60] ss:$8 sps:$4 sm:$0xff]  }
 0x248   :  { %1669 = vmatpush2.bf16.msra.mxu1 %v4476_v38  ;;  %v4445_v38 = vld [vmem:[%s6396_s3 + $0x54] ss:$8 sps:$4 sm:$0xff]  }
 0x249   :  { %1670 = vmatprep.subr.bf16.mxu1 %v4484_v39  ;;  %v4443_v39 = vld [vmem:[%s6396_s3 + $0x50] ss:$8 sps:$4 sm:$0xff]  }
 0x24c   :  { %1671 = vmatpush2.bf16.msra.mxu1 %v4482_v37  ;;  %v4451_v37 = vld [vmem:[%s6396_s3 + $0x44] ss:$8 sps:$4 sm:$0xff]  }
 0x24d   :  { %1672 = vmatprep.subr.bf16.mxu1 %v4490_v40  ;;  %v4449_v40 = vld [vmem:[%s6396_s3 + $0x40] ss:$8 sps:$4 sm:$0xff]  }
 0x250   :  { %1673 = vmatpush2.bf16.msra.mxu1 %v4488_v24  ;;  %v4457_v24 = vld [vmem:[%s6396_s3 + $0x34] ss:$8 sps:$4 sm:$0xff]  }
 0x251   :  { %1674 = vmatprep.subr.bf16.mxu1 %v4496_v44  ;;  %v4455_v44 = vld [vmem:[%s6396_s3 + $0x30] ss:$8 sps:$4 sm:$0xff]  }
 0x254   :  { %1675 = vmatpush2.bf16.msra.mxu1 %v4494_v45  ;;  %v4463_v45 = vld [vmem:[%s6396_s3 + $0x24] ss:$8 sps:$4 sm:$0xff]  }
 0x255   :  { %1676 = vmatprep.subr.bf16.mxu1 %v4502_v4  ;;  %v4461_v4 = vld [vmem:[%s6396_s3 + $0x20] ss:$8 sps:$4 sm:$0xff]  }
 0x258   :  { %1677 = vmatpush2.bf16.msra.mxu1 %v4500_v46  ;;  %v4469_v46 = vld [vmem:[%s6396_s3 + $0x14] ss:$8 sps:$4 sm:$0xff]  }
 0x259   :  { %1678 = vmatprep.subr.bf16.mxu1 %v4508_v47  ;;  %v4467_v47 = vld [vmem:[%s6396_s3 + $0x10] ss:$8 sps:$4 sm:$0xff]  }
 0x25c   :  { %1679 = vmatpush2.bf16.msra.mxu1 %v4506_v50  ;;  %v4475_v50 = vld [vmem:[%s6396_s3 + $0x4] ss:$8 sps:$4 sm:$0xff]  }
 0x2a5   :  { %v857_v53 = vpop.permute.xlu0 %856 }
 0x2a7   :  { %v865_v56 = vpop.permute.xlu1 %864 }
 0x2a8   :  { %v875_v59 = vsel %vm868_vm14, %v865_v56, %v857_v53  ;;  %v871_v0 = vsel %vm868_vm14, %v857_v53, %v865_v56  ;;  %v4481_v53 = vld [vmem:[%s6396_s3 + $0xf4] ss:$8 sps:$4 sm:$0xff]   ;;  %v4487_v56 = vld [vmem:[%s6396_s3 + $0xe4] ss:$8 sps:$4 sm:$0xff]  }
 0x2a9   :  { %v859_v57 = vpop.permute.xlu0 %858  ;;  %v886_v28 = vsel %vm851_vm15, %v875_v59, 0.0  ;;  %v893_v18 = vmax.f32 %v5244_v49, %v871_v0  ;;  %v4493_v59 = vld [vmem:[%s6396_s3 + $0xd4] ss:$8 sps:$4 sm:$0xff]   ;;  %v4509_v0 = vld [vmem:[%s6396_s3 + $0xa0] ss:$8 sps:$4 sm:$0xff]  }
 0x2aa   :  { %v894_v14 = vmax.f32 %v5255_v9, %v886_v28  ;;  %v4505_v28 = vld [vmem:[%s6396_s3 + $0xb4] ss:$8 sps:$4 sm:$0xff]  }
 0x2ab   :  { %v867_v60 = vpop.permute.xlu1 %866 }
 0x2ac   :  { %v872_v29 = vsel %vm868_vm14, %v859_v57, %v867_v60  ;;  %v876_v63 = vsel %vm868_vm14, %v867_v60, %v859_v57  ;;  %v4485_v57 = vld [vmem:[%s6396_s3 + $0xe0] ss:$8 sps:$4 sm:$0xff]   ;;  %v4491_v60 = vld [vmem:[%s6396_s3 + $0xd0] ss:$8 sps:$4 sm:$0xff]  }
 0x2ad   :  { %v888_v6 = vsel %vm851_vm15, %v876_v63, 0.0  ;;  %v855_v7 = vpop.permute.xlu0 %854  ;;  %v895_v10 = vmax.f32 %v5263_v58, %v872_v29  ;;  %v4499_v29 = vld [vmem:[%s6396_s3 + $0xc4] ss:$8 sps:$4 sm:$0xff]   ;;  %v4497_v63 = vld [vmem:[%s6396_s3 + $0xc0] ss:$8 sps:$4 sm:$0xff]  }
 0x2ae   :  { %v896_v8 = vmax.f32 %v5271_v61, %v888_v6  ;;  %v4503_v6 = vld [vmem:[%s6396_s3 + $0xb0] ss:$8 sps:$4 sm:$0xff]  }
 0x2af   :  { %v863_v13 = vpop.permute.xlu1 %862 }
 0x2b0   :  { %v870_v15 = vsel %vm868_vm14, %v855_v7, %v863_v13  ;;  %v874_v16 = vsel %vm868_vm14, %v863_v13, %v855_v7  ;;  %930 = vmatprep.subr.mxu0 %v896_v8  ;;  %v4511_v7 = vld [vmem:[%s6396_s3 + $0xa4] ss:$8 sps:$4 sm:$0xff]   ;;  %v4514_v8 = vld [vmem:[%s6396_s3 + $0x194] ss:$8 sps:$4 sm:$0xff]  }
 0x2b1   :  { %v884_v19 = vsel %vm851_vm15, %v874_v16, 0.0  ;;  %931 = vmatpush1.msra.mxu0 %v895_v10  ;;  %v891_v61 = vmax.f32 %v5277_v62, %v870_v15  ;;  %v853_v21 = vpop.permute.xlu0 %852  ;;  %v897_v62 = vld [vmem:[%s6397_s13] sm:$0xff]  ;;  %v4512_v10 = vld [vmem:[%s6396_s3 + $0x190] ss:$8 sps:$4 sm:$0xff]   ;;  %1680 = vmatprep.subr.bf16.mxu1 %v4514_v8  ;;  %v4517_v13 = vld [vmem:[%s6396_s3 + $0x94] ss:$8 sps:$4 sm:$0xff]  }
 0x2b2   :  { %v892_v20 = vmax.f32 %v5284_v2, %v884_v19  ;;  %932 = vmatprep.subr.mxu0 %v894_v14  ;;  %v4433_v2 = vld [vmem:[%s6396_s3 + $0x74] ss:$8 sps:$4 sm:$0xff]   ;;  %1681 = vmatpush2.bf16.msra.mxu1 %v4512_v10  ;;  %v4515_v14 = vld [vmem:[%s6396_s3 + $0x90] ss:$8 sps:$4 sm:$0xff]   ;;  %v4520_v15 = vld [vmem:[%s6396_s3 + $0x184] ss:$8 sps:$4 sm:$0xff]  }
 0x2b3   :  { %v861_v58 = vpop.permute.xlu1 %860  ;;  %933 = vmatpush1.msra.mxu0 %v893_v18  ;;  %v4518_v16 = vld [vmem:[%s6396_s3 + $0x180] ss:$8 sps:$4 sm:$0xff]   ;;  %1682 = vmatprep.subr.bf16.mxu1 %v4520_v15  ;;  %v4523_v18 = vld [vmem:[%s6396_s3 + $0x84] ss:$8 sps:$4 sm:$0xff]   ;;  %v4538_v8 = vld [vmem:[%s6396_s3 + $0x234] ss:$8 sps:$4 sm:$0xff]  }
 0x2b4   :  { %v869_v9 = vsel %vm868_vm14, %v853_v21, %v861_v58  ;;  %v873_v22 = vsel %vm868_vm14, %v861_v58, %v853_v21  ;;  %934 = vmatprep.subr.mxu0 %v892_v20  ;;  %v4521_v19 = vld [vmem:[%s6396_s3 + $0x80] ss:$8 sps:$4 sm:$0xff]   ;;  %v4526_v20 = vld [vmem:[%s6396_s3 + $0x274] ss:$8 sps:$4 sm:$0xff]   ;;  %v116_v58 = vand.u32 7, %v4904_v11 }
 0x2b5   :  { %v882_v27 = vsel %vm851_vm15, %v873_v22, 0.0  ;;  %935 = vmatpush1.msra.mxu0 %v891_v61  ;;  %v889_v30 = vmax.f32 %v5290_v3, %v869_v9  ;;  %v898_v3 = vld [vmem:[%s6397_s13 + $0x8] sm:$0xff]  ;;  %v123_v9 = vand.u32 7, %v4910_v17  ;;  %v4536_v10 = vld [vmem:[%s6396_s3 + $0x230] ss:$8 sps:$4 sm:$0xff]  }
 0x2b6   :  { %v890_v49 = vmax.f32 %v5294_v5, %v882_v27  ;;  %v4439_v5 = vld [vmem:[%s6396_s3 + $0x64] ss:$8 sps:$4 sm:$0xff]   ;;  %1683 = vmatpush2.bf16.msra.mxu1 %v4518_v16  ;;  %vm5522_vm3 = vcmp.gt.s32.totalorder %v116_v58, 0  ;;  %vm5530_vm5 = vcmp.lt.s32.totalorder %v116_v58, 7  ;;  %v4544_v15 = vld [vmem:[%s6396_s3 + $0x214] ss:$8 sps:$4 sm:$0xff]  }
 0x2b7   :  { %vm5526_vm4 = vcmp.gt.s32.totalorder %v123_v9, 0  ;;  %vm5534_vm6 = vcmp.lt.s32.totalorder %v123_v9, 7  ;;  %v4542_v16 = vld [vmem:[%s6396_s3 + $0x210] ss:$8 sps:$4 sm:$0xff]   ;;  %v4551_v58 = vld [vmem:[%s6396_s3 + $0x2e0] ss:$8 sps:$4 sm:$0xff]  }
 0x2b8   :  { %936 = vmatprep.subr.mxu0 %v890_v49  ;;  %vm3933_vm7 = vmpackc.low %vm5526_vm4, %vm5522_vm3  ;;  %v4556_v9 = vld [vmem:[%s6396_s3 + $0x2d4] ss:$8 sps:$4 sm:$0xff]  }
 0x2b9   :  { %937 = vmatpush1.msra.mxu0 %v889_v30  ;;  %vm3939_vm9 = vmpackc.low %vm5534_vm6, %vm5530_vm5 }
 0x2ba   :  { %3835 = vmatmul.mubr.msk.f32.vlgmr.msra.gmra.mxu0 %vm899_vm2, %v897_v62  ;;  %1609 = vmatprep.subr.bf16.mxu0 %v4433_v2  ;;  %v4565_v62 = vld [vmem:[%s6396_s3 + $0x2a4] ss:$8 sps:$4 sm:$0xff]  }
 0x2bb   :  { %976 = vmatprep.mubr.f32.mxu0 %v4809_v1  ;;  %1610 = vmatpush1.bf16.msra.mxu0 %v4431_v32  ;;  %v4563_v32 = vld [vmem:[%s6396_s3 + $0x2a0] ss:$8 sps:$4 sm:$0xff]  }
 0x2bc   :  { %1611 = vmatprep.subr.bf16.mxu0 %v4439_v5  ;;  %v4578_v5 = vld [vmem:[%s6398_s4 + $0x120] ss:$24 sps:$4 sm:$0xff]  }
 0x2be   :  { %3836 = vmatmul.mubr.msk.f32.gmra.mxu0 %vm899_vm2, %v898_v3  ;;  %v4577_v3 = vld [vmem:[%s6398_s4 + $0x15c] ss:$24 sps:$4 sm:$0xff]  }
 0x2bf   :  { %1612 = vmatpush1.bf16.msra.mxu0 %v4437_v33 }
 0x2c0   :  { %1613 = vmatprep.subr.bf16.mxu0 %v4445_v38 }
 0x2c3   :  { %1614 = vmatpush1.bf16.msra.mxu0 %v4443_v39 }
 0x2c4   :  { %1615 = vmatprep.subr.bf16.mxu0 %v4451_v37 }
 0x2c7   :  { %1616 = vmatpush1.bf16.msra.mxu0 %v4449_v40 }
 0x2c8   :  { %1617 = vmatprep.subr.bf16.mxu0 %v4457_v24 }
 0x2cb   :  { %1618 = vmatpush1.bf16.msra.mxu0 %v4455_v44 }
 0x2cc   :  { %1619 = vmatprep.subr.bf16.mxu0 %v4463_v45 }
 0x2cf   :  { %1620 = vmatpush1.bf16.msra.mxu0 %v4461_v4 }
 0x2d0   :  { %1621 = vmatprep.subr.bf16.mxu0 %v4469_v46 }
 0x2d3   :  { %1622 = vmatpush1.bf16.msra.mxu0 %v4467_v47 }
 0x2d4   :  { %1623 = vmatprep.subr.bf16.mxu0 %v4475_v50 }
 0x2d7   :  { %1624 = vmatpush1.bf16.msra.mxu0 %v4473_v51 }
 0x2d8   :  { %1625 = vmatprep.subr.bf16.mxu0 %v4481_v53 }
 0x2db   :  { %1626 = vmatpush2.bf16.msra.mxu0 %v4479_v54 }
 0x2dc   :  { %1627 = vmatprep.subr.bf16.mxu0 %v4487_v56 }
 0x2df   :  { %1628 = vmatpush2.bf16.msra.mxu0 %v4485_v57  ;;  %v4524_v57 = vld [vmem:[%s6396_s3 + $0x270] ss:$8 sps:$4 sm:$0xff]  }
 0x2e0   :  { %1629 = vmatprep.subr.bf16.mxu0 %v4493_v59 }
 0x2e3   :  { %1630 = vmatpush2.bf16.msra.mxu0 %v4491_v60  ;;  %v4529_v60 = vld [vmem:[%s6396_s3 + $0x264] ss:$8 sps:$4 sm:$0xff]  }
 0x2e4   :  { %1631 = vmatprep.subr.bf16.mxu0 %v4499_v29 }
 0x2e7   :  { %1632 = vmatpush2.bf16.msra.mxu0 %v4497_v63  ;;  %v4527_v63 = vld [vmem:[%s6396_s3 + $0x260] ss:$8 sps:$4 sm:$0xff]  }
 0x2e8   :  { %1633 = vmatprep.subr.bf16.mxu0 %v4505_v28  ;;  %v4532_v28 = vld [vmem:[%s6396_s3 + $0x254] ss:$8 sps:$4 sm:$0xff]  }
 0x2eb   :  { %1634 = vmatpush2.bf16.msra.mxu0 %v4503_v6  ;;  %v4530_v6 = vld [vmem:[%s6396_s3 + $0x250] ss:$8 sps:$4 sm:$0xff]  }
 0x2ec   :  { %1635 = vmatprep.subr.bf16.mxu0 %v4511_v7  ;;  %v4535_v7 = vld [vmem:[%s6396_s3 + $0x244] ss:$8 sps:$4 sm:$0xff]  }
 0x2ef   :  { %1636 = vmatpush2.bf16.msra.mxu0 %v4509_v0  ;;  %v4533_v0 = vld [vmem:[%s6396_s3 + $0x240] ss:$8 sps:$4 sm:$0xff]  }
 0x2f0   :  { %1637 = vmatprep.subr.bf16.mxu0 %v4517_v13  ;;  %v4541_v13 = vld [vmem:[%s6396_s3 + $0x224] ss:$8 sps:$4 sm:$0xff]  }
 0x2f3   :  { %1638 = vmatpush2.bf16.msra.mxu0 %v4515_v14  ;;  %v4539_v14 = vld [vmem:[%s6396_s3 + $0x220] ss:$8 sps:$4 sm:$0xff]  }
 0x2f4   :  { %1639 = vmatprep.subr.bf16.mxu0 %v4523_v18  ;;  %v4547_v18 = vld [vmem:[%s6396_s3 + $0x204] ss:$8 sps:$4 sm:$0xff]  }
 0x2f7   :  { %1640 = vmatpush2.bf16.msra.mxu0 %v4521_v19  ;;  %v4545_v19 = vld [vmem:[%s6396_s3 + $0x200] ss:$8 sps:$4 sm:$0xff]  }
 0x2f8   :  { %1695 = vmatprep.subr.bf16.mxu0 %v4526_v20  ;;  %v4550_v20 = vld [vmem:[%s6396_s3 + $0x2f4] ss:$8 sps:$4 sm:$0xff]  }
 0x37a   :  { %v972_v61 = vpop.f32.mrf.mxu0 }
 0x37b   :  { %v999_v27 = vrot.slane %v972_v61, 1  ;;  %v983_v17 = vrot.slane %v972_v61, 7 }
 0x37c   :  { %v974_v21 = vpop.f32.mrf.mxu0 }
 0x37d   :  { %v984_v33 = vrot.slane %v974_v21, 7  ;;  %v1000_v37 = vrot.slane %v974_v21, 1 }
 0x37e   :  { %v978_v22 = vpop.f32.mrf.mxu0 }
 0x37f   :  { %v985_v49 = vrot.slane %v978_v22, 7  ;;  %v1001_v2 = vrot.slane %v978_v22, 1  ;;  %v1017_v46 = vpack.c.bf16 %v978_v22, %v972_v61  ;;  %v4548_v61 = vld [vmem:[%s6396_s3 + $0x2f0] ss:$8 sps:$4 sm:$0xff]  }
 0x380   :  { %v980_v30 = vpop.f32.mrf.mxu0  ;;  %v4554_v22 = vld [vmem:[%s6396_s3 + $0x2d0] ss:$8 sps:$4 sm:$0xff]  }
 0x381   :  { %v5540_v38 = vsel %vm169_vm1, %v999_v27, %v1001_v2  ;;  %v5544_v39 = vsel %vm169_vm1, %v1001_v2, %v999_v27  ;;  %v986_v24 = vrot.slane %v980_v30, 7  ;;  %v1002_v44 = vrot.slane %v980_v30, 1  ;;  %v4559_v27 = vld [vmem:[%s6396_s3 + $0x2c4] ss:$8 sps:$4 sm:$0xff]   ;;  %v4562_v2 = vld [vmem:[%s6396_s3 + $0x2b4] ss:$8 sps:$4 sm:$0xff]  }
 0x382   :  { %v3943_v40 = vpack.c.bf16 %v5544_v39, %v5540_v38  ;;  %v987_v45 = vsel %vm148_vm0, %v983_v17, %v985_v49  ;;  %v989_v4 = vsel %vm148_vm0, %v985_v49, %v983_v17  ;;  %v1018_v47 = vpack.c.bf16 %v980_v30, %v974_v21  ;;  %v4553_v21 = vld [vmem:[%s6396_s3 + $0x2e4] ss:$8 sps:$4 sm:$0xff]   ;;  %v4557_v49 = vld [vmem:[%s6396_s3 + $0x2c0] ss:$8 sps:$4 sm:$0xff]   ;;  %v4560_v30 = vld [vmem:[%s6396_s3 + $0x2b0] ss:$8 sps:$4 sm:$0xff]  }
 0x383   :  { %v988_v50 = vsel %vm148_vm0, %v984_v33, %v986_v24  ;;  %v990_v51 = vsel %vm148_vm0, %v986_v24, %v984_v33  ;;  %v1004_v53 = vsel %vm169_vm1, %v1000_v37, %v1002_v44  ;;  %v1006_v54 = vsel %vm169_vm1, %v1002_v44, %v1000_v37  ;;  %v4568_v17 = vld [vmem:[%s6396_s3 + $0x294] ss:$8 sps:$4 sm:$0xff]   ;;  %v4566_v33 = vld [vmem:[%s6396_s3 + $0x290] ss:$8 sps:$4 sm:$0xff]   ;;  %v4571_v37 = vld [vmem:[%s6396_s3 + $0x284] ss:$8 sps:$4 sm:$0xff]  }
 0x384   :  { %1684 = vmatprep.mubr.bf16.mxu1 %v1018_v47  ;;  %v3934_v56 = vpack.c.bf16 %v988_v50, %v990_v51  ;;  %v3937_v59 = vpack.c.bf16 %v987_v45, %v989_v4  ;;  %v3940_v29 = vpack.c.bf16 %v1006_v54, %v1004_v53  ;;  %v4569_v24 = vld [vmem:[%s6396_s3 + $0x280] ss:$8 sps:$4 sm:$0xff]   ;;  %v4574_v45 = vld [vmem:[%s6398_s4 + $0x154] ss:$24 sps:$4 sm:$0xff]   ;;  %v4575_v4 = vld [vmem:[%s6398_s4 + $0x158] ss:$24 sps:$4 sm:$0xff]  }
 0x385   :  { %1685 = vmatmul.mubr.bf16.vlgmr.msra.gmra.mxu1 %v1017_v46  ;;  %v4572_v44 = vld [vmem:[%s6398_s4 + $0x150] ss:$24 sps:$4 sm:$0xff]   ;;  %2320 = vmatprep.subr.bf16.mxu1 %v4574_v45  ;;  %v4580_v38 = vld [vmem:[%s6398_s4 + $0x124] ss:$24 sps:$4 sm:$0xff]   ;;  %v4586_v46 = vld [vmem:[%s6398_s4 + $0xf4] ss:$24 sps:$4 sm:$0xff]  }
 0x386   :  { %3935 = vmatprep.mubr.msk.bf16.mxu0 %vm3933_vm7, %v3934_v56  ;;  %2321 = vmatpush1.bf16.msra.mxu1 %v4572_v44  ;;  %v4581_v39 = vld [vmem:[%s6398_s4 + $0x128] ss:$24 sps:$4 sm:$0xff]   ;;  %v4589_v50 = vld [vmem:[%s6398_s4 + $0xfc] ss:$24 sps:$4 sm:$0xff]   ;;  %v4587_v51 = vld [vmem:[%s6398_s4 + $0xf8] ss:$24 sps:$4 sm:$0xff]  }
 0x387   :  { %3938 = vmatmul.mubr.msk.bf16.vlgmr.msra.gmra.mxu0 %vm3933_vm7, %v3937_v59  ;;  %2322 = vmatprep.subr.bf16.mxu1 %v4580_v38  ;;  %v4584_v47 = vld [vmem:[%s6398_s4 + $0xf0] ss:$24 sps:$4 sm:$0xff]   ;;  %v4592_v53 = vld [vmem:[%s6398_s4 + $0xc4] ss:$24 sps:$4 sm:$0xff]   ;;  %v4590_v56 = vld [vmem:[%s6398_s4 + $0xc0] ss:$24 sps:$4 sm:$0xff]  }
 0x388   :  { %1696 = vmatpush1.bf16.msra.mxu0 %v4524_v57  ;;  %3941 = vmatprep.mubr.msk.bf16.mxu0 %vm3939_vm9, %v3940_v29  ;;  %v4595_v54 = vld [vmem:[%s6398_s4 + $0xcc] ss:$24 sps:$4 sm:$0xff]   ;;  %v4593_v57 = vld [vmem:[%s6398_s4 + $0xc8] ss:$24 sps:$4 sm:$0xff]   ;;  %v4649_v45 = vld [vmem:[%s6398_s4 + $0x21c] ss:$24 sps:$4 sm:$0xff]  }
 0x389   :  { %1697 = vmatprep.subr.bf16.mxu0 %v4529_v60  ;;  %v4598_v59 = vld [vmem:[%s6398_s4 + $0x94] ss:$24 sps:$4 sm:$0xff]   ;;  %v4596_v29 = vld [vmem:[%s6398_s4 + $0x90] ss:$24 sps:$4 sm:$0xff]   ;;  %v4650_v38 = vld [vmem:[%s6398_s4 + $0x1e0] ss:$24 sps:$4 sm:$0xff]  }
 0x38a   :  { %2323 = vmatpush1.bf16.msra.mxu1 %v4578_v5  ;;  %v4601_v60 = vld [vmem:[%s6398_s4 + $0x9c] ss:$24 sps:$4 sm:$0xff]  }
 0x38b   :  { %2324 = vmatprep.subr.bf16.mxu1 %v4586_v46  ;;  %v4646_v44 = vld [vmem:[%s6398_s4 + $0x214] ss:$24 sps:$4 sm:$0xff]   ;;  %v4652_v5 = vld [vmem:[%s6398_s4 + $0x1e4] ss:$24 sps:$4 sm:$0xff]  }
 0x38c   :  { %1698 = vmatpush1.bf16.msra.mxu0 %v4527_v63  ;;  %v4599_v63 = vld [vmem:[%s6398_s4 + $0x98] ss:$24 sps:$4 sm:$0xff]   ;;  %v4658_v46 = vld [vmem:[%s6398_s4 + $0x1b4] ss:$24 sps:$4 sm:$0xff]  }
 0x38d   :  { %1699 = vmatprep.subr.bf16.mxu0 %v4532_v28  ;;  %v4604_v28 = vld [vmem:[%s6398_s4 + $0x64] ss:$24 sps:$4 sm:$0xff]  }
 0x38e   :  { %2325 = vmatpush1.bf16.msra.mxu1 %v4584_v47  ;;  %v4656_v47 = vld [vmem:[%s6398_s4 + $0x1b0] ss:$24 sps:$4 sm:$0xff]  }
 0x38f   :  { %2326 = vmatprep.subr.bf16.mxu1 %v4592_v53  ;;  %v4664_v53 = vld [vmem:[%s6398_s4 + $0x184] ss:$24 sps:$4 sm:$0xff]  }
 0x390   :  { %1700 = vmatpush1.bf16.msra.mxu0 %v4530_v6  ;;  %v4607_v6 = vld [vmem:[%s6398_s4 + $0x6c] ss:$24 sps:$4 sm:$0xff]  }
 0x391   :  { %1701 = vmatprep.subr.bf16.mxu0 %v4535_v7  ;;  %v4602_v7 = vld [vmem:[%s6398_s4 + $0x60] ss:$24 sps:$4 sm:$0xff]  }
 0x392   :  { %2327 = vmatpush1.bf16.msra.mxu1 %v4590_v56  ;;  %v4667_v56 = vld [vmem:[%s6398_s4 + $0x18c] ss:$24 sps:$4 sm:$0xff]  }
 0x393   :  { %2328 = vmatprep.subr.bf16.mxu1 %v4598_v59  ;;  %v4670_v59 = vld [vmem:[%s6398_s4 + $0x164] ss:$24 sps:$4 sm:$0xff]  }
 0x394   :  { %1702 = vmatpush1.bf16.msra.mxu0 %v4533_v0  ;;  %v4605_v0 = vld [vmem:[%s6398_s4 + $0x68] ss:$24 sps:$4 sm:$0xff]  }
 0x395   :  { %1703 = vmatprep.subr.bf16.mxu0 %v4538_v8  ;;  %v4610_v8 = vld [vmem:[%s6398_s4 + $0x34] ss:$24 sps:$4 sm:$0xff]  }
 0x396   :  { %2329 = vmatpush1.bf16.msra.mxu1 %v4596_v29 }
 0x397   :  { %2330 = vmatprep.subr.bf16.mxu1 %v4604_v28  ;;  %v1117_v28 = vld [vmem:[%s6399_s9] sm:$0x3] }
 0x398   :  { %1704 = vmatpush1.bf16.msra.mxu0 %v4536_v10  ;;  %v4613_v10 = vld [vmem:[%s6398_s4 + $0x3c] ss:$24 sps:$4 sm:$0xff]  }
 0x399   :  { %1705 = vmatprep.subr.bf16.mxu0 %v4541_v13  ;;  %v4608_v13 = vld [vmem:[%s6398_s4 + $0x30] ss:$24 sps:$4 sm:$0xff]  }
 0x39a   :  { %2331 = vmatpush1.bf16.msra.mxu1 %v4602_v7  ;;  %v1126_v7 = vrot.slane %v1117_v28, %v5212_v55 }
 0x39b   :  { %2332 = vmatprep.subr.bf16.mxu1 %v4610_v8  ;;  %v1122_v8 = vrot.slane %v1117_v28, %v5206_v52  ;;  %v4695_v28 = vld [vmem:[%s6398_s4 + $0x2b0] ss:$24 sps:$4 sm:$0xff]  }
 0x39c   :  { %1706 = vmatpush1.bf16.msra.mxu0 %v4539_v14  ;;  %v4611_v14 = vld [vmem:[%s6398_s4 + $0x38] ss:$24 sps:$4 sm:$0xff]  }
 0x39d   :  { %1707 = vmatprep.subr.bf16.mxu0 %v4544_v15  ;;  %v4616_v15 = vld [vmem:[%s6398_s4 + $0x4] ss:$24 sps:$4 sm:$0xff]  }
 0x39e   :  { %2333 = vmatpush1.bf16.msra.mxu1 %v4608_v13 }
 0x39f   :  { %2334 = vmatprep.subr.bf16.mxu1 %v4616_v15 }
 0x3a0   :  { %1708 = vmatpush1.bf16.msra.mxu0 %v4542_v16  ;;  %v4619_v16 = vld [vmem:[%s6398_s4 + $0xc] ss:$24 sps:$4 sm:$0xff]  }
 0x3a1   :  { %1709 = vmatprep.subr.bf16.mxu0 %v4547_v18  ;;  %v4614_v18 = vld [vmem:[%s6398_s4] ss:$24 sps:$4 sm:$0xff]  }
 0x3a2   :  { %2335 = vmatpush1.bf16.msra.mxu1 %v4614_v18 }
 0x3a4   :  { %1710 = vmatpush1.bf16.msra.mxu0 %v4545_v19  ;;  %v4617_v19 = vld [vmem:[%s6398_s4 + $0x8] ss:$24 sps:$4 sm:$0xff]  }
 0x3a5   :  { %1711 = vmatprep.subr.bf16.mxu0 %v4550_v20  ;;  %v4622_v20 = vld [vmem:[%s6398_s4 + $0x2d4] ss:$24 sps:$4 sm:$0xff]  }
 0x3a6   :  { %2336 = vmatprep.subr.bf16.mxu1 %v4622_v20 }
 0x3a8   :  { %1712 = vmatpush2.bf16.msra.mxu0 %v4548_v61  ;;  %v4625_v61 = vld [vmem:[%s6398_s4 + $0x2dc] ss:$24 sps:$4 sm:$0xff]  }
 0x3a9   :  { %1713 = vmatprep.subr.bf16.mxu0 %v4553_v21  ;;  %v4620_v21 = vld [vmem:[%s6398_s4 + $0x2d0] ss:$24 sps:$4 sm:$0xff]  }
 0x3aa   :  { %2337 = vmatpush2.bf16.msra.mxu1 %v4620_v21 }
 0x3ac   :  { %1714 = vmatpush2.bf16.msra.mxu0 %v4551_v58  ;;  %v4623_v58 = vld [vmem:[%s6398_s4 + $0x2d8] ss:$24 sps:$4 sm:$0xff]  }
 0x3ad   :  { %1715 = vmatprep.subr.bf16.mxu0 %v4556_v9  ;;  %v4628_v9 = vld [vmem:[%s6398_s4 + $0x2a4] ss:$24 sps:$4 sm:$0xff]  }
 0x3ae   :  { %2338 = vmatprep.subr.bf16.mxu1 %v4628_v9 }
 0x3b0   :  { %1716 = vmatpush2.bf16.msra.mxu0 %v4554_v22  ;;  %v4626_v22 = vld [vmem:[%s6398_s4 + $0x2a0] ss:$24 sps:$4 sm:$0xff]  }
 0x3b1   :  { %1717 = vmatprep.subr.bf16.mxu0 %v4559_v27  ;;  %v4631_v27 = vld [vmem:[%s6398_s4 + $0x2ac] ss:$24 sps:$4 sm:$0xff]   ;;  %2339 = vmatpush2.bf16.msra.mxu1 %v4626_v22 }
 0x3b4   :  { %1718 = vmatpush2.bf16.msra.mxu0 %v4557_v49  ;;  %v4629_v49 = vld [vmem:[%s6398_s4 + $0x2a8] ss:$24 sps:$4 sm:$0xff]  }
 0x3b5   :  { %1719 = vmatprep.subr.bf16.mxu0 %v4562_v2  ;;  %v4634_v2 = vld [vmem:[%s6398_s4 + $0x274] ss:$24 sps:$4 sm:$0xff]  }
 0x3b6   :  { %2340 = vmatprep.subr.bf16.mxu1 %v4634_v2 }
 0x3b8   :  { %1720 = vmatpush2.bf16.msra.mxu0 %v4560_v30  ;;  %v4637_v30 = vld [vmem:[%s6398_s4 + $0x27c] ss:$24 sps:$4 sm:$0xff]  }
 0x3b9   :  { %1721 = vmatprep.subr.bf16.mxu0 %v4565_v62  ;;  %v4632_v62 = vld [vmem:[%s6398_s4 + $0x270] ss:$24 sps:$4 sm:$0xff]  }
 0x3ba   :  { %2341 = vmatpush2.bf16.msra.mxu1 %v4632_v62 }
 0x3bc   :  { %1722 = vmatpush2.bf16.msra.mxu0 %v4563_v32  ;;  %v4635_v32 = vld [vmem:[%s6398_s4 + $0x278] ss:$24 sps:$4 sm:$0xff]  }
 0x3bd   :  { %1723 = vmatprep.subr.bf16.mxu0 %v4568_v17  ;;  %v4640_v17 = vld [vmem:[%s6398_s4 + $0x244] ss:$24 sps:$4 sm:$0xff]  }
 0x3be   :  { %2342 = vmatprep.subr.bf16.mxu1 %v4640_v17 }
 0x3c0   :  { %1724 = vmatpush2.bf16.msra.mxu0 %v4566_v33  ;;  %v4643_v33 = vld [vmem:[%s6398_s4 + $0x24c] ss:$24 sps:$4 sm:$0xff]  }
 0x3c1   :  { %1725 = vmatprep.subr.bf16.mxu0 %v4571_v37  ;;  %v4638_v37 = vld [vmem:[%s6398_s4 + $0x240] ss:$24 sps:$4 sm:$0xff]  }
 0x3c2   :  { %2343 = vmatpush2.bf16.msra.mxu1 %v4638_v37 }
 0x3c3   :  { %2344 = vmatprep.subr.bf16.mxu1 %v4646_v44 }
 0x3c4   :  { %1726 = vmatpush2.bf16.msra.mxu0 %v4569_v24  ;;  %v4641_v24 = vld [vmem:[%s6398_s4 + $0x248] ss:$24 sps:$4 sm:$0xff]  }
 0x3c5   :  { %2363 = vmatprep.subr.bf16.mxu0 %v4577_v3  ;;  %v4647_v3 = vld [vmem:[%s6398_s4 + $0x218] ss:$24 sps:$4 sm:$0xff]  }
 0x3c7   :  { %3944 = vmatmul.mubr.msk.bf16.vlgmr.msra.gmra.mxu0 %vm3939_vm9, %v3943_v40  ;;  %v4583_v40 = vld [vmem:[%s6398_s4 + $0x12c] ss:$24 sps:$4 sm:$0xff]  }
 0x3c8   :  { %2364 = vmatpush1.bf16.msra.mxu0 %v4575_v4  ;;  %v4644_v4 = vld [vmem:[%s6398_s4 + $0x210] ss:$24 sps:$4 sm:$0xff]  }
 0x3c9   :  { %2365 = vmatprep.subr.bf16.mxu0 %v4583_v40  ;;  %2345 = vmatpush2.bf16.msra.mxu1 %v4644_v4  ;;  %v4653_v40 = vld [vmem:[%s6398_s4 + $0x1e8] ss:$24 sps:$4 sm:$0xff]  }
 0x3ca   :  { %2346 = vmatprep.subr.bf16.mxu1 %v4652_v5  ;;  %v4671_v5 = vld [vmem:[%s6398_s4 + $0x130] ss:$24 sps:$4 sm:$0xff]  }
 0x3cc   :  { %2366 = vmatpush1.bf16.msra.mxu0 %v4581_v39  ;;  %v4655_v39 = vld [vmem:[%s6398_s4 + $0x1ec] ss:$24 sps:$4 sm:$0xff]  }
 0x3cd   :  { %2367 = vmatprep.subr.bf16.mxu0 %v4589_v50  ;;  %2347 = vmatpush2.bf16.msra.mxu1 %v4650_v38  ;;  %v4661_v50 = vld [vmem:[%s6398_s4 + $0x1bc] ss:$24 sps:$4 sm:$0xff]  }
 0x3ce   :  { %2348 = vmatprep.subr.bf16.mxu1 %v4658_v46  ;;  %v4676_v38 = vld [vmem:[%s6398_s4 + $0x104] ss:$24 sps:$4 sm:$0xff]   ;;  %v4677_v46 = vld [vmem:[%s6398_s4 + $0xd0] ss:$24 sps:$4 sm:$0xff]  }
 0x3d0   :  { %2368 = vmatpush1.bf16.msra.mxu0 %v4587_v51  ;;  %v4659_v51 = vld [vmem:[%s6398_s4 + $0x1b8] ss:$24 sps:$4 sm:$0xff]  }
 0x3d1   :  { %2369 = vmatprep.subr.bf16.mxu0 %v4595_v54  ;;  %2349 = vmatpush2.bf16.msra.mxu1 %v4656_v47  ;;  %v4662_v54 = vld [vmem:[%s6398_s4 + $0x180] ss:$24 sps:$4 sm:$0xff]   ;;  %v4682_v47 = vld [vmem:[%s6398_s4 + $0xa4] ss:$24 sps:$4 sm:$0xff]  }
 0x3d2   :  { %2350 = vmatprep.subr.bf16.mxu1 %v4664_v53  ;;  %v4683_v53 = vld [vmem:[%s6398_s4 + $0x70] ss:$24 sps:$4 sm:$0xff]  }
 0x3d4   :  { %2370 = vmatpush1.bf16.msra.mxu0 %v4593_v57  ;;  %v4665_v57 = vld [vmem:[%s6398_s4 + $0x188] ss:$24 sps:$4 sm:$0xff]  }
 0x3d5   :  { %2371 = vmatprep.subr.bf16.mxu0 %v4601_v60  ;;  %2351 = vmatpush2.bf16.msra.mxu1 %v4662_v54  ;;  %v4688_v54 = vld [vmem:[%s6398_s4 + $0x44] ss:$24 sps:$4 sm:$0xff]  }
 0x3d6   :  { %2406 = vmatprep.subr.bf16.mxu1 %v4670_v59  ;;  %v4689_v59 = vld [vmem:[%s6398_s4 + $0x10] ss:$24 sps:$4 sm:$0xff]  }
 0x3d8   :  { %2372 = vmatpush1.bf16.msra.mxu0 %v4599_v63 }
 0x3d9   :  { %2373 = vmatprep.subr.bf16.mxu0 %v4607_v6 }
 0x3dc   :  { %2374 = vmatpush1.bf16.msra.mxu0 %v4605_v0 }
 0x3dd   :  { %2375 = vmatprep.subr.bf16.mxu0 %v4613_v10 }
 0x3e0   :  { %2376 = vmatpush1.bf16.msra.mxu0 %v4611_v14 }
 0x3e1   :  { %2377 = vmatprep.subr.bf16.mxu0 %v4619_v16 }
 0x3e4   :  { %2378 = vmatpush1.bf16.msra.mxu0 %v4617_v19 }
 0x3e5   :  { %2379 = vmatprep.subr.bf16.mxu0 %v4625_v61 }
 0x3e8   :  { %2380 = vmatpush2.bf16.msra.mxu0 %v4623_v58 }
 0x3e9   :  { %2381 = vmatprep.subr.bf16.mxu0 %v4631_v27 }
 0x3ec   :  { %2382 = vmatpush2.bf16.msra.mxu0 %v4629_v49 }
 0x3ed   :  { %2383 = vmatprep.subr.bf16.mxu0 %v4637_v30 }
 0x3f0   :  { %2384 = vmatpush2.bf16.msra.mxu0 %v4635_v32 }
 0x3f1   :  { %2385 = vmatprep.subr.bf16.mxu0 %v4643_v33 }
 0x3f4   :  { %2386 = vmatpush2.bf16.msra.mxu0 %v4641_v24 }
 0x3f5   :  { %2387 = vmatprep.subr.bf16.mxu0 %v4649_v45  ;;  %v4668_v45 = vld [vmem:[%s6398_s4 + $0x160] ss:$24 sps:$4 sm:$0xff]  }
 0x3f8   :  { %2388 = vmatpush2.bf16.msra.mxu0 %v4647_v3  ;;  %v4673_v3 = vld [vmem:[%s6398_s4 + $0x134] ss:$24 sps:$4 sm:$0xff]  }
 0x3f9   :  { %2389 = vmatprep.subr.bf16.mxu0 %v4655_v39  ;;  %v4674_v39 = vld [vmem:[%s6398_s4 + $0x100] ss:$24 sps:$4 sm:$0xff]  }
 0x3fc   :  { %2390 = vmatpush2.bf16.msra.mxu0 %v4653_v40  ;;  %v4679_v40 = vld [vmem:[%s6398_s4 + $0xd4] ss:$24 sps:$4 sm:$0xff]  }
 0x3fd   :  { %2391 = vmatprep.subr.bf16.mxu0 %v4661_v50  ;;  %v4680_v50 = vld [vmem:[%s6398_s4 + $0xa0] ss:$24 sps:$4 sm:$0xff]  }
 0x400   :  { %2392 = vmatpush2.bf16.msra.mxu0 %v4659_v51  ;;  %v4685_v51 = vld [vmem:[%s6398_s4 + $0x74] ss:$24 sps:$4 sm:$0xff]  }
 0x401   :  { %2393 = vmatprep.subr.bf16.mxu0 %v4667_v56  ;;  %v4686_v56 = vld [vmem:[%s6398_s4 + $0x40] ss:$24 sps:$4 sm:$0xff]  }
 0x404   :  { %2394 = vmatpush2.bf16.msra.mxu0 %v4665_v57  ;;  %v4691_v57 = vld [vmem:[%s6398_s4 + $0x14] ss:$24 sps:$4 sm:$0xff]  }
 0x445   :  { %v1686_v63 = vpop.f32.mrf.mxu1 }
 0x447   :  { %v1643_v60 = vpop.f32.mrf.mxu0  ;;  %v1688_v0 = vpop.f32.mrf.mxu1 }
 0x448   :  { %v1644_v15 = vadd.f32 %v1643_v60, %v1122_v8  ;;  %v4694_v60 = vld [vmem:[%s6398_s4 + $0x2e4] ss:$24 sps:$4 sm:$0xff]  }
 0x449   :  { %v1645_v29 = vpop.f32.mrf.mxu0  ;;  %v1690_v16 = vpop.f32.mrf.mxu1 }
 0x44a   :  { %v1646_v13 = vadd.f32 %v1645_v29, %v1126_v7  ;;  %v1687_v9 = vadd.f32 %v1686_v63, %v1644_v15  ;;  %v4692_v29 = vld [vmem:[%s6398_s4 + $0x2e0] ss:$24 sps:$4 sm:$0xff]   ;;  %v4697_v63 = vld [vmem:[%s6398_s4 + $0x2b4] ss:$24 sps:$4 sm:$0xff]   ;;  %v4707_v15 = vld [vmem:[%s6398_s4 + $0x1f0] ss:$24 sps:$4 sm:$0xff]  }
 0x44b   :  { %v1647_v6 = vpop.f32.mrf.mxu0  ;;  %v1692_v58 = vpop.f32.mrf.mxu1 }
 0x44c   :  { %v1648_v14 = vadd.f32 %v1647_v6, %v1122_v8  ;;  %v1689_v61 = vadd.f32 %v1688_v0, %v1646_v13  ;;  %v4700_v6 = vld [vmem:[%s6398_s4 + $0x284] ss:$24 sps:$4 sm:$0xff]   ;;  %v4703_v0 = vld [vmem:[%s6398_s4 + $0x254] ss:$24 sps:$4 sm:$0xff]   ;;  %v4701_v8 = vld [vmem:[%s6398_s4 + $0x250] ss:$24 sps:$4 sm:$0xff]  }
 0x44d   :  { %v1649_v10 = vpop.f32.mrf.mxu0  ;;  %v4704_v13 = vld [vmem:[%s6398_s4 + $0x220] ss:$24 sps:$4 sm:$0xff]  }
 0x44e   :  { %v1650_v19 = vadd.f32 %v1649_v10, %v1126_v7  ;;  %v1691_v21 = vadd.f32 %v1690_v16, %v1648_v14  ;;  %v4698_v7 = vld [vmem:[%s6398_s4 + $0x280] ss:$24 sps:$4 sm:$0xff]   ;;  %v4706_v10 = vld [vmem:[%s6398_s4 + $0x224] ss:$24 sps:$4 sm:$0xff]   ;;  %v4709_v14 = vld [vmem:[%s6398_s4 + $0x1f4] ss:$24 sps:$4 sm:$0xff]  }
 0x44f   :  { %v4712_v16 = vld [vmem:[%s6398_s4 + $0x1c4] ss:$24 sps:$4 sm:$0xff]  }
 0x450   :  { %v1693_v2 = vadd.f32 %v1692_v58, %v1650_v19  ;;  %v4715_v19 = vld [vmem:[%s6398_s4 + $0x194] ss:$24 sps:$4 sm:$0xff]  }
 0x487   :  { %v1729_v18 = vpop.f32.mrf.mxu0 }
 0x488   :  { %v1730_v30 = vadd.f32 %v1729_v18, %v1687_v9  ;;  %v4710_v18 = vld [vmem:[%s6398_s4 + $0x1c0] ss:$24 sps:$4 sm:$0xff]  }
 0x489   :  { %v1731_v20 = vpop.f32.mrf.mxu0 }
 0x48a   :  { %v1732_v27 = vadd.f32 %v1731_v20, %v1689_v61  ;;  %v1738_v24 = vmax.f32 %v1730_v30, 0.0  ;;  %v4713_v20 = vld [vmem:[%s6398_s4 + $0x190] ss:$24 sps:$4 sm:$0xff]   ;;  %v4041_v30 = vld [vmem:[%s6401_s14 + $0x20] sm:$0xff] }
 0x48b   :  { %v1733_v22 = vpop.f32.mrf.mxu0 }
 0x48c   :  { %v1734_v49 = vadd.f32 %v1733_v22, %v1691_v21  ;;  %v1739_v33 = vmax.f32 %v1732_v27, 0.0 }
 0x48d   :  { %v1735_v62 = vpop.f32.mrf.mxu0 }
 0x48e   :  { %v1736_v32 = vadd.f32 %v1735_v62, %v1693_v2  ;;  %v1740_v17 = vmax.f32 %v1734_v49, 0.0  ;;  %v4044_v2 = vld [vmem:[%s6401_s14 + $0x38] sm:$0xff] }
 0x490   :  { %v1741_v37 = vmax.f32 %v1736_v32, 0.0  ;;  %v5877_v4 = vpack.c.bf16 %v1740_v17, %v1738_v24  ;;  %v2449_v32 = vld [vmem:[%s6401_s14] sm:$0xff]  ;;  %v4042_v17 = vld [vmem:[%s6401_s14 + $0x28] sm:$0xff]  ;;  %v2451_v24 = vld [vmem:[%s6401_s14 + $0x10] sm:$0xff] }
 0x492   :  { %v1743_v44 = vpack.c.bf16 %v1741_v37, %v1739_v33  ;;  %v2450_v33 = vld [vmem:[%s6401_s14 + $0x8] sm:$0xff]  ;;  %v4043_v37 = vld [vmem:[%s6401_s14 + $0x30] sm:$0xff] }
 0x494   :  { %2352 = vmatprep.mubr.bf16.mxu1 %v1743_v44  ;;  %2395 = vmatprep.mubr.bf16.mxu0 %v1743_v44 }
 0x495   :  { %2353 = vmatmul.mubr.bf16.vlgmr.msra.gmra.mxu1 %v5877_v4  ;;  %2396 = vmatmul.mubr.bf16.vlgmr.msra.gmra.mxu0 %v5877_v4 }
 0x496   :  { %2407 = vmatpush1.bf16.msra.mxu1 %v4668_v45  ;;  %2438 = vmatprep.mubr.bf16.mxu1 %v1743_v44  ;;  %v2452_v44 = vld [vmem:[%s6401_s14 + $0x18] sm:$0xff] }
 0x497   :  { %2408 = vmatprep.subr.bf16.mxu1 %v4673_v3  ;;  %2534 = vmatprep.mubr.f32.mxu0 %v4809_v1 }
 0x49a   :  { %2409 = vmatpush1.bf16.msra.mxu1 %v4671_v5 }
 0x49b   :  { %2410 = vmatprep.subr.bf16.mxu1 %v4676_v38  ;;  %v4716_v38 = vld [vmem:[%s6400_s5 + $0xf8] sm:$0xff]  }
 0x49e   :  { %2411 = vmatpush1.bf16.msra.mxu1 %v4674_v39  ;;  %v4053_v39 = vld [vmem:[%s6401_s14 + $0x40] sm:$0xff] }
 0x49f   :  { %2412 = vmatprep.subr.bf16.mxu1 %v4679_v40  ;;  %v4717_v40 = vld [vmem:[%s6400_s5 + $0xb8] sm:$0xff]  }
 0x4a2   :  { %2413 = vmatpush1.bf16.msra.mxu1 %v4677_v46  ;;  %v4054_v46 = vld [vmem:[%s6401_s14 + $0x48] sm:$0xff] }
 0x4a3   :  { %2414 = vmatprep.subr.bf16.mxu1 %v4682_v47  ;;  %v4718_v47 = vld [vmem:[%s6400_s5 + $0xf0] sm:$0xff]  }
 0x4a6   :  { %2415 = vmatpush1.bf16.msra.mxu1 %v4680_v50  ;;  %v4055_v50 = vld [vmem:[%s6401_s14 + $0x50] sm:$0xff] }
 0x4a7   :  { %2416 = vmatprep.subr.bf16.mxu1 %v4685_v51  ;;  %v4719_v51 = vld [vmem:[%s6400_s5 + $0xb0] sm:$0xff]  }
 0x4aa   :  { %2417 = vmatpush1.bf16.msra.mxu1 %v4683_v53  ;;  %v4720_v53 = vld [vmem:[%s6400_s5 + $0xe8] sm:$0xff]  }
 0x4ab   :  { %2418 = vmatprep.subr.bf16.mxu1 %v4688_v54  ;;  %v4056_v54 = vld [vmem:[%s6401_s14 + $0x58] sm:$0xff] }
 0x4ae   :  { %2419 = vmatpush1.bf16.msra.mxu1 %v4686_v56  ;;  %v4721_v56 = vld [vmem:[%s6400_s5 + $0xa8] sm:$0xff]  }
 0x4af   :  { %2420 = vmatprep.subr.bf16.mxu1 %v4691_v57  ;;  %v4722_v57 = vld [vmem:[%s6400_s5 + $0x78] sm:$0xff]  }
 0x4b2   :  { %2421 = vmatpush1.bf16.msra.mxu1 %v4689_v59  ;;  %v4723_v59 = vld [vmem:[%s6400_s5 + $0x38] sm:$0xff]  }
 0x4b3   :  { %2422 = vmatprep.subr.bf16.mxu1 %v4694_v60  ;;  %v4725_v60 = vld [vmem:[%s6400_s5 + $0xa0] sm:$0xff]  }
 0x4b6   :  { %2423 = vmatpush2.bf16.msra.mxu1 %v4692_v29  ;;  %v4726_v29 = vld [vmem:[%s6400_s5 + $0x70] sm:$0xff]  }
 0x4b7   :  { %2424 = vmatprep.subr.bf16.mxu1 %v4697_v63  ;;  %v4727_v63 = vld [vmem:[%s6400_s5 + $0x30] sm:$0xff]  }
 0x4ba   :  { %2425 = vmatpush2.bf16.msra.mxu1 %v4695_v28  ;;  %v4728_v28 = vld [vmem:[%s6400_s5 + $0xd8] sm:$0xff]  }
 0x4bb   :  { %2426 = vmatprep.subr.bf16.mxu1 %v4700_v6  ;;  %v4729_v6 = vld [vmem:[%s6400_s5 + $0x98] sm:$0xff]  }
 0x4be   :  { %2427 = vmatpush2.bf16.msra.mxu1 %v4698_v7  ;;  %v4730_v7 = vld [vmem:[%s6400_s5 + $0x68] sm:$0xff]  }
 0x4bf   :  { %2428 = vmatprep.subr.bf16.mxu1 %v4703_v0  ;;  %v4731_v0 = vld [vmem:[%s6400_s5 + $0x28] sm:$0xff]  }
 0x4c2   :  { %2429 = vmatpush2.bf16.msra.mxu1 %v4701_v8  ;;  %v4732_v8 = vld [vmem:[%s6400_s5 + $0xd0] sm:$0xff]  }
 0x4c3   :  { %2430 = vmatprep.subr.bf16.mxu1 %v4706_v10  ;;  %v4733_v10 = vld [vmem:[%s6400_s5 + $0x90] sm:$0xff]  }
 0x4c6   :  { %2431 = vmatpush2.bf16.msra.mxu1 %v4704_v13  ;;  %v4734_v13 = vld [vmem:[%s6400_s5 + $0x60] sm:$0xff]  }
 0x4c7   :  { %2432 = vmatprep.subr.bf16.mxu1 %v4709_v14  ;;  %v4735_v14 = vld [vmem:[%s6400_s5 + $0x20] sm:$0xff]  }
 0x4ca   :  { %2433 = vmatpush2.bf16.msra.mxu1 %v4707_v15  ;;  %v4736_v15 = vld [vmem:[%s6400_s5 + $0xc8] sm:$0xff]  }
 0x4cb   :  { %2434 = vmatprep.subr.bf16.mxu1 %v4712_v16  ;;  %v4737_v16 = vld [vmem:[%s6400_s5 + $0x88] sm:$0xff]  }
 0x4ce   :  { %2435 = vmatpush2.bf16.msra.mxu1 %v4710_v18  ;;  %v4738_v18 = vld [vmem:[%s6400_s5 + $0x58] sm:$0xff]  }
 0x4cf   :  { %2436 = vmatprep.subr.bf16.mxu1 %v4715_v19  ;;  %v4739_v19 = vld [vmem:[%s6400_s5 + $0x18] sm:$0xff]  }
 0x4d2   :  { %2437 = vmatpush2.bf16.msra.mxu1 %v4713_v20  ;;  %v4740_v20 = vld [vmem:[%s6400_s5 + $0xc0] sm:$0xff]  }
 0x4d5   :  { %2439 = vmatmul.mubr.bf16.vlgmr.msra.gmra.mxu1 %v5877_v4 }
 0x4d6   :  { %2552 = vmatprep.mubr.f32.mxu1 %v4809_v1 }
 0x555   :  { %v2354_v61 = vpop.f32.mrf.mxu1  ;;  %v2397_v21 = vpop.f32.mrf.mxu0 }
 0x557   :  { %v2356_v58 = vpop.f32.mrf.mxu1  ;;  %v2399_v9 = vpop.f32.mrf.mxu0 }
 0x559   :  { %v2401_v22 = vpop.f32.mrf.mxu0  ;;  %v2358_v27 = vpop.f32.mrf.mxu1 }
 0x55b   :  { %v2403_v49 = vpop.f32.mrf.mxu0  ;;  %v2360_v62 = vpop.f32.mrf.mxu1 }
 0x55c   :  { %2498 = vmatprep.subr.mxu0 %v2403_v49  ;;  %4317 = vmatprep.subr.mxu1 %v2403_v49  ;;  %v4747_v49 = vld [vmem:[%s6400_s5] sm:$0xff]  }
 0x55d   :  { %2499 = vmatpush1.msra.mxu0 %v2401_v22  ;;  %4319 = vmatpush1.msra.mxu1 %v2401_v22  ;;  %v4745_v22 = vld [vmem:[%s6400_s5 + $0x8] sm:$0xff]  }
 0x55e   :  { %2500 = vmatprep.subr.mxu0 %v2399_v9  ;;  %4318 = vmatprep.subr.mxu1 %v2399_v9  ;;  %v4744_v9 = vld [vmem:[%s6400_s5 + $0x48] sm:$0xff]  }
 0x55f   :  { %2501 = vmatpush1.msra.mxu0 %v2397_v21  ;;  %4320 = vmatpush1.msra.mxu1 %v2397_v21  ;;  %v4742_v21 = vld [vmem:[%s6400_s5 + $0x50] sm:$0xff]  }
 0x560   :  { %2599 = vmatprep.subr.mxu1 %v2360_v62  ;;  %4048 = vmatmul.mubr.msk.f32.vlgmr.msra.gmra.mxu1 %vm311_vm8, %v4044_v2  ;;  %v4748_v2 = vld [vmem:[%s6400_s5 + $0x178] sm:$0xff]  }
 0x561   :  { %2600 = vmatpush1.msra.mxu1 %v2358_v27  ;;  %4045 = vmatmul.mubr.msk.f32.vlgmr.msra.gmra.mxu0 %vm311_vm8, %v4041_v30  ;;  %v4746_v27 = vld [vmem:[%s6400_s5 + $0x40] sm:$0xff]  }
 0x562   :  { %2601 = vmatprep.subr.mxu1 %v2356_v58  ;;  %2635 = vmatprep.mubr.f32.mxu1 %v4809_v1  ;;  %v4743_v58 = vld [vmem:[%s6400_s5 + $0x10] sm:$0xff]  }
 0x563   :  { %2602 = vmatpush1.msra.mxu1 %v2354_v61  ;;  %2540 = vmatprep.mubr.f32.mxu0 %v4809_v1  ;;  %v4741_v61 = vld [vmem:[%s6400_s5 + $0x80] sm:$0xff]  }
 0x564   :  { %4049 = vmatmul.mubr.msk.f32.vlgmr.msra.gmra.mxu1 %vm311_vm8, %v2449_v32  ;;  %4175 = vmatprep.subr.bf16.mxu1 %v4722_v57 }
 0x565   :  { %4046 = vmatmul.mubr.msk.f32.gmra.mxu0 %vm311_vm8, %v4042_v17  ;;  %2641 = vmatprep.mubr.f32.mxu1 %v4809_v1 }
 0x566   :  { %2546 = vmatprep.mubr.f32.mxu0 %v4809_v1  ;;  %4176 = vmatpush3.bf16.msra.mxu1 %v4723_v59 }
 0x567   :  { %4177 = vmatprep.subr.bf16.mxu1 %v4726_v29 }
 0x568   :  { %4050 = vmatmul.mubr.msk.f32.gmra.mxu1 %vm311_vm8, %v2450_v33 }
 0x569   :  { %4047 = vmatmul.mubr.msk.f32.gmra.mxu0 %vm311_vm8, %v4043_v37  ;;  %2647 = vmatprep.mubr.f32.mxu1 %v4809_v1 }
 0x56a   :  { %2741 = vmatprep.mubr.f32.mxu0 %v4809_v1  ;;  %4178 = vmatpush3.bf16.msra.mxu1 %v4727_v63 }
 0x56b   :  { %4179 = vmatprep.subr.bf16.mxu1 %v4730_v7 }
 0x56c   :  { %4051 = vmatmul.mubr.msk.f32.gmra.mxu1 %vm311_vm8, %v2451_v24 }
 0x56d   :  { %2653 = vmatprep.mubr.f32.mxu1 %v4809_v1 }
 0x56e   :  { %4180 = vmatpush3.bf16.msra.mxu1 %v4731_v0 }
 0x56f   :  { %4181 = vmatprep.subr.bf16.mxu1 %v4734_v13 }
 0x570   :  { %4052 = vmatmul.mubr.msk.f32.gmra.mxu1 %vm311_vm8, %v2452_v44 }
 0x572   :  { %4182 = vmatpush3.bf16.msra.mxu1 %v4735_v14 }
 0x573   :  { %4183 = vmatprep.subr.bf16.mxu1 %v4738_v18 }
 0x576   :  { %4184 = vmatpush3.bf16.msra.mxu1 %v4739_v19 }
 0x577   :  { %4185 = vmatprep.subr.bf16.mxu1 %v4742_v21 }
 0x57a   :  { %4186 = vmatpush3.bf16.msra.mxu1 %v4743_v58 }
 0x57b   :  { %4187 = vmatprep.subr.bf16.mxu1 %v4744_v9 }
 0x57e   :  { %4188 = vmatpush3.bf16.msra.mxu1 %v4745_v22 }
 0x57f   :  { %4189 = vmatprep.subr.bf16.mxu1 %v4746_v27 }
 0x582   :  { %4190 = vmatpush3.bf16.msra.mxu1 %v4747_v49 }
 0x583   :  { %4231 = vmatprep.subr.bf16.mxu1 %v4748_v2 }
 0x595   :  { %v2440_v45 = vpop.f32.mrf.mxu1 }
 0x597   :  { %v2442_v4 = vpop.f32.mrf.mxu1 }
 0x599   :  { %v2444_v3 = vpop.f32.mrf.mxu1 }
 0x59b   :  { %v2446_v5 = vpop.f32.mrf.mxu1 }
 0x59c   :  { %2705 = vmatprep.subr.mxu0 %v2446_v5 }
 0x59d   :  { %2706 = vmatpush1.msra.mxu0 %v2444_v3 }
 0x59e   :  { %2707 = vmatprep.subr.mxu0 %v2442_v4 }
 0x59f   :  { %2708 = vmatpush1.msra.mxu0 %v2440_v45 }
 0x5a0   :  { %4057 = vmatmul.mubr.msk.f32.vlgmr.msra.gmra.mxu0 %vm311_vm8, %v4053_v39  ;;  %4203 = vmatprep.subr.bf16.mxu0 %v4716_v38 }
 0x5a1   :  { %2747 = vmatprep.mubr.f32.mxu0 %v4809_v1  ;;  %4204 = vmatpush3.bf16.msra.mxu0 %v4717_v40 }
 0x5a2   :  { %4205 = vmatprep.subr.bf16.mxu0 %v4718_v47  ;;  %v2774_v47 = vld [vmem:[%s6402_s10] sm:$0x3] }
 0x5a4   :  { %4058 = vmatmul.mubr.msk.f32.gmra.mxu0 %vm311_vm8, %v4054_v46 }
 0x5a5   :  { %2753 = vmatprep.mubr.f32.mxu0 %v4809_v1  ;;  %4206 = vmatpush3.bf16.msra.mxu0 %v4719_v51 }
 0x5a6   :  { %4207 = vmatprep.subr.bf16.mxu0 %v4720_v53 }
 0x5a8   :  { %4059 = vmatmul.mubr.msk.f32.gmra.mxu0 %vm311_vm8, %v4055_v50 }
 0x5a9   :  { %2759 = vmatprep.mubr.f32.mxu0 %v4809_v1  ;;  %4208 = vmatpush3.bf16.msra.mxu0 %v4721_v56  ;;  %v4724_v1 = vld [vmem:[%s6400_s5 + $0xe0] sm:$0xff]   ;;  %v2783_v56 = vrot.slane %v2774_v47, %v5212_v55 }
 0x5aa   :  { %4209 = vmatprep.subr.bf16.mxu0 %v4724_v1  ;;  %v2779_v1 = vrot.slane %v2774_v47, %v5206_v52 }
 0x5ac   :  { %4060 = vmatmul.mubr.msk.f32.gmra.mxu0 %vm311_vm8, %v4056_v54 }
 0x5ad   :  { %4210 = vmatpush3.bf16.msra.mxu0 %v4725_v60 }
 0x5ae   :  { %4211 = vmatprep.subr.bf16.mxu0 %v4728_v28 }
 0x5b1   :  { %4212 = vmatpush3.bf16.msra.mxu0 %v4729_v6 }
 0x5b2   :  { %4213 = vmatprep.subr.bf16.mxu0 %v4732_v8 }
 0x5b5   :  { %4214 = vmatpush3.bf16.msra.mxu0 %v4733_v10 }
 0x5b6   :  { %4215 = vmatprep.subr.bf16.mxu0 %v4736_v15 }
 0x5b9   :  { %4216 = vmatpush3.bf16.msra.mxu0 %v4737_v16 }
 0x5ba   :  { %4217 = vmatprep.subr.bf16.mxu0 %v4740_v20 }
 0x5bd   :  { %4218 = vmatpush3.bf16.msra.mxu0 %v4741_v61 }
 0x620   :  { %v2554_v30 = vpop.f32.mrf.mxu1 }
 0x621   :  { %v2536_v32 = vpop.f32.mrf.mxu0 }
 0x622   :  { %v2556_v62 = vpop.f32.mrf.mxu1 }
 0x623   :  { %v2538_v33 = vpop.f32.mrf.mxu0 }
 0x624   :  { %v2637_v17 = vpop.f32.mrf.mxu1 }
 0x625   :  { %v2542_v24 = vpop.f32.mrf.mxu0  ;;  %v2638_v51 = vadd.f32 %v2637_v17, %v2536_v32 }
 0x626   :  { %v2639_v37 = vpop.f32.mrf.mxu1 }
 0x627   :  { %v2544_v45 = vpop.f32.mrf.mxu0  ;;  %v2640_v40 = vadd.f32 %v2639_v37, %v2538_v33 }
 0x628   :  { %v2643_v44 = vpop.f32.mrf.mxu1 }
 0x629   :  { %v2548_v3 = vpop.f32.mrf.mxu0  ;;  %v2644_v53 = vadd.f32 %v2643_v44, %v2542_v24 }
 0x62a   :  { %v2645_v4 = vpop.f32.mrf.mxu1 }
 0x62b   :  { %v2550_v38 = vpop.f32.mrf.mxu0  ;;  %v2646_v29 = vadd.f32 %v2645_v4, %v2544_v45 }
 0x62c   :  { %v2649_v5 = vpop.f32.mrf.mxu1 }
 0x62d   :  { %v2650_v18 = vadd.f32 %v2649_v5, %v2548_v3 }
 0x62e   :  { %v2651_v46 = vpop.f32.mrf.mxu1 }
 0x62f   :  { %v2652_v13 = vadd.f32 %v2651_v46, %v2550_v38 }
 0x630   :  { %v2655_v63 = vpop.f32.mrf.mxu1 }
 0x631   :  { %v2656_v19 = vadd.f32 %v2655_v63, %v2554_v30 }
 0x632   :  { %v2657_v14 = vpop.f32.mrf.mxu1 }
 0x633   :  { %v2658_v9 = vadd.f32 %v2657_v14, %v2556_v62 }
 0x660   :  { %v2743_v39 = vpop.f32.mrf.mxu0 }
 0x661   :  { %v2766_v59 = vadd.f32 %v2743_v39, %v2638_v51 }
 0x662   :  { %v2745_v50 = vpop.f32.mrf.mxu0 }
 0x663   :  { %v2767_v54 = vadd.f32 %v2745_v50, %v2640_v40  ;;  %v2786_v10 = vadd.f32 %v2779_v1, %v2766_v59  ;;  %v4749_v50 = vld [vmem:[%s6400_s5 + $0x138] sm:$0xff]  }
 0x664   :  { %v2749_v57 = vpop.f32.mrf.mxu0 }
 0x665   :  { %v2768_v60 = vadd.f32 %v2749_v57, %v2644_v53  ;;  %v2787_v7 = vadd.f32 %v2783_v56, %v2767_v54  ;;  %v6146_v58 = vadd.f32 %v2786_v10, %v5216_v23  ;;  %v4750_v54 = vld [vmem:[%s6400_s5 + $0x170] sm:$0xff]  }
 0x666   :  { %v2751_v28 = vpop.f32.mrf.mxu0 }
 0x667   :  { %v2788_v6 = vadd.f32 %v2779_v1, %v2768_v60  ;;  %v2769_v0 = vadd.f32 %v2751_v28, %v2646_v29  ;;  %v6140_v52 = vadd.f32 %v2787_v7, %v5220_v31  ;;  %v2802_v44 = vrot.slane %v6146_v58, 7  ;;  %v4752_v29 = vld [vmem:[%s6400_s5 + $0x168] sm:$0xff]  }
 0x668   :  { %v2755_v8 = vpop.f32.mrf.mxu0 }
 0x669   :  { %v2789_v15 = vadd.f32 %v2783_v56, %v2769_v0  ;;  %v6137_v55 = vadd.f32 %v2788_v6, %v5226_v25  ;;  %v2770_v22 = vadd.f32 %v2755_v8, %v2650_v18  ;;  %v2803_v45 = vrot.slane %v6140_v52, 7  ;;  %v4753_v0 = vld [vmem:[%s6400_s5 + $0x128] sm:$0xff]   ;;  %v4757_v18 = vld [vmem:[%s6400_s5 + $0x118] sm:$0xff]  }
 0x66a   :  { %v2757_v16 = vpop.f32.mrf.mxu0  ;;  %v2827_v28 = vrot.slane %v6140_v52, 1 }
 0x66b   :  { %v6143_v20 = vadd.f32 %v2789_v15, %v5234_v43  ;;  %v2771_v61 = vadd.f32 %v2757_v16, %v2652_v13  ;;  %v2852_v31 = vpack.c.bf16 %v6137_v55, %v6146_v58  ;;  %v2790_v43 = vadd.f32 %v2779_v1, %v2770_v22  ;;  %v4754_v13 = vld [vmem:[%s6400_s5 + $0x160] sm:$0xff]   ;;  %v4756_v16 = vld [vmem:[%s6400_s5 + $0x158] sm:$0xff]  }
 0x66c   :  { %v2761_v21 = vpop.f32.mrf.mxu0  ;;  %v2804_v4 = vrot.slane %v6137_v55, 7  ;;  %v4755_v15 = vld [vmem:[%s6400_s5 + $0x120] sm:$0xff]  }
 0x66d   :  { %v2772_v27 = vadd.f32 %v2761_v21, %v2656_v19  ;;  %v2791_v49 = vadd.f32 %v2783_v56, %v2771_v61  ;;  %v2853_v25 = vpack.c.bf16 %v6143_v20, %v6140_v52  ;;  %v2805_v33 = vrot.slane %v6143_v20, 7  ;;  %v4758_v19 = vld [vmem:[%s6400_s5 + $0x150] sm:$0xff]   ;;  %v4761_v61 = vld [vmem:[%s6400_s5 + $0x108] sm:$0xff]   ;;  %v4762_v21 = vld [vmem:[%s6400_s5 + $0x140] sm:$0xff]  }
 0x66e   :  { %v2763_v2 = vpop.f32.mrf.mxu0  ;;  %v2814_v46 = vsel %vm148_vm0, %v2802_v44, %v2804_v4  ;;  %v2829_v60 = vrot.slane %v6143_v20, 1  ;;  %v4759_v52 = vld [vmem:[%s6400_s5 + $0x110] sm:$0xff]   ;;  %v4760_v20 = vld [vmem:[%s6400_s5 + $0x148] sm:$0xff]  }
 0x66f   :  { %v2792_v30 = vadd.f32 %v2779_v1, %v2772_v27  ;;  %v2773_v32 = vadd.f32 %v2763_v2, %v2658_v9  ;;  %3334 = vmatprep.mubr.bf16.mxu0 %v2853_v25  ;;  %v6153_v17 = vadd.f32 %v2791_v49, %v5222_v34  ;;  %v6167_v34 = vadd.f32 %v2790_v43, %v5218_v26  ;;  %v4751_v1 = vld [vmem:[%s6400_s5 + $0x130] sm:$0xff]   ;;  %v4763_v49 = vld [vmem:[%s6400_s5 + $0x100] sm:$0xff]  }
 0x670   :  { %3335 = vmatmul.mubr.bf16.vlgmr.msra.gmra.mxu0 %v2852_v31  ;;  %v2815_v39 = vsel %vm148_vm0, %v2803_v45, %v2805_v33  ;;  %v2839_v10 = vsel %vm169_vm1, %v2827_v28, %v2829_v60  ;;  %v2828_v27 = vrot.slane %v6137_v55, 1  ;;  %v2826_v2 = vrot.slane %v6146_v58, 1 }
 0x671   :  { %v6156_v23 = vadd.f32 %v2792_v30, %v5224_v36  ;;  %v2793_v62 = vadd.f32 %v2783_v56, %v2773_v32  ;;  %v2807_v36 = vrot.slane %v6153_v17, 7  ;;  %v2831_v57 = vrot.slane %v6153_v17, 1 }
 0x672   :  { %v2806_v59 = vrot.slane %v6167_v34, 7  ;;  %v2830_v9 = vrot.slane %v6167_v34, 1  ;;  %v2838_v55 = vsel %vm169_vm1, %v2826_v2, %v2828_v27 }
 0x673   :  { %v2808_v37 = vrot.slane %v6156_v23, 7  ;;  %v6161_v24 = vadd.f32 %v2793_v62, %v5231_v42  ;;  %v2858_v38 = vpack.c.bf16 %v6156_v23, %v6167_v34  ;;  %v2813_v53 = vsel %vm148_vm0, %v2805_v33, %v2807_v36  ;;  %v4770_v34 = vld [vmem:[%s6403_s6 + $0x68] sm:$0xff]  }
 0x674   :  { %v2837_v6 = vsel %vm169_vm1, %v2829_v60, %v2831_v57  ;;  %v2812_v7 = vsel %vm148_vm0, %v2804_v4, %v2806_v59  ;;  %v2836_v25 = vsel %vm169_vm1, %v2828_v27, %v2830_v9  ;;  %v2832_v43 = vrot.slane %v6156_v23, 1  ;;  %v4764_v23 = vld [vmem:[%s6403_s6 + $0x78] sm:$0xff]   ;;  %v4769_v4 = vld [vmem:[%s6403_s6 + $0x30] sm:$0xff]  }
 0x675   :  { %v2809_v3 = vrot.slane %v6161_v24, 7  ;;  %v2859_v5 = vpack.c.bf16 %v6161_v24, %v6153_v17  ;;  %v2816_v42 = vsel %vm148_vm0, %v2808_v37, %v2802_v44  ;;  %v2810_v63 = vsel %vm148_vm0, %v2806_v59, %v2808_v37  ;;  %v4765_v37 = vld [vmem:[%s6403_s6 + $0xb8] sm:$0xff]   ;;  %4259 = vmatprep.subr.bf16.mxu0 %v4764_v23  ;;  %v4767_v44 = vld [vmem:[%s6403_s6 + $0x70] sm:$0xff]   ;;  %v4787_v59 = vld [vmem:[%s6403_s6] sm:$0xff]  }
 0x676   :  { %v4114_v51 = vpack.c.bf16 %v2814_v46, %v2816_v42  ;;  %v4120_v8 = vpack.c.bf16 %v2810_v63, %v2812_v7  ;;  %v4123_v14 = vpack.c.bf16 %v2837_v6, %v2839_v10  ;;  %v2833_v22 = vrot.slane %v6161_v24, 1  ;;  %v4766_v24 = vld [vmem:[%s6403_s6 + $0x38] sm:$0xff]   ;;  %v4774_v42 = vld [vmem:[%s6403_s6 + $0xa0] sm:$0xff]   ;;  %v4779_v46 = vld [vmem:[%s6403_s6 + $0x50] sm:$0xff]  }
 0x677   :  { %3342 = vmatprep.mubr.bf16.mxu0 %v2859_v5  ;;  %v2817_v26 = vsel %vm148_vm0, %v2809_v3, %v2803_v45  ;;  %v2811_v40 = vsel %vm148_vm0, %v2807_v36, %v2809_v3  ;;  %v4126_v32 = vpack.c.bf16 %v2836_v25, %v2838_v55  ;;  %v2834_v58 = vsel %vm169_vm1, %v2830_v9, %v2832_v43  ;;  %v4768_v45 = vld [vmem:[%s6403_s6 + $0xb0] sm:$0xff]   ;;  %v4771_v36 = vld [vmem:[%s6403_s6 + $0xa8] sm:$0xff]   ;;  %v4773_v5 = vld [vmem:[%s6403_s6 + $0x60] sm:$0xff]  }
 0x678   :  { %v4111_v47 = vpack.c.bf16 %v2815_v39, %v2817_v26  ;;  %3343 = vmatmul.mubr.bf16.gmra.mxu0 %v2858_v38  ;;  %v4117_v56 = vpack.c.bf16 %v2811_v40, %v2813_v53  ;;  %v2835_v31 = vsel %vm169_vm1, %v2831_v57, %v2833_v22  ;;  %v2841_v30 = vsel %vm169_vm1, %v2833_v22, %v2827_v28  ;;  %v4772_v3 = vld [vmem:[%s6403_s6 + $0x28] sm:$0xff]   ;;  %v4775_v38 = vld [vmem:[%s6403_s6 + $0x20] sm:$0xff]   ;;  %v4776_v39 = vld [vmem:[%s6403_s6 + $0x58] sm:$0xff]  }
 0x679   :  { %v4129_v17 = vpack.c.bf16 %v2841_v30, %v2835_v31  ;;  %v2840_v62 = vsel %vm169_vm1, %v2832_v43, %v2826_v2  ;;  %4260 = vmatpush3.bf16.msra.mxu0 %v4766_v24  ;;  %v4777_v26 = vld [vmem:[%s6403_s6 + $0x98] sm:$0xff]   ;;  %v4783_v53 = vld [vmem:[%s6403_s6 + $0x88] sm:$0xff]   ;;  %v4786_v57 = vld [vmem:[%s6403_s6 + $0x80] sm:$0xff]  }
 0x67a   :  { %4112 = vmatprep.mubr.msk.bf16.mxu1 %vm5172_vm11, %v4111_v47  ;;  %v4132_v33 = vpack.c.bf16 %v2840_v62, %v2834_v58  ;;  %4261 = vmatprep.subr.bf16.mxu0 %v4767_v44  ;;  %v4778_v40 = vld [vmem:[%s6403_s6 + $0x18] sm:$0xff]   ;;  %v4780_v47 = vld [vmem:[%s6403_s6 + $0x90] sm:$0xff]  }
 0x67b   :  { %4115 = vmatmul.mubr.msk.bf16.vlgmr.msra.gmra.mxu1 %vm5172_vm11, %v4114_v51  ;;  %v4782_v51 = vld [vmem:[%s6403_s6 + $0x48] sm:$0xff]  }
 0x67c   :  { %4232 = vmatpush3.bf16.msra.mxu1 %v4749_v50  ;;  %4118 = vmatprep.mubr.msk.bf16.mxu1 %vm5199_vm13, %v4117_v56  ;;  %v4781_v50 = vld [vmem:[%s6403_s6 + $0x10] sm:$0xff]   ;;  %v4785_v56 = vld [vmem:[%s6403_s6 + $0x40] sm:$0xff]  }
 0x67d   :  { %4233 = vmatprep.subr.bf16.mxu1 %v4750_v54  ;;  %4262 = vmatpush3.bf16.msra.mxu0 %v4769_v4  ;;  %v4784_v54 = vld [vmem:[%s6403_s6 + $0x8] sm:$0xff]  }
 0x67e   :  { %4263 = vmatprep.subr.bf16.mxu0 %v4770_v34 }
 0x680   :  { %4234 = vmatpush3.bf16.msra.mxu1 %v4751_v1 }
 0x681   :  { %4235 = vmatprep.subr.bf16.mxu1 %v4752_v29  ;;  %4264 = vmatpush3.bf16.msra.mxu0 %v4772_v3 }
 0x682   :  { %4265 = vmatprep.subr.bf16.mxu0 %v4773_v5 }
 0x683   :  { %4121 = vmatmul.mubr.msk.bf16.gmra.mxu1 %vm5199_vm13, %v4120_v8 }
 0x684   :  { %4236 = vmatpush3.bf16.msra.mxu1 %v4753_v0  ;;  %4124 = vmatprep.mubr.msk.bf16.mxu1 %vm5159_vm10, %v4123_v14 }
 0x685   :  { %4237 = vmatprep.subr.bf16.mxu1 %v4754_v13  ;;  %4266 = vmatpush3.bf16.msra.mxu0 %v4775_v38 }
 0x686   :  { %4267 = vmatprep.subr.bf16.mxu0 %v4776_v39 }
 0x688   :  { %4238 = vmatpush3.bf16.msra.mxu1 %v4755_v15 }
 0x689   :  { %4239 = vmatprep.subr.bf16.mxu1 %v4756_v16  ;;  %4268 = vmatpush3.bf16.msra.mxu0 %v4778_v40  ;;  %v4061_v16 = vld [vmem:[%s6404_s11] ss:$0 sm:$0xff] }
 0x68a   :  { %4269 = vmatprep.subr.bf16.mxu0 %v4779_v46 }
 0x68c   :  { %4240 = vmatpush3.bf16.msra.mxu1 %v4757_v18 }
 0x68d   :  { %4241 = vmatprep.subr.bf16.mxu1 %v4758_v19  ;;  %4270 = vmatpush3.bf16.msra.mxu0 %v4781_v50 }
 0x68e   :  { %4271 = vmatprep.subr.bf16.mxu0 %v4782_v51 }
 0x690   :  { %4242 = vmatpush3.bf16.msra.mxu1 %v4759_v52 }
 0x691   :  { %4243 = vmatprep.subr.bf16.mxu1 %v4760_v20  ;;  %4272 = vmatpush3.bf16.msra.mxu0 %v4784_v54 }
 0x692   :  { %4273 = vmatprep.subr.bf16.mxu0 %v4785_v56 }
 0x694   :  { %4244 = vmatpush3.bf16.msra.mxu1 %v4761_v61 }
 0x695   :  { %4245 = vmatprep.subr.bf16.mxu1 %v4762_v21  ;;  %4274 = vmatpush3.bf16.msra.mxu0 %v4787_v59 }
 0x698   :  { %4246 = vmatpush3.bf16.msra.mxu1 %v4763_v49 }
 0x699   :  { %4297 = vmatprep.subr.bf16.mxu1 %v4765_v37 }
 0x69b   :  { %4127 = vmatmul.mubr.msk.bf16.vlgmr.msra.gmra.mxu1 %vm5159_vm10, %v4126_v32 }
 0x69c   :  { %4130 = vmatprep.mubr.msk.bf16.mxu1 %vm5186_vm12, %v4129_v17  ;;  %4298 = vmatpush3.bf16.msra.mxu1 %v4765_v37 }
 0x69d   :  { %4299 = vmatprep.subr.bf16.mxu1 %v4768_v45 }
 0x6a0   :  { %4300 = vmatpush3.bf16.msra.mxu1 %v4768_v45 }
 0x6a1   :  { %4301 = vmatprep.subr.bf16.mxu1 %v4771_v36 }
 0x6a3   :  { %4133 = vmatmul.mubr.msk.bf16.gmra.mxu1 %vm5186_vm12, %v4132_v33 }
 0x6a4   :  { %4302 = vmatpush3.bf16.msra.mxu1 %v4771_v36 }
 0x6a5   :  { %4303 = vmatprep.subr.bf16.mxu1 %v4774_v42 }
 0x6a8   :  { %4304 = vmatpush3.bf16.msra.mxu1 %v4774_v42 }
 0x6a9   :  { %4305 = vmatprep.subr.bf16.mxu1 %v4777_v26 }
 0x6ac   :  { %4306 = vmatpush3.bf16.msra.mxu1 %v4777_v26 }
 0x6ad   :  { %4307 = vmatprep.subr.bf16.mxu1 %v4780_v47 }
 0x6b0   :  { %4308 = vmatpush3.bf16.msra.mxu1 %v4780_v47 }
 0x6b1   :  { %4309 = vmatprep.subr.bf16.mxu1 %v4783_v53 }
 0x6b4   :  { %4310 = vmatpush3.bf16.msra.mxu1 %v4783_v53 }
 0x6b5   :  { %4311 = vmatprep.subr.bf16.mxu1 %v4786_v57 }
 0x6b8   :  { %4312 = vmatpush3.bf16.msra.mxu1 %v4786_v57 }
 0x730   :  { %v4219_v63 = vpop.f32.mrf.mxu0 }
 0x732   :  { %v4220_v6 = vpop.f32.mrf.mxu0 }
 0x733   :  { %v4221_v22 = vadd.f32 %v4220_v6, %v4219_v63 }
 0x734   :  { %v4222_v0 = vpop.f32.mrf.mxu0 }
 0x736   :  { %v4223_v10 = vpop.f32.mrf.mxu0 }
 0x737   :  { %v4224_v25 = vadd.f32 %v4223_v10, %v4222_v0 }
 0x738   :  { %v4225_v15 = vpop.f32.mrf.mxu0 }
 0x73a   :  { %v4226_v61 = vpop.f32.mrf.mxu0 }
 0x73b   :  { %v4191_v1 = vpop.f32.mrf.mxu1  ;;  %v4227_v33 = vadd.f32 %v4226_v61, %v4225_v15 }
 0x73c   :  { %v4228_v30 = vpop.f32.mrf.mxu0 }
 0x73d   :  { %v4192_v60 = vpop.f32.mrf.mxu1 }
 0x73e   :  { %v4193_v14 = vadd.f32 %v4192_v60, %v4191_v1  ;;  %v4229_v24 = vpop.f32.mrf.mxu0 }
 0x73f   :  { %v4194_v29 = vpop.f32.mrf.mxu1  ;;  %v4230_v42 = vadd.f32 %v4229_v24, %v4228_v30 }
 0x740   :  { %v3288_v20 = vadd.f32 %v4193_v14, %v4061_v16 }
 0x741   :  { %v4195_v28 = vpop.f32.mrf.mxu1 }
 0x742   :  { %v4196_v19 = vadd.f32 %v4195_v28, %v4194_v29  ;;  %v3337_v31 = vadd.f32 %v4221_v22, %v3288_v20 }
 0x743   :  { %v4197_v7 = vpop.f32.mrf.mxu1 }
 0x744   :  { %v3291_v27 = vadd.f32 %v4196_v19, %v4061_v16 }
 0x745   :  { %v4198_v8 = vpop.f32.mrf.mxu1 }
 0x746   :  { %v4199_v21 = vadd.f32 %v4198_v8, %v4197_v7  ;;  %v3340_v58 = vadd.f32 %v4224_v25, %v3291_v27 }
 0x747   :  { %v4200_v13 = vpop.f32.mrf.mxu1 }
 0x748   :  { %v3296_v55 = vadd.f32 %v4199_v21, %v4061_v16 }
 0x749   :  { %v4201_v18 = vpop.f32.mrf.mxu1 }
 0x74a   :  { %v4202_v43 = vadd.f32 %v4201_v18, %v4200_v13  ;;  %v3345_v44 = vadd.f32 %v4227_v33, %v3296_v55 }
 0x74c   :  { %v3299_v4 = vadd.f32 %v4202_v43, %v4061_v16 }
 0x74e   :  { %v3348_v47 = vadd.f32 %v4230_v42, %v3299_v4 }
 0x75b   :  { %v4247_v52 = vpop.f32.mrf.mxu1 }
 0x75d   :  { %v4248_v9 = vpop.f32.mrf.mxu1 }
 0x75e   :  { %v4249_v49 = vadd.f32 %v4248_v9, %v4247_v52 }
 0x75f   :  { %v4250_v2 = vpop.f32.mrf.mxu1 }
 0x760   :  { %v3386_v17 = vadd.f32 %v4249_v49, %v3337_v31 }
 0x761   :  { %v4251_v32 = vpop.f32.mrf.mxu1 }
 0x762   :  { %v4252_v62 = vadd.f32 %v4251_v32, %v4250_v2  ;;  %v3400_v34 = vmax.f32 %v3386_v17, 0.0 }
 0x763   :  { %v4253_v23 = vpop.f32.mrf.mxu1 }
 0x764   :  { %v3389_v37 = vadd.f32 %v4252_v62, %v3340_v58  ;;  %v3416_v51 = vrot.slane %v3400_v34, 1  ;;  %v3404_v29 = vrot.slane %v3400_v34, 7 }
 0x765   :  { %v4254_v45 = vpop.f32.mrf.mxu1 }
 0x766   :  { %v3401_v36 = vmax.f32 %v3389_v37, 0.0  ;;  %v4255_v3 = vadd.f32 %v4254_v45, %v4253_v23 }
 0x767   :  { %v4256_v5 = vpop.f32.mrf.mxu1 }
 0x768   :  { %v3394_v38 = vadd.f32 %v4255_v3, %v3345_v44  ;;  %v3429_v39 = vpack.c.bf16 %v3401_v36, %v3400_v34  ;;  %v3417_v40 = vrot.slane %v3401_v36, 1  ;;  %v3405_v56 = vrot.slane %v3401_v36, 7 }
 0x769   :  { %v4257_v26 = vpop.f32.mrf.mxu1 }
 0x76a   :  { %v3402_v46 = vmax.f32 %v3394_v38, 0.0  ;;  %v4258_v50 = vadd.f32 %v4257_v26, %v4256_v5  ;;  %3665 = vmatprep.mubr.bf16.mxu0 %v3429_v39  ;;  %v3422_v1 = vsel %vm169_vm1, %v3416_v51, %v3417_v40  ;;  %v3410_v6 = vsel %vm148_vm0, %v3404_v29, %v3405_v56 }
 0x76c   :  { %v3418_v53 = vrot.slane %v3402_v46, 1  ;;  %v3397_v54 = vadd.f32 %v4258_v50, %v3348_v47  ;;  %v3406_v35 = vrot.slane %v3402_v46, 7 }
 0x76e   :  { %v3403_v57 = vmax.f32 %v3397_v54, 0.0  ;;  %v3421_v59 = vsel %vm169_vm1, %v3417_v40, %v3418_v53  ;;  %v3409_v16 = vsel %vm148_vm0, %v3405_v56, %v3406_v35 }
 0x76f   :  { %v4166_v60 = vpack.c.bf16 %v3421_v59, %v3422_v1 }
 0x770   :  { %v3407_v63 = vrot.slane %v3403_v57, 7  ;;  %v3419_v28 = vrot.slane %v3403_v57, 1  ;;  %v3432_v14 = vpack.c.bf16 %v3403_v57, %v3402_v46 }
 0x771   :  { %4313 = vmatprep.mubr.msk.bf16.mxu1 %vm5159_vm10, %v4166_v60 }
 0x772   :  { %v3411_v7 = vsel %vm148_vm0, %v3407_v63, %v3404_v29  ;;  %v3420_v0 = vsel %vm169_vm1, %v3418_v53, %v3419_v28  ;;  %v3423_v8 = vsel %vm169_vm1, %v3419_v28, %v3416_v51  ;;  %v3408_v15 = vsel %vm148_vm0, %v3406_v35, %v3407_v63 }
 0x773   :  { %v4160_v10 = vpack.c.bf16 %v3410_v6, %v3411_v7  ;;  %v4169_v13 = vpack.c.bf16 %v3423_v8, %v3420_v0  ;;  %v4163_v18 = vpack.c.bf16 %v3408_v15, %v3409_v16 }
 0x775   :  { %4161 = vmatmul.mubr.msk.bf16.vlgmr.msra.gmra.mxu0 %vm5172_vm11, %v4160_v10  ;;  %4314 = vmatmul.mubr.msk.bf16.vlgmr.msra.gmra.mxu1 %vm5186_vm12, %v4169_v13 }
 0x776   :  { %3673 = vmatprep.mubr.bf16.mxu0 %v3432_v14 }
 0x77d   :  { %4164 = vmatmul.mubr.msk.bf16.gmra.mxu0 %vm5199_vm13, %v4163_v18 }
 0x835   :  { %v4275_v19 = vpop.f32.mrf.mxu0  ;;  %v4315_v52 = vpop.f32.mrf.mxu1 }
 0x837   :  { %v4276_v20 = vpop.f32.mrf.mxu0  ;;  %v3716_v12 = vpop.f32.mrf.mxu1 }
 0x838   :  { %v4277_v61 = vadd.f32 %v4276_v20, %v4275_v19 }
 0x839   :  { %v4278_v21 = vpop.f32.mrf.mxu0  ;;  %v4316_v22 = vpop.f32.mrf.mxu1 }
 0x83a   :  { %v3668_v9 = vadd.f32 %v4277_v61, %v4134_v41 }
 0x83b   :  { %v4279_v27 = vpop.f32.mrf.mxu0  ;;  %v3719_v48 = vpop.f32.mrf.mxu1 }
 0x83c   :  { %v3717_v49 = vadd.f32 %v3716_v12, %v3668_v9  ;;  %v4280_v11 = vadd.f32 %v4279_v27, %v4278_v21 }
 0x83d   :  { %v4281_v2 = vpop.f32.mrf.mxu0 }
 0x83e   :  { %v4171_v25 = vmul.f32 -1.442695, %v3717_v49  ;;  %v3671_v31 = vadd.f32 %v4280_v11, %v4134_v41 }
 0x83f   :  { %v4282_v30 = vpop.f32.mrf.mxu0 }
 0x840   :  { %4788 = vpow2.f32 %v4171_v25  ;;  %v3720_v55 = vadd.f32 %v3719_v48, %v3671_v31  ;;  %v4283_v32 = vadd.f32 %v4282_v30, %v4281_v2 }
 0x841   :  { %v4284_v43 = vpop.f32.mrf.mxu0 }
 0x842   :  { %v4172_v17 = vmul.f32 -1.442695, %v3720_v55  ;;  %v3676_v58 = vadd.f32 %v4283_v32, %v4134_v41 }
 0x843   :  { %v4285_v62 = vpop.f32.mrf.mxu0 }
 0x844   :  { %4790 = vpow2.f32 %v4172_v17  ;;  %v3725_v33 = vadd.f32 %v4315_v52, %v3676_v58  ;;  %v4286_v23 = vadd.f32 %v4285_v62, %v4284_v43 }
 0x846   :  { %v4173_v37 = vmul.f32 -1.442695, %v3725_v33  ;;  %v3679_v24 = vadd.f32 %v4286_v23, %v4134_v41 }
 0x848   :  { %4792 = vpow2.f32 %v4173_v37  ;;  %v3728_v44 = vadd.f32 %v4316_v22, %v3679_v24 }
 0x84a   :  { %v4174_v45 = vmul.f32 -1.442695, %v3728_v44 }
 0x84c   :  { %4794 = vpow2.f32 %v4174_v45 }
 0x84d   :  { %v4789_v4 = vpop.eup %4788 }
 0x84e   :  { %v3743_v34 = vadd.f32 1.0, %v4789_v4 }
 0x850   :  { %4796 = vrcp.f32 %v3743_v34 }
 0x851   :  { %v4791_v36 = vpop.eup %4790 }
 0x852   :  { %v3744_v3 = vadd.f32 1.0, %v4791_v36 }
 0x854   :  { %4798 = vrcp.f32 %v3744_v3 }
 0x855   :  { %v4793_v5 = vpop.eup %4792 }
 0x856   :  { %v3745_v42 = vadd.f32 1.0, %v4793_v5 }
 0x858   :  { %4800 = vrcp.f32 %v3745_v42 }
 0x859   :  { %v4795_v38 = vpop.eup %4794 }
 0x85a   :  { %v3746_v39 = vadd.f32 1.0, %v4795_v38 }
 0x85c   :  { %4802 = vrcp.f32 %v3746_v39 }
 0x85d   :  { %v4797_v26 = vpop.eup %4796 }
 0x85e   :  { %3755 = vst [vmem:[%s6406_s15] sm:$0xff] %v4797_v26 }
 0x861   :  { %v4799_v40 = vpop.eup %4798 }
 0x862   :  { %3756 = vst [vmem:[%s6406_s15 + $0x8] sm:$0xff] %v4799_v40 }
 0x865   :  { %v4801_v46 = vpop.eup %4800 }
 0x866   :  { %3757 = vst [vmem:[%s6406_s15 + $0x10] sm:$0xff] %v4801_v46 }
 0x869   :  { %v4803_v47 = vpop.eup %4802 }
 0x86a   :  { %3758 = vst [vmem:[%s6406_s15 + $0x18] sm:$0xff] %v4803_v47 }

</bundles_post_ra>
